<compile_context>
chip_gen: v7x
topology: tpu7x:2x2x1
jax: 0.10.0
libtpu: 0.0.40
codegen_flags: <defaults>
</compile_context>

<pallas_src>
import math

import jax
import jax.numpy as jnp
from jax import lax
from jax.experimental import pallas as pl
from jax.experimental.pallas import tpu as pltpu

LEAKY_SLOPE = 0.1
NEG_INF = -1e30  # behaves like -inf under max-subtraction before softmax
LANES = 128


def _round_up(x, m):
    return (x + m - 1) // m * m


def _make_kernel(n_head, d_model_true, compute_dtype):
    """Kernel factory.  d_model_true is the UNPADDED hidden dim (softmax temperature)."""

    def kernel(mels_ref, kpad_ref, ws_ref, sid_ref,
               protos_ref, w1_ref, w2_ref, cw1_ref, cw2_ref,
               wqkv_ref, wo_ref, wfc_ref, wV_ref,
               bias_ref, bqkv_ref, scal_ref,
               out_ref):
        bt, T, _ = mels_ref.shape
        Hp = w1_ref.shape[1]                     # lane-padded hidden dim
        K = cw1_ref.shape[0]
        pad = (K - 1) // 2
        nd = wqkv_ref.shape[1] // 3              # n_head * d_kp (lane-padded)
        d_kp = nd // n_head
        cd = compute_dtype
        f32 = jnp.float32

        def leaky(v):
            return jnp.where(v > 0, v, LEAKY_SLOPE * v)

        # ---- hoisted small loads (biases stay f32; matmul weights already in cd) ----
        bias = bias_ref[...]                                   # (8, Hp) f32
        b1, b2 = bias[0:1], bias[1:2]
        cb1, cb2 = bias[2:3], bias[3:4]
        bo, bfc, bV = bias[4:5], bias[5:6], bias[6:7]
        bqkv = bqkv_ref[...]                                   # (1, 3*nd) f32
        w_scale = scal_ref[0]                                  # SMEM scalars
        b_scale = scal_ref[1]

        t_idx = lax.broadcasted_iota(jnp.int32, (T, 1), 0)
        lane = lax.broadcasted_iota(jnp.int32, (1, LANES), 1)
        inv_temp = 1.0 / math.sqrt(float(d_model_true))

        def conv_layer(x, cw_ref, cb):
            # "same" Conv1d: y[t] = b + sum_j x[t + j - pad] @ cw[j]
            # K accumulating MXU matmuls; XLU roll of tap j+1 overlaps MXU of tap j.
            acc = jnp.zeros((T, Hp), f32) + cb
            for j in range(K):
                s = pad - j                       # rolled[t] = x[(t - s) mod T] = x[t+j-pad]
                if s == 0:
                    xr = x
                else:
                    xr = pltpu.roll(x, shift=s % T, axis=0)
                    valid = jnp.logical_and(t_idx >= s, t_idx < T + s)   # zero the wrap
                    xr = jnp.where(valid, xr, jnp.zeros_like(xr))
                acc = acc + jnp.dot(xr.astype(cd), cw_ref[j],
                                    preferred_element_type=f32)
            return x + leaky(acc)

        # ---- static unroll over the batch block (amortizes per-grid-step overhead) ----
        for bi in range(bt):
            mels = mels_ref[bi]                                # (T, C)
            kpad = kpad_ref[bi]                                # (1, T)   1.0 = padded
            ws = ws_ref[bi]                                    # (1, S)
            sid = sid_ref[bi]                                  # (1, n_spk) one-hot

            # -- speaker classification: dot_product_logit + per-example cross entropy --
            logits = lax.dot_general(ws.astype(cd), protos_ref[...],
                                     (((1,), (1,)), ((), ())),
                                     preferred_element_type=f32)        # (1, n_spk)
            mx = jnp.max(logits, axis=1, keepdims=True)
            lse = mx + jnp.log(jnp.sum(jnp.exp(logits - mx), axis=1, keepdims=True))
            cls = lse - jnp.sum(logits * sid, axis=1, keepdims=True)    # (1, 1)

            # -- spectral MLP: Linear -> LeakyReLU -> Linear -> LeakyReLU --
            x = leaky(jnp.dot(mels.astype(cd), w1_ref[...],
                              preferred_element_type=f32) + b1)         # (T, Hp)
            x = leaky(jnp.dot(x.astype(cd), w2_ref[...],
                              preferred_element_type=f32) + b2)

            # -- temporal: 2 x (Conv1d + LeakyReLU) with residual --
            x = conv_layer(x, cw1_ref, cb1)
            x = conv_layer(x, cw2_ref, cb2)

            # -- multi-head self-attention (fused QKV, head-batched matmuls) --
            # TODO(synk): flash-style key-block tiling (online softmax) for long T so the
            # (n_head, T, T) score tensor never materializes (matters on v7x 64MiB VMEM).
            qkv = jnp.dot(x.astype(cd), wqkv_ref[...],
                          preferred_element_type=f32) + bqkv            # (T, 3*nd)
            q = (qkv[:, 0:nd] * inv_temp).astype(cd).reshape(T, n_head, d_kp)
            k = qkv[:, nd:2 * nd].astype(cd).reshape(T, n_head, d_kp)
            v = qkv[:, 2 * nd:3 * nd].astype(cd).reshape(T, n_head, d_kp)
            sc = jnp.einsum('tnd,snd->nts', q, k,
                            preferred_element_type=f32)                 # (n_head, T, T)
            sc = sc + kpad * NEG_INF                                    # additive key mask
            e = jnp.exp(sc - jnp.max(sc, axis=-1, keepdims=True))
            denom = jnp.sum(e, axis=-1, keepdims=True)
            p = e * pl.reciprocal(denom, approx=True)                   # EUP reciprocal
            o = jnp.einsum('nts,snd->tnd', p.astype(cd), v,
                           preferred_element_type=f32)                  # (T, n_head, d_kp)
            attn = o.reshape(T, nd)
            x = x + jnp.dot(attn.astype(cd), wo_ref[...],
                            preferred_element_type=f32) + bo            # residual; dropout = id (eval)

            # -- output fc --
            x = jnp.dot(x.astype(cd), wfc_ref[...],
                        preferred_element_type=f32) + bfc               # (T, Hp)

            # -- masked temporal average pool as an MXU matvec (exact divide) --
            keep = 1.0 - kpad                                           # (1, T), 1.0 = valid
            length = jnp.maximum(jnp.sum(keep, axis=1, keepdims=True), 1.0)
            h = jnp.dot(keep, x, preferred_element_type=f32) / length   # (1, Hp)

            # -- style similarity score --
            ps = jnp.dot(sid.astype(cd), protos_ref[...],
                         preferred_element_type=f32)                    # (1, S) one-hot lookup
            vps = jnp.dot(ps.astype(cd), wV_ref[...],
                          preferred_element_type=f32) + bV              # (1, Hp)
            s = jnp.sum(vps * h, axis=1, keepdims=True)                 # (1, 1)
            sval = w_scale * s + b_scale

            # -- lane-dense packed output row: lane0 = s_val, lane1 = per-example CE --
            row = jnp.where(lane == 0, sval, 0.0) + jnp.where(lane == 1, cls, 0.0)
            out_ref[pl.ds(bi, 1), :, :] = row.reshape(1, 1, LANES)

    return kernel


def prepare_args(mels, key_pad, ws, sid_oh, p, n_head):
    """Pad/fuse raw module weights into the kernel's lane-dense layout."""
    B, T, C = mels.shape
    H = p["w1"].shape[1]
    S = p["wV"].shape[0]
    K = p["cw1"].shape[0]
    d_k = H // n_head
    Hp = _round_up(H, LANES)
    d_kp = _round_up(d_k, LANES)

    def padto(a, shape):
        return jnp.pad(a, [(0, s - d) for d, s in zip(a.shape, shape)])

    kpad3 = key_pad.reshape(B, 1, T)                     # 1.0 = padded
    ws3 = ws.reshape(B, 1, S)
    sid3 = sid_oh.reshape(B, 1, -1)

    w1 = padto(p["w1"], (C, Hp))
    w2 = padto(p["w2"], (Hp, Hp))
    cw1 = padto(p["cw1"], (K, Hp, Hp))
    cw2 = padto(p["cw2"], (K, Hp, Hp))
    wfc = padto(p["wfc"], (Hp, Hp))
    wV = padto(p["wV"], (S, Hp))

    def stack_heads(w, b):                               # w (n_head,H,d_k), b (n_head,1,d_k)
        wc = jnp.concatenate([padto(w[h], (Hp, d_kp)) for h in range(n_head)], axis=1)
        bc = jnp.concatenate([padto(b[h], (1, d_kp)) for h in range(n_head)], axis=1)
        return wc, bc

    wq, bq = stack_heads(p["wq"], p["bq"])
    wk, bk = stack_heads(p["wk"], p["bk"])
    wv, bv = stack_heads(p["wv"], p["bv"])
    wqkv = jnp.concatenate([wq, wk, wv], axis=1)         # (Hp, 3*n_head*d_kp)
    bqkv = jnp.concatenate([bq, bk, bv], axis=1)         # (1, 3*n_head*d_kp)
    wo = jnp.concatenate([padto(p["wo"][h], (d_kp, Hp)) for h in range(n_head)], axis=0)

    def brow(b):
        return padto(b, (1, Hp))

    bias_pack = jnp.concatenate(
        [brow(p["b1"]), brow(p["b2"]), brow(p["cb1"]), brow(p["cb2"]),
         brow(p["bo"]), brow(p["bfc"]), brow(p["bV"]),
         jnp.zeros((1, Hp), jnp.float32)], axis=0)       # (8, Hp)

    scal = jnp.concatenate([p["wsc"].reshape(1), p["bsc"].reshape(1)])  # (2,) SMEM scalars

    return (mels, kpad3, ws3, sid3, p["protos"], w1, w2, cw1, cw2,
            wqkv, wo, wfc, wV, bias_pack, bqkv, scal)


def run_style_discriminator(args, n_head, hidden_dim, compute_dtype=jnp.float32,
                            batch_block=1):
    (mels, kpad3, ws3, sid3, protos, w1, w2, cw1, cw2,
     wqkv, wo, wfc, wV, bias_pack, bqkv, scal) = args
    B = mels.shape[0]
    bt = batch_block
    assert B % bt == 0, "batch must be divisible by batch_block"

    if compute_dtype != jnp.float32:
        # Ship matmul weights already in the compute dtype (halves weight DMA bytes,
        # removes in-kernel casts).  Biases / masks / scalars stay f32.
        protos, w1, w2, cw1, cw2, wqkv, wo, wfc, wV = (
            a.astype(compute_dtype)
            for a in (protos, w1, w2, cw1, cw2, wqkv, wo, wfc, wV))

    def batched(a):
        rest = a.shape[1:]
        n = len(rest)
        return pl.BlockSpec((bt,) + rest, lambda i, _n=n: (i,) + (0,) * _n)

    def full(a):
        # TODO(synk): single-buffer these constant-index weight blocks
        # (pipeline_mode=pl.Buffered(1)) to free VMEM headroom on v7x (64 MiB).
        nd = a.ndim
        return pl.BlockSpec(a.shape, lambda i, _n=nd: (0,) * _n)

    weights = (protos, w1, w2, cw1, cw2, wqkv, wo, wfc, wV, bias_pack, bqkv)
    in_specs = ([batched(mels), batched(kpad3), batched(ws3), batched(sid3)]
                + [full(w) for w in weights]
                + [pl.BlockSpec(memory_space=pltpu.MemorySpace.SMEM)])

    out_shape = jax.ShapeDtypeStruct((B, 1, LANES), jnp.float32)
    out_specs = pl.BlockSpec((bt, 1, LANES), lambda i: (i, 0, 0))

    fn = pl.pallas_call(
        _make_kernel(n_head, hidden_dim, compute_dtype),
        grid=(B // bt,),
        out_shape=out_shape,
        in_specs=in_specs,
        out_specs=out_specs,
        compiler_params=pltpu.CompilerParams(
            dimension_semantics=("parallel",),
            vmem_limit_bytes=64 * 1024 * 1024),
    )
    packed = fn(mels, kpad3, ws3, sid3, *weights, scal)
    sval = packed[:, 0, 0:1]                              # (B, 1)
    cls = jnp.mean(packed[:, 0, 1]).reshape(1, 1)         # F.cross_entropy mean reduction
    return sval, cls


def reference(mels, key_pad, ws, sid_oh, p, n_head, matmul_dtype=jnp.float32):
    """Pure-JAX reference mirroring the PyTorch module structure (unpadded weights)."""
    md = matmul_dtype

    def mm(a, w):
        return jnp.dot(a.astype(md), w.astype(md), preferred_element_type=jnp.float32)

    def leaky(v):
        return jnp.where(v > 0, v, LEAKY_SLOPE * v)

    B, T, _ = mels.shape
    H = p["w1"].shape[1]
    K = p["cw1"].shape[0]
    pad = (K - 1) // 2

    logits = jnp.einsum("bs,ns->bn", ws.astype(md), p["protos"].astype(md),
                        preferred_element_type=jnp.float32)
    lse = jax.nn.logsumexp(logits, axis=1)
    true_logit = jnp.sum(logits * sid_oh, axis=1)
    cls = jnp.mean(lse - true_logit).reshape(1, 1)

    x = leaky(mm(mels, p["w1"]) + p["b1"])
    x = leaky(mm(x, p["w2"]) + p["b2"])

    for cw, cb in ((p["cw1"], p["cb1"]), (p["cw2"], p["cb2"])):
        res = x
        xp = jnp.pad(x, ((0, 0), (pad, pad), (0, 0)))
        acc = jnp.zeros((B, T, H), jnp.float32) + cb
        for j in range(K):
            acc = acc + mm(xp[:, j:j + T, :], cw[j])
        x = res + leaky(acc)

    km = key_pad[:, None, :] > 0.5
    temp = math.sqrt(float(H))
    res = x
    attn_out = jnp.zeros((B, T, H), jnp.float32) + p["bo"]
    for hh in range(n_head):
        qh = mm(x, p["wq"][hh]) + p["bq"][hh]
        kh = mm(x, p["wk"][hh]) + p["bk"][hh]
        vh = mm(x, p["wv"][hh]) + p["bv"][hh]
        sc = jnp.einsum("btd,bsd->bts", qh.astype(md), kh.astype(md),
                        preferred_element_type=jnp.float32) / temp
        sc = jnp.where(km, NEG_INF, sc)
        attn = jax.nn.softmax(sc, axis=-1)
        oh = jnp.einsum("bts,bsd->btd", attn.astype(md), vh.astype(md),
                        preferred_element_type=jnp.float32)
        attn_out = attn_out + mm(oh, p["wo"][hh])
    x = attn_out + res
    x = mm(x, p["wfc"]) + p["bfc"]

    keep = (1.0 - key_pad)[:, :, None]
    lens = jnp.maximum(jnp.sum(keep, axis=1), 1.0)
    h = jnp.sum(x * keep, axis=1) / lens
    ps = jnp.einsum("bn,ns->bs", sid_oh.astype(md), p["protos"].astype(md),
                    preferred_element_type=jnp.float32)
    vps = mm(ps, p["wV"]) + p["bV"]
    s = jnp.sum(vps * h, axis=1, keepdims=True)
    return p["wsc"] * s + p["bsc"], cls


if __name__ == "__main__":
    # Small shapes consistent with the module's forward.
    B, T = 2, 8
    input_dim, hidden_dim, style_dim = 16, 32, 16
    n_speakers, kernel_size, n_head = 4, 5, 2
    d_k = hidden_dim // n_head

    key = jax.random.PRNGKey(0)
    ks = jax.random.split(key, 32)

    def norm(k, shape, scale):
        return jax.random.normal(k, shape, dtype=jnp.float32) * scale

    # ----- inputs -----
    mels = norm(ks[0], (B, T, input_dim), 1.0)
    ws = norm(ks[1], (B, style_dim), 1.0)
    sids = jnp.array([1, 3], dtype=jnp.int32)
    lengths = jnp.array([T, 5], dtype=jnp.int32)
    key_pad = (jnp.arange(T)[None, :] >= lengths[:, None]).astype(jnp.float32)  # 1.0 = padded
    sid_oh = jax.nn.one_hot(sids, n_speakers, dtype=jnp.float32)

    # ----- deterministic synthetic parameters (spectral_norm is a training-time weight
    # reparam; any deterministic weights give the same forward structure) -----
    hs = 1.0 / math.sqrt(hidden_dim)
    cscale = 1.0 / math.sqrt(hidden_dim * kernel_size)
    params = dict(
        protos=norm(ks[2], (n_speakers, style_dim), 1.0),
        w1=norm(ks[3], (input_dim, hidden_dim), 1.0 / math.sqrt(input_dim)),
        b1=norm(ks[4], (1, hidden_dim), 0.1),
        w2=norm(ks[5], (hidden_dim, hidden_dim), hs),
        b2=norm(ks[6], (1, hidden_dim), 0.1),
        cw1=norm(ks[7], (kernel_size, hidden_dim, hidden_dim), cscale),
        cb1=norm(ks[8], (1, hidden_dim), 0.1),
        cw2=norm(ks[9], (kernel_size, hidden_dim, hidden_dim), cscale),
        cb2=norm(ks[10], (1, hidden_dim), 0.1),
        wq=norm(ks[11], (n_head, hidden_dim, d_k), hs),
        bq=norm(ks[12], (n_head, 1, d_k), 0.1),
        wk=norm(ks[13], (n_head, hidden_dim, d_k), hs),
        bk=norm(ks[14], (n_head, 1, d_k), 0.1),
        wv=norm(ks[15], (n_head, hidden_dim, d_k), hs),
        bv=norm(ks[16], (n_head, 1, d_k), 0.1),
        wo=norm(ks[17], (n_head, d_k, hidden_dim), hs),
        bo=norm(ks[18], (1, hidden_dim), 0.1),
        wfc=norm(ks[19], (hidden_dim, hidden_dim), hs),
        bfc=norm(ks[20], (1, hidden_dim), 0.1),
        wV=norm(ks[21], (style_dim, hidden_dim), 1.0 / math.sqrt(style_dim)),
        bV=norm(ks[22], (1, hidden_dim), 0.1),
        wsc=jnp.ones((1, 1), jnp.float32),   # self.w = ones(1)
        bsc=jnp.zeros((1, 1), jnp.float32),  # self.b = zeros(1)
    )

    args = prepare_args(mels, key_pad, ws, sid_oh, params, n_head)

    sr32, cr32 = reference(mels, key_pad, ws, sid_oh, params, n_head, jnp.float32)

    # ----- f32 path, one example per grid step (2 parallel steps -> both TCs on v7x) -----
    s_a, c_a = run_style_discriminator(args, n_head, hidden_dim, jnp.float32, batch_block=1)
    jax.block_until_ready((s_a, c_a))
    assert not bool(jnp.any(jnp.isnan(s_a))) and not bool(jnp.any(jnp.isnan(c_a)))
    assert bool(jnp.allclose(s_a, sr32, rtol=2e-2, atol=2e-2))
    assert bool(jnp.allclose(c_a, cr32, rtol=2e-2, atol=2e-2))

    # ----- f32 path, batch-blocked (grid-step overhead amortized over 2 examples) -----
    s_b, c_b = run_style_discriminator(args, n_head, hidden_dim, jnp.float32, batch_block=2)
    jax.block_until_ready((s_b, c_b))
    assert bool(jnp.allclose(s_b, sr32, rtol=2e-2, atol=2e-2))
    assert bool(jnp.allclose(c_b, cr32, rtol=2e-2, atol=2e-2))

    # ----- bf16 matmul-operand path (f32 accumulation & elementwise), batch-blocked -----
    sr16, cr16 = reference(mels, key_pad, ws, sid_oh, params, n_head, jnp.bfloat16)
    s_c, c_c = run_style_discriminator(args, n_head, hidden_dim, jnp.bfloat16, batch_block=2)
    jax.block_until_ready((s_c, c_c))
    assert not bool(jnp.any(jnp.isnan(s_c))) and not bool(jnp.any(jnp.isnan(c_c)))
    assert bool(jnp.allclose(s_c, sr16, rtol=5e-2, atol=5e-2))
    assert bool(jnp.allclose(c_c, cr16, rtol=5e-2, atol=5e-2))

    print("KERNEL_OK")
</pallas_src>

<mosaic_0001>
module attributes {stable_mosaic.version = 11 : i64} {
  func.func @kernel(%arg0: i32, %arg1: memref<1x8x16xf32, #tpu.memory_space<vmem>>, %arg2: memref<1x1x8xf32, #tpu.memory_space<vmem>>, %arg3: memref<1x1x16xf32, #tpu.memory_space<vmem>>, %arg4: memref<1x1x4xf32, #tpu.memory_space<vmem>>, %arg5: memref<4x16xf32, #tpu.memory_space<vmem>>, %arg6: memref<16x128xf32, #tpu.memory_space<vmem>>, %arg7: memref<128x128xf32, #tpu.memory_space<vmem>>, %arg8: memref<5x128x128xf32, #tpu.memory_space<vmem>>, %arg9: memref<5x128x128xf32, #tpu.memory_space<vmem>>, %arg10: memref<128x768xf32, #tpu.memory_space<vmem>>, %arg11: memref<256x128xf32, #tpu.memory_space<vmem>>, %arg12: memref<128x128xf32, #tpu.memory_space<vmem>>, %arg13: memref<16x128xf32, #tpu.memory_space<vmem>>, %arg14: memref<8x128xf32, #tpu.memory_space<vmem>>, %arg15: memref<1x768xf32, #tpu.memory_space<vmem>>, %arg16: memref<2xf32, #tpu.memory_space<smem>>, %arg17: memref<1x1x128xf32, #tpu.memory_space<vmem>>) attributes {dimension_semantics = [#tpu.dimension_semantics<parallel>], iteration_bounds = array<i64: 2>, scalar_prefetch = 0 : i64, scratch_operands = 0 : i64, tpu.core_type = #tpu.core_type<tc>, window_params = [{transform_indices = @transform_0, window_bounds = array<i64: 1, 8, 16>}, {transform_indices = @transform_1, window_bounds = array<i64: 1, 1, 8>}, {transform_indices = @transform_2, window_bounds = array<i64: 1, 1, 16>}, {transform_indices = @transform_3, window_bounds = array<i64: 1, 1, 4>}, {pipeline_mode = #tpu.pipeline_mode<synchronous>, transform_indices = @transform_4, window_bounds = array<i64: 4, 16>}, {pipeline_mode = #tpu.pipeline_mode<synchronous>, transform_indices = @transform_5, window_bounds = array<i64: 16, 128>}, {pipeline_mode = #tpu.pipeline_mode<synchronous>, transform_indices = @transform_6, window_bounds = array<i64: 128, 128>}, {pipeline_mode = #tpu.pipeline_mode<synchronous>, transform_indices = @transform_7, window_bounds = array<i64: 5, 128, 128>}, {pipeline_mode = #tpu.pipeline_mode<synchronous>, transform_indices = @transform_8, window_bounds = array<i64: 5, 128, 128>}, {pipeline_mode = #tpu.pipeline_mode<synchronous>, transform_indices = @transform_9, window_bounds = array<i64: 128, 768>}, {pipeline_mode = #tpu.pipeline_mode<synchronous>, transform_indices = @transform_10, window_bounds = array<i64: 256, 128>}, {pipeline_mode = #tpu.pipeline_mode<synchronous>, transform_indices = @transform_11, window_bounds = array<i64: 128, 128>}, {pipeline_mode = #tpu.pipeline_mode<synchronous>, transform_indices = @transform_12, window_bounds = array<i64: 16, 128>}, {pipeline_mode = #tpu.pipeline_mode<synchronous>, transform_indices = @transform_13, window_bounds = array<i64: 8, 128>}, {pipeline_mode = #tpu.pipeline_mode<synchronous>, transform_indices = @transform_14, window_bounds = array<i64: 1, 768>}, {transform_indices = @transform_15, window_bounds = array<i64: 2>}, {transform_indices = @transform_16, window_bounds = array<i64: 1, 1, 128>}]} {
    %c0 = arith.constant 0 : index
    %c0_0 = arith.constant 0 : index
    %0 = vector.load %arg14[%c0, %c0_0] : memref<8x128xf32, #tpu.memory_space<vmem>>, vector<8x128xf32>
    %1 = vector.extract_strided_slice %0 {offsets = [0, 0], sizes = [1, 128], strides = [1, 1]} : vector<8x128xf32> to vector<1x128xf32>
    %2 = vector.extract_strided_slice %0 {offsets = [1, 0], sizes = [1, 128], strides = [1, 1]} : vector<8x128xf32> to vector<1x128xf32>
    %3 = vector.extract_strided_slice %0 {offsets = [2, 0], sizes = [1, 128], strides = [1, 1]} : vector<8x128xf32> to vector<1x128xf32>
    %4 = vector.extract_strided_slice %0 {offsets = [3, 0], sizes = [1, 128], strides = [1, 1]} : vector<8x128xf32> to vector<1x128xf32>
    %5 = vector.extract_strided_slice %0 {offsets = [4, 0], sizes = [1, 128], strides = [1, 1]} : vector<8x128xf32> to vector<1x128xf32>
    %6 = vector.extract_strided_slice %0 {offsets = [5, 0], sizes = [1, 128], strides = [1, 1]} : vector<8x128xf32> to vector<1x128xf32>
    %7 = vector.extract_strided_slice %0 {offsets = [6, 0], sizes = [1, 128], strides = [1, 1]} : vector<8x128xf32> to vector<1x128xf32>
    %c0_1 = arith.constant 0 : index
    %c0_2 = arith.constant 0 : index
    %8 = vector.load %arg15[%c0_1, %c0_2] : memref<1x768xf32, #tpu.memory_space<vmem>>, vector<1x768xf32>
    %c0_3 = arith.constant 0 : index
    %9 = memref.load %arg16[%c0_3] : memref<2xf32, #tpu.memory_space<smem>>
    %c1 = arith.constant 1 : index
    %10 = memref.load %arg16[%c1] : memref<2xf32, #tpu.memory_space<smem>>
    %11 = tpu.iota {dimensions = array<i32: 0>} : vector<8x1xi32>
    %12 = tpu.iota {dimensions = array<i32: 1>} : vector<1x128xi32>
    %c0_4 = arith.constant 0 : index
    %c0_5 = arith.constant 0 : index
    %c0_6 = arith.constant 0 : index
    %13 = vector.load %arg1[%c0_4, %c0_5, %c0_6] : memref<1x8x16xf32, #tpu.memory_space<vmem>>, vector<1x8x16xf32>
    %14 = vector.shape_cast %13 : vector<1x8x16xf32> to vector<8x16xf32>
    %c0_7 = arith.constant 0 : index
    %c0_8 = arith.constant 0 : index
    %c0_9 = arith.constant 0 : index
    %15 = vector.load %arg2[%c0_7, %c0_8, %c0_9] : memref<1x1x8xf32, #tpu.memory_space<vmem>>, vector<1x1x8xf32>
    %16 = vector.shape_cast %15 : vector<1x1x8xf32> to vector<1x8xf32>
    %c0_10 = arith.constant 0 : index
    %c0_11 = arith.constant 0 : index
    %c0_12 = arith.constant 0 : index
    %17 = vector.load %arg3[%c0_10, %c0_11, %c0_12] : memref<1x1x16xf32, #tpu.memory_space<vmem>>, vector<1x1x16xf32>
    %18 = vector.shape_cast %17 : vector<1x1x16xf32> to vector<1x16xf32>
    %c0_13 = arith.constant 0 : index
    %c0_14 = arith.constant 0 : index
    %c0_15 = arith.constant 0 : index
    %19 = vector.load %arg4[%c0_13, %c0_14, %c0_15] : memref<1x1x4xf32, #tpu.memory_space<vmem>>, vector<1x1x4xf32>
    %20 = vector.shape_cast %19 : vector<1x1x4xf32> to vector<1x4xf32>
    %c0_16 = arith.constant 0 : index
    %c0_17 = arith.constant 0 : index
    %21 = vector.load %arg5[%c0_16, %c0_17] : memref<4x16xf32, #tpu.memory_space<vmem>>, vector<4x16xf32>
    %cst = arith.constant dense<0.000000e+00> : vector<1x4xf32>
    %22 = tpu.matmul %18, %21, %cst {dimension_numbers = #tpu.dot_dimension_numbers<[1], [1], [0], [0], [0, 0, 1, 0], [], []>} : vector<1x16xf32>, vector<4x16xf32>, vector<1x4xf32> -> vector<1x4xf32>
    %cst_18 = arith.constant dense<0xFF800000> : vector<1xf32>
    %23 = vector.multi_reduction <maximumf>, %22, %cst_18 [1] : vector<1x4xf32> to vector<1xf32>
    %24 = vector.shape_cast %23 : vector<1xf32> to vector<1x1xf32>
    %25 = vector.broadcast %24 : vector<1x1xf32> to vector<1x4xf32>
    %26 = arith.subf %22, %25 : vector<1x4xf32>
    %27 = math.exp %26 : vector<1x4xf32>
    %cst_19 = arith.constant dense<0.000000e+00> : vector<1xf32>
    %28 = vector.multi_reduction <add>, %27, %cst_19 [1] : vector<1x4xf32> to vector<1xf32>
    %29 = vector.shape_cast %28 : vector<1xf32> to vector<1x1xf32>
    %30 = math.log %29 : vector<1x1xf32>
    %31 = arith.addf %24, %30 : vector<1x1xf32>
    %32 = arith.mulf %22, %20 : vector<1x4xf32>
    %cst_20 = arith.constant dense<0.000000e+00> : vector<1xf32>
    %33 = vector.multi_reduction <add>, %32, %cst_20 [1] : vector<1x4xf32> to vector<1xf32>
    %34 = vector.shape_cast %33 : vector<1xf32> to vector<1x1xf32>
    %35 = arith.subf %31, %34 : vector<1x1xf32>
    %c0_21 = arith.constant 0 : index
    %c0_22 = arith.constant 0 : index
    %36 = vector.load %arg6[%c0_21, %c0_22] : memref<16x128xf32, #tpu.memory_space<vmem>>, vector<16x128xf32>
    %cst_23 = arith.constant dense<0.000000e+00> : vector<8x128xf32>
    %37 = tpu.matmul %14, %36, %cst_23 {dimension_numbers = #tpu.dot_dimension_numbers<[1], [0], [0], [1], [0, 0, 1, 1], [], []>} : vector<8x16xf32>, vector<16x128xf32>, vector<8x128xf32> -> vector<8x128xf32>
    %38 = vector.broadcast %1 : vector<1x128xf32> to vector<8x128xf32>
    %39 = arith.addf %37, %38 : vector<8x128xf32>
    %cst_24 = arith.constant 0.000000e+00 : f32
    %40 = vector.broadcast %cst_24 : f32 to vector<8x128xf32>
    %41 = arith.cmpf ogt, %39, %40 : vector<8x128xf32>
    %cst_25 = arith.constant 1.000000e-01 : f32
    %42 = vector.broadcast %cst_25 : f32 to vector<8x128xf32>
    %43 = arith.mulf %42, %39 : vector<8x128xf32>
    %44 = arith.select %41, %39, %43 : vector<8x128xi1>, vector<8x128xf32>
    %c0_26 = arith.constant 0 : index
    %c0_27 = arith.constant 0 : index
    %45 = vector.load %arg7[%c0_26, %c0_27] : memref<128x128xf32, #tpu.memory_space<vmem>>, vector<128x128xf32>
    %cst_28 = arith.constant dense<0.000000e+00> : vector<8x128xf32>
    %46 = tpu.matmul %44, %45, %cst_28 {dimension_numbers = #tpu.dot_dimension_numbers<[1], [0], [0], [1], [0, 0, 1, 1], [], []>} : vector<8x128xf32>, vector<128x128xf32>, vector<8x128xf32> -> vector<8x128xf32>
    %47 = vector.broadcast %2 : vector<1x128xf32> to vector<8x128xf32>
    %48 = arith.addf %46, %47 : vector<8x128xf32>
    %cst_29 = arith.constant 0.000000e+00 : f32
    %49 = vector.broadcast %cst_29 : f32 to vector<8x128xf32>
    %50 = arith.cmpf ogt, %48, %49 : vector<8x128xf32>
    %cst_30 = arith.constant 1.000000e-01 : f32
    %51 = vector.broadcast %cst_30 : f32 to vector<8x128xf32>
    %52 = arith.mulf %51, %48 : vector<8x128xf32>
    %53 = arith.select %50, %48, %52 : vector<8x128xi1>, vector<8x128xf32>
    %cst_31 = arith.constant 0.000000e+00 : f32
    %54 = vector.broadcast %cst_31 : f32 to vector<8x128xf32>
    %55 = vector.broadcast %3 : vector<1x128xf32> to vector<8x128xf32>
    %56 = arith.addf %54, %55 : vector<8x128xf32>
    %c2_i32 = arith.constant 2 : i32
    %57 = tpu.dynamic_rotate %53 by %c2_i32 dim 0 : vector<8x128xf32>, i32 -> vector<8x128xf32>
    %c2_i32_32 = arith.constant 2 : i32
    %58 = vector.broadcast %c2_i32_32 : i32 to vector<8x1xi32>
    %59 = arith.cmpi sge, %11, %58 : vector<8x1xi32>
    %c10_i32 = arith.constant 10 : i32
    %60 = vector.broadcast %c10_i32 : i32 to vector<8x1xi32>
    %61 = arith.cmpi slt, %11, %60 : vector<8x1xi32>
    %62 = arith.andi %59, %61 : vector<8x1xi1>
    %cst_33 = arith.constant 0.000000e+00 : f32
    %63 = vector.broadcast %cst_33 : f32 to vector<8x128xf32>
    %64 = vector.shape_cast %62 : vector<8x1xi1> to vector<8x1xi1>
    %65 = vector.broadcast %64 : vector<8x1xi1> to vector<8x128xi1>
    %66 = arith.select %65, %57, %63 : vector<8x128xi1>, vector<8x128xf32>
    %c0_34 = arith.constant 0 : index
    %c0_35 = arith.constant 0 : index
    %c0_36 = arith.constant 0 : index
    %67 = vector.load %arg8[%c0_34, %c0_35, %c0_36] : memref<5x128x128xf32, #tpu.memory_space<vmem>>, vector<1x128x128xf32>
    %68 = vector.shape_cast %67 : vector<1x128x128xf32> to vector<128x128xf32>
    %cst_37 = arith.constant dense<0.000000e+00> : vector<8x128xf32>
    %69 = tpu.matmul %66, %68, %cst_37 {dimension_numbers = #tpu.dot_dimension_numbers<[1], [0], [0], [1], [0, 0, 1, 1], [], []>} : vector<8x128xf32>, vector<128x128xf32>, vector<8x128xf32> -> vector<8x128xf32>
    %70 = arith.addf %56, %69 : vector<8x128xf32>
    %c1_i32 = arith.constant 1 : i32
    %71 = tpu.dynamic_rotate %53 by %c1_i32 dim 0 : vector<8x128xf32>, i32 -> vector<8x128xf32>
    %c1_i32_38 = arith.constant 1 : i32
    %72 = vector.broadcast %c1_i32_38 : i32 to vector<8x1xi32>
    %73 = arith.cmpi sge, %11, %72 : vector<8x1xi32>
    %c9_i32 = arith.constant 9 : i32
    %74 = vector.broadcast %c9_i32 : i32 to vector<8x1xi32>
    %75 = arith.cmpi slt, %11, %74 : vector<8x1xi32>
    %76 = arith.andi %73, %75 : vector<8x1xi1>
    %cst_39 = arith.constant 0.000000e+00 : f32
    %77 = vector.broadcast %cst_39 : f32 to vector<8x128xf32>
    %78 = vector.shape_cast %76 : vector<8x1xi1> to vector<8x1xi1>
    %79 = vector.broadcast %78 : vector<8x1xi1> to vector<8x128xi1>
    %80 = arith.select %79, %71, %77 : vector<8x128xi1>, vector<8x128xf32>
    %c1_40 = arith.constant 1 : index
    %c0_41 = arith.constant 0 : index
    %c0_42 = arith.constant 0 : index
    %81 = vector.load %arg8[%c1_40, %c0_41, %c0_42] : memref<5x128x128xf32, #tpu.memory_space<vmem>>, vector<1x128x128xf32>
    %82 = vector.shape_cast %81 : vector<1x128x128xf32> to vector<128x128xf32>
    %cst_43 = arith.constant dense<0.000000e+00> : vector<8x128xf32>
    %83 = tpu.matmul %80, %82, %cst_43 {dimension_numbers = #tpu.dot_dimension_numbers<[1], [0], [0], [1], [0, 0, 1, 1], [], []>} : vector<8x128xf32>, vector<128x128xf32>, vector<8x128xf32> -> vector<8x128xf32>
    %84 = arith.addf %70, %83 : vector<8x128xf32>
    %c2 = arith.constant 2 : index
    %c0_44 = arith.constant 0 : index
    %c0_45 = arith.constant 0 : index
    %85 = vector.load %arg8[%c2, %c0_44, %c0_45] : memref<5x128x128xf32, #tpu.memory_space<vmem>>, vector<1x128x128xf32>
    %86 = vector.shape_cast %85 : vector<1x128x128xf32> to vector<128x128xf32>
    %cst_46 = arith.constant dense<0.000000e+00> : vector<8x128xf32>
    %87 = tpu.matmul %53, %86, %cst_46 {dimension_numbers = #tpu.dot_dimension_numbers<[1], [0], [0], [1], [0, 0, 1, 1], [], []>} : vector<8x128xf32>, vector<128x128xf32>, vector<8x128xf32> -> vector<8x128xf32>
    %88 = arith.addf %84, %87 : vector<8x128xf32>
    %c7_i32 = arith.constant 7 : i32
    %89 = tpu.dynamic_rotate %53 by %c7_i32 dim 0 : vector<8x128xf32>, i32 -> vector<8x128xf32>
    %c-1_i32 = arith.constant -1 : i32
    %90 = vector.broadcast %c-1_i32 : i32 to vector<8x1xi32>
    %91 = arith.cmpi sge, %11, %90 : vector<8x1xi32>
    %c7_i32_47 = arith.constant 7 : i32
    %92 = vector.broadcast %c7_i32_47 : i32 to vector<8x1xi32>
    %93 = arith.cmpi slt, %11, %92 : vector<8x1xi32>
    %94 = arith.andi %91, %93 : vector<8x1xi1>
    %cst_48 = arith.constant 0.000000e+00 : f32
    %95 = vector.broadcast %cst_48 : f32 to vector<8x128xf32>
    %96 = vector.shape_cast %94 : vector<8x1xi1> to vector<8x1xi1>
    %97 = vector.broadcast %96 : vector<8x1xi1> to vector<8x128xi1>
    %98 = arith.select %97, %89, %95 : vector<8x128xi1>, vector<8x128xf32>
    %c3 = arith.constant 3 : index
    %c0_49 = arith.constant 0 : index
    %c0_50 = arith.constant 0 : index
    %99 = vector.load %arg8[%c3, %c0_49, %c0_50] : memref<5x128x128xf32, #tpu.memory_space<vmem>>, vector<1x128x128xf32>
    %100 = vector.shape_cast %99 : vector<1x128x128xf32> to vector<128x128xf32>
    %cst_51 = arith.constant dense<0.000000e+00> : vector<8x128xf32>
    %101 = tpu.matmul %98, %100, %cst_51 {dimension_numbers = #tpu.dot_dimension_numbers<[1], [0], [0], [1], [0, 0, 1, 1], [], []>} : vector<8x128xf32>, vector<128x128xf32>, vector<8x128xf32> -> vector<8x128xf32>
    %102 = arith.addf %88, %101 : vector<8x128xf32>
    %c6_i32 = arith.constant 6 : i32
    %103 = tpu.dynamic_rotate %53 by %c6_i32 dim 0 : vector<8x128xf32>, i32 -> vector<8x128xf32>
    %c-2_i32 = arith.constant -2 : i32
    %104 = vector.broadcast %c-2_i32 : i32 to vector<8x1xi32>
    %105 = arith.cmpi sge, %11, %104 : vector<8x1xi32>
    %c6_i32_52 = arith.constant 6 : i32
    %106 = vector.broadcast %c6_i32_52 : i32 to vector<8x1xi32>
    %107 = arith.cmpi slt, %11, %106 : vector<8x1xi32>
    %108 = arith.andi %105, %107 : vector<8x1xi1>
    %cst_53 = arith.constant 0.000000e+00 : f32
    %109 = vector.broadcast %cst_53 : f32 to vector<8x128xf32>
    %110 = vector.shape_cast %108 : vector<8x1xi1> to vector<8x1xi1>
    %111 = vector.broadcast %110 : vector<8x1xi1> to vector<8x128xi1>
    %112 = arith.select %111, %103, %109 : vector<8x128xi1>, vector<8x128xf32>
    %c4 = arith.constant 4 : index
    %c0_54 = arith.constant 0 : index
    %c0_55 = arith.constant 0 : index
    %113 = vector.load %arg8[%c4, %c0_54, %c0_55] : memref<5x128x128xf32, #tpu.memory_space<vmem>>, vector<1x128x128xf32>
    %114 = vector.shape_cast %113 : vector<1x128x128xf32> to vector<128x128xf32>
    %cst_56 = arith.constant dense<0.000000e+00> : vector<8x128xf32>
    %115 = tpu.matmul %112, %114, %cst_56 {dimension_numbers = #tpu.dot_dimension_numbers<[1], [0], [0], [1], [0, 0, 1, 1], [], []>} : vector<8x128xf32>, vector<128x128xf32>, vector<8x128xf32> -> vector<8x128xf32>
    %116 = arith.addf %102, %115 : vector<8x128xf32>
    %cst_57 = arith.constant 0.000000e+00 : f32
    %117 = vector.broadcast %cst_57 : f32 to vector<8x128xf32>
    %118 = arith.cmpf ogt, %116, %117 : vector<8x128xf32>
    %cst_58 = arith.constant 1.000000e-01 : f32
    %119 = vector.broadcast %cst_58 : f32 to vector<8x128xf32>
    %120 = arith.mulf %119, %116 : vector<8x128xf32>
    %121 = arith.select %118, %116, %120 : vector<8x128xi1>, vector<8x128xf32>
    %122 = arith.addf %53, %121 : vector<8x128xf32>
    %cst_59 = arith.constant 0.000000e+00 : f32
    %123 = vector.broadcast %cst_59 : f32 to vector<8x128xf32>
    %124 = vector.broadcast %4 : vector<1x128xf32> to vector<8x128xf32>
    %125 = arith.addf %123, %124 : vector<8x128xf32>
    %c2_i32_60 = arith.constant 2 : i32
    %126 = tpu.dynamic_rotate %122 by %c2_i32_60 dim 0 : vector<8x128xf32>, i32 -> vector<8x128xf32>
    %c2_i32_61 = arith.constant 2 : i32
    %127 = vector.broadcast %c2_i32_61 : i32 to vector<8x1xi32>
    %128 = arith.cmpi sge, %11, %127 : vector<8x1xi32>
    %c10_i32_62 = arith.constant 10 : i32
    %129 = vector.broadcast %c10_i32_62 : i32 to vector<8x1xi32>
    %130 = arith.cmpi slt, %11, %129 : vector<8x1xi32>
    %131 = arith.andi %128, %130 : vector<8x1xi1>
    %cst_63 = arith.constant 0.000000e+00 : f32
    %132 = vector.broadcast %cst_63 : f32 to vector<8x128xf32>
    %133 = vector.shape_cast %131 : vector<8x1xi1> to vector<8x1xi1>
    %134 = vector.broadcast %133 : vector<8x1xi1> to vector<8x128xi1>
    %135 = arith.select %134, %126, %132 : vector<8x128xi1>, vector<8x128xf32>
    %c0_64 = arith.constant 0 : index
    %c0_65 = arith.constant 0 : index
    %c0_66 = arith.constant 0 : index
    %136 = vector.load %arg9[%c0_64, %c0_65, %c0_66] : memref<5x128x128xf32, #tpu.memory_space<vmem>>, vector<1x128x128xf32>
    %137 = vector.shape_cast %136 : vector<1x128x128xf32> to vector<128x128xf32>
    %cst_67 = arith.constant dense<0.000000e+00> : vector<8x128xf32>
    %138 = tpu.matmul %135, %137, %cst_67 {dimension_numbers = #tpu.dot_dimension_numbers<[1], [0], [0], [1], [0, 0, 1, 1], [], []>} : vector<8x128xf32>, vector<128x128xf32>, vector<8x128xf32> -> vector<8x128xf32>
    %139 = arith.addf %125, %138 : vector<8x128xf32>
    %c1_i32_68 = arith.constant 1 : i32
    %140 = tpu.dynamic_rotate %122 by %c1_i32_68 dim 0 : vector<8x128xf32>, i32 -> vector<8x128xf32>
    %c1_i32_69 = arith.constant 1 : i32
    %141 = vector.broadcast %c1_i32_69 : i32 to vector<8x1xi32>
    %142 = arith.cmpi sge, %11, %141 : vector<8x1xi32>
    %c9_i32_70 = arith.constant 9 : i32
    %143 = vector.broadcast %c9_i32_70 : i32 to vector<8x1xi32>
    %144 = arith.cmpi slt, %11, %143 : vector<8x1xi32>
    %145 = arith.andi %142, %144 : vector<8x1xi1>
    %cst_71 = arith.constant 0.000000e+00 : f32
    %146 = vector.broadcast %cst_71 : f32 to vector<8x128xf32>
    %147 = vector.shape_cast %145 : vector<8x1xi1> to vector<8x1xi1>
    %148 = vector.broadcast %147 : vector<8x1xi1> to vector<8x128xi1>
    %149 = arith.select %148, %140, %146 : vector<8x128xi1>, vector<8x128xf32>
    %c1_72 = arith.constant 1 : index
    %c0_73 = arith.constant 0 : index
    %c0_74 = arith.constant 0 : index
    %150 = vector.load %arg9[%c1_72, %c0_73, %c0_74] : memref<5x128x128xf32, #tpu.memory_space<vmem>>, vector<1x128x128xf32>
    %151 = vector.shape_cast %150 : vector<1x128x128xf32> to vector<128x128xf32>
    %cst_75 = arith.constant dense<0.000000e+00> : vector<8x128xf32>
    %152 = tpu.matmul %149, %151, %cst_75 {dimension_numbers = #tpu.dot_dimension_numbers<[1], [0], [0], [1], [0, 0, 1, 1], [], []>} : vector<8x128xf32>, vector<128x128xf32>, vector<8x128xf32> -> vector<8x128xf32>
    %153 = arith.addf %139, %152 : vector<8x128xf32>
    %c2_76 = arith.constant 2 : index
    %c0_77 = arith.constant 0 : index
    %c0_78 = arith.constant 0 : index
    %154 = vector.load %arg9[%c2_76, %c0_77, %c0_78] : memref<5x128x128xf32, #tpu.memory_space<vmem>>, vector<1x128x128xf32>
    %155 = vector.shape_cast %154 : vector<1x128x128xf32> to vector<128x128xf32>
    %cst_79 = arith.constant dense<0.000000e+00> : vector<8x128xf32>
    %156 = tpu.matmul %122, %155, %cst_79 {dimension_numbers = #tpu.dot_dimension_numbers<[1], [0], [0], [1], [0, 0, 1, 1], [], []>} : vector<8x128xf32>, vector<128x128xf32>, vector<8x128xf32> -> vector<8x128xf32>
    %157 = arith.addf %153, %156 : vector<8x128xf32>
    %c7_i32_80 = arith.constant 7 : i32
    %158 = tpu.dynamic_rotate %122 by %c7_i32_80 dim 0 : vector<8x128xf32>, i32 -> vector<8x128xf32>
    %c-1_i32_81 = arith.constant -1 : i32
    %159 = vector.broadcast %c-1_i32_81 : i32 to vector<8x1xi32>
    %160 = arith.cmpi sge, %11, %159 : vector<8x1xi32>
    %c7_i32_82 = arith.constant 7 : i32
    %161 = vector.broadcast %c7_i32_82 : i32 to vector<8x1xi32>
    %162 = arith.cmpi slt, %11, %161 : vector<8x1xi32>
    %163 = arith.andi %160, %162 : vector<8x1xi1>
    %cst_83 = arith.constant 0.000000e+00 : f32
    %164 = vector.broadcast %cst_83 : f32 to vector<8x128xf32>
    %165 = vector.shape_cast %163 : vector<8x1xi1> to vector<8x1xi1>
    %166 = vector.broadcast %165 : vector<8x1xi1> to vector<8x128xi1>
    %167 = arith.select %166, %158, %164 : vector<8x128xi1>, vector<8x128xf32>
    %c3_84 = arith.constant 3 : index
    %c0_85 = arith.constant 0 : index
    %c0_86 = arith.constant 0 : index
    %168 = vector.load %arg9[%c3_84, %c0_85, %c0_86] : memref<5x128x128xf32, #tpu.memory_space<vmem>>, vector<1x128x128xf32>
    %169 = vector.shape_cast %168 : vector<1x128x128xf32> to vector<128x128xf32>
    %cst_87 = arith.constant dense<0.000000e+00> : vector<8x128xf32>
    %170 = tpu.matmul %167, %169, %cst_87 {dimension_numbers = #tpu.dot_dimension_numbers<[1], [0], [0], [1], [0, 0, 1, 1], [], []>} : vector<8x128xf32>, vector<128x128xf32>, vector<8x128xf32> -> vector<8x128xf32>
    %171 = arith.addf %157, %170 : vector<8x128xf32>
    %c6_i32_88 = arith.constant 6 : i32
    %172 = tpu.dynamic_rotate %122 by %c6_i32_88 dim 0 : vector<8x128xf32>, i32 -> vector<8x128xf32>
    %c-2_i32_89 = arith.constant -2 : i32
    %173 = vector.broadcast %c-2_i32_89 : i32 to vector<8x1xi32>
    %174 = arith.cmpi sge, %11, %173 : vector<8x1xi32>
    %c6_i32_90 = arith.constant 6 : i32
    %175 = vector.broadcast %c6_i32_90 : i32 to vector<8x1xi32>
    %176 = arith.cmpi slt, %11, %175 : vector<8x1xi32>
    %177 = arith.andi %174, %176 : vector<8x1xi1>
    %cst_91 = arith.constant 0.000000e+00 : f32
    %178 = vector.broadcast %cst_91 : f32 to vector<8x128xf32>
    %179 = vector.shape_cast %177 : vector<8x1xi1> to vector<8x1xi1>
    %180 = vector.broadcast %179 : vector<8x1xi1> to vector<8x128xi1>
    %181 = arith.select %180, %172, %178 : vector<8x128xi1>, vector<8x128xf32>
    %c4_92 = arith.constant 4 : index
    %c0_93 = arith.constant 0 : index
    %c0_94 = arith.constant 0 : index
    %182 = vector.load %arg9[%c4_92, %c0_93, %c0_94] : memref<5x128x128xf32, #tpu.memory_space<vmem>>, vector<1x128x128xf32>
    %183 = vector.shape_cast %182 : vector<1x128x128xf32> to vector<128x128xf32>
    %cst_95 = arith.constant dense<0.000000e+00> : vector<8x128xf32>
    %184 = tpu.matmul %181, %183, %cst_95 {dimension_numbers = #tpu.dot_dimension_numbers<[1], [0], [0], [1], [0, 0, 1, 1], [], []>} : vector<8x128xf32>, vector<128x128xf32>, vector<8x128xf32> -> vector<8x128xf32>
    %185 = arith.addf %171, %184 : vector<8x128xf32>
    %cst_96 = arith.constant 0.000000e+00 : f32
    %186 = vector.broadcast %cst_96 : f32 to vector<8x128xf32>
    %187 = arith.cmpf ogt, %185, %186 : vector<8x128xf32>
    %cst_97 = arith.constant 1.000000e-01 : f32
    %188 = vector.broadcast %cst_97 : f32 to vector<8x128xf32>
    %189 = arith.mulf %188, %185 : vector<8x128xf32>
    %190 = arith.select %187, %185, %189 : vector<8x128xi1>, vector<8x128xf32>
    %191 = arith.addf %122, %190 : vector<8x128xf32>
    %c0_98 = arith.constant 0 : index
    %c0_99 = arith.constant 0 : index
    %192 = vector.load %arg10[%c0_98, %c0_99] : memref<128x768xf32, #tpu.memory_space<vmem>>, vector<128x768xf32>
    %cst_100 = arith.constant dense<0.000000e+00> : vector<8x768xf32>
    %193 = tpu.matmul %191, %192, %cst_100 {dimension_numbers = #tpu.dot_dimension_numbers<[1], [0], [0], [1], [0, 0, 1, 1], [], []>} : vector<8x128xf32>, vector<128x768xf32>, vector<8x768xf32> -> vector<8x768xf32>
    %194 = vector.broadcast %8 : vector<1x768xf32> to vector<8x768xf32>
    %195 = arith.addf %193, %194 : vector<8x768xf32>
    %196 = vector.extract_strided_slice %195 {offsets = [0, 0], sizes = [8, 256], strides = [1, 1]} : vector<8x768xf32> to vector<8x256xf32>
    %cst_101 = arith.constant 0.176776692 : f32
    %197 = vector.broadcast %cst_101 : f32 to vector<8x256xf32>
    %198 = arith.mulf %196, %197 : vector<8x256xf32>
    %199 = vector.shape_cast %198 : vector<8x256xf32> to vector<8x2x128xf32>
    %200 = vector.extract_strided_slice %195 {offsets = [0, 256], sizes = [8, 256], strides = [1, 1]} : vector<8x768xf32> to vector<8x256xf32>
    %201 = vector.shape_cast %200 : vector<8x256xf32> to vector<8x2x128xf32>
    %202 = vector.extract_strided_slice %195 {offsets = [0, 512], sizes = [8, 256], strides = [1, 1]} : vector<8x768xf32> to vector<8x256xf32>
    %203 = vector.shape_cast %202 : vector<8x256xf32> to vector<8x2x128xf32>
    "tpu.trace_start"() <{level = 10 : i32, message = "tnd,snd->nts"}> : () -> ()
    %cst_102 = arith.constant dense<0.000000e+00> : vector<2x8x8xf32>
    %204 = tpu.matmul %199, %201, %cst_102 {dimension_numbers = #tpu.dot_dimension_numbers<[2], [2], [0], [0], [0, 1, 0, 0, 1, 0], [1], [1]>} : vector<8x2x128xf32>, vector<8x2x128xf32>, vector<2x8x8xf32> -> vector<2x8x8xf32>
    "tpu.trace_stop"() : () -> ()
    %cst_103 = arith.constant -1.000000e+30 : f32
    %205 = vector.broadcast %cst_103 : f32 to vector<1x8xf32>
    %206 = arith.mulf %16, %205 : vector<1x8xf32>
    %207 = vector.shape_cast %206 : vector<1x8xf32> to vector<1x1x8xf32>
    %208 = vector.broadcast %207 : vector<1x1x8xf32> to vector<2x8x8xf32>
    %209 = arith.addf %204, %208 : vector<2x8x8xf32>
    %cst_104 = arith.constant dense<0xFF800000> : vector<2x8xf32>
    %210 = vector.multi_reduction <maximumf>, %209, %cst_104 [2] : vector<2x8x8xf32> to vector<2x8xf32>
    %211 = vector.shape_cast %210 : vector<2x8xf32> to vector<2x8x1xf32>
    %212 = vector.broadcast %211 : vector<2x8x1xf32> to vector<2x8x8xf32>
    %213 = arith.subf %209, %212 : vector<2x8x8xf32>
    %214 = math.exp %213 : vector<2x8x8xf32>
    %cst_105 = arith.constant dense<0.000000e+00> : vector<2x8xf32>
    %215 = vector.multi_reduction <add>, %214, %cst_105 [2] : vector<2x8x8xf32> to vector<2x8xf32>
    %216 = vector.shape_cast %215 : vector<2x8xf32> to vector<2x8x1xf32>
    %217 = tpu.reciprocal %216 {approx = true} : vector<2x8x1xf32> -> vector<2x8x1xf32>
    %218 = vector.broadcast %217 : vector<2x8x1xf32> to vector<2x8x8xf32>
    %219 = arith.mulf %214, %218 : vector<2x8x8xf32>
    "tpu.trace_start"() <{level = 10 : i32, message = "nts,snd->tnd"}> : () -> ()
    %cst_106 = arith.constant dense<0.000000e+00> : vector<2x128x8xf32>
    %220 = tpu.matmul %203, %219, %cst_106 {dimension_numbers = #tpu.dot_dimension_numbers<[0], [2], [2], [1], [0, 1, 0, 2, 1, 1], [1], [0]>} : vector<8x2x128xf32>, vector<2x8x8xf32>, vector<2x128x8xf32> -> vector<2x128x8xf32>
    %221 = tpu.transpose %220, [2, 0, 1] : vector<2x128x8xf32> -> vector<8x2x128xf32>
    "tpu.trace_stop"() : () -> ()
    %222 = vector.shape_cast %221 : vector<8x2x128xf32> to vector<8x256xf32>
    %c0_107 = arith.constant 0 : index
    %c0_108 = arith.constant 0 : index
    %223 = vector.load %arg11[%c0_107, %c0_108] : memref<256x128xf32, #tpu.memory_space<vmem>>, vector<256x128xf32>
    %cst_109 = arith.constant dense<0.000000e+00> : vector<8x128xf32>
    %224 = tpu.matmul %222, %223, %cst_109 {dimension_numbers = #tpu.dot_dimension_numbers<[1], [0], [0], [1], [0, 0, 1, 1], [], []>} : vector<8x256xf32>, vector<256x128xf32>, vector<8x128xf32> -> vector<8x128xf32>
    %225 = arith.addf %191, %224 : vector<8x128xf32>
    %226 = vector.broadcast %5 : vector<1x128xf32> to vector<8x128xf32>
    %227 = arith.addf %225, %226 : vector<8x128xf32>
    %c0_110 = arith.constant 0 : index
    %c0_111 = arith.constant 0 : index
    %228 = vector.load %arg12[%c0_110, %c0_111] : memref<128x128xf32, #tpu.memory_space<vmem>>, vector<128x128xf32>
    %cst_112 = arith.constant dense<0.000000e+00> : vector<8x128xf32>
    %229 = tpu.matmul %227, %228, %cst_112 {dimension_numbers = #tpu.dot_dimension_numbers<[1], [0], [0], [1], [0, 0, 1, 1], [], []>} : vector<8x128xf32>, vector<128x128xf32>, vector<8x128xf32> -> vector<8x128xf32>
    %230 = vector.broadcast %6 : vector<1x128xf32> to vector<8x128xf32>
    %231 = arith.addf %229, %230 : vector<8x128xf32>
    %cst_113 = arith.constant 1.000000e+00 : f32
    %232 = vector.broadcast %cst_113 : f32 to vector<1x8xf32>
    %233 = arith.subf %232, %16 : vector<1x8xf32>
    %cst_114 = arith.constant dense<0.000000e+00> : vector<1xf32>
    %234 = vector.multi_reduction <add>, %233, %cst_114 [1] : vector<1x8xf32> to vector<1xf32>
    %235 = vector.shape_cast %234 : vector<1xf32> to vector<1x1xf32>
    %cst_115 = arith.constant 1.000000e+00 : f32
    %236 = vector.broadcast %cst_115 : f32 to vector<1x1xf32>
    %237 = arith.maximumf %235, %236 : vector<1x1xf32>
    %cst_116 = arith.constant dense<0.000000e+00> : vector<1x128xf32>
    %238 = tpu.matmul %233, %231, %cst_116 {dimension_numbers = #tpu.dot_dimension_numbers<[1], [0], [0], [1], [0, 0, 1, 1], [], []>} : vector<1x8xf32>, vector<8x128xf32>, vector<1x128xf32> -> vector<1x128xf32>
    %239 = vector.broadcast %237 : vector<1x1xf32> to vector<1x128xf32>
    %240 = arith.divf %238, %239 : vector<1x128xf32>
    %c0_117 = arith.constant 0 : index
    %c0_118 = arith.constant 0 : index
    %241 = vector.load %arg5[%c0_117, %c0_118] : memref<4x16xf32, #tpu.memory_space<vmem>>, vector<4x16xf32>
    %cst_119 = arith.constant dense<0.000000e+00> : vector<1x16xf32>
    %242 = tpu.matmul %20, %241, %cst_119 {dimension_numbers = #tpu.dot_dimension_numbers<[1], [0], [0], [1], [0, 0, 1, 1], [], []>} : vector<1x4xf32>, vector<4x16xf32>, vector<1x16xf32> -> vector<1x16xf32>
    %c0_120 = arith.constant 0 : index
    %c0_121 = arith.constant 0 : index
    %243 = vector.load %arg13[%c0_120, %c0_121] : memref<16x128xf32, #tpu.memory_space<vmem>>, vector<16x128xf32>
    %cst_122 = arith.constant dense<0.000000e+00> : vector<1x128xf32>
    %244 = tpu.matmul %242, %243, %cst_122 {dimension_numbers = #tpu.dot_dimension_numbers<[1], [0], [0], [1], [0, 0, 1, 1], [], []>} : vector<1x16xf32>, vector<16x128xf32>, vector<1x128xf32> -> vector<1x128xf32>
    %245 = arith.addf %244, %7 : vector<1x128xf32>
    %246 = arith.mulf %245, %240 : vector<1x128xf32>
    %cst_123 = arith.constant dense<0.000000e+00> : vector<1xf32>
    %247 = vector.multi_reduction <add>, %246, %cst_123 [1] : vector<1x128xf32> to vector<1xf32>
    %248 = vector.shape_cast %247 : vector<1xf32> to vector<1x1xf32>
    %249 = vector.broadcast %9 : f32 to vector<1x1xf32>
    %250 = arith.mulf %249, %248 : vector<1x1xf32>
    %251 = vector.broadcast %10 : f32 to vector<1x1xf32>
    %252 = arith.addf %250, %251 : vector<1x1xf32>
    %c0_i32 = arith.constant 0 : i32
    %253 = vector.broadcast %c0_i32 : i32 to vector<1x128xi32>
    %254 = arith.cmpi eq, %12, %253 : vector<1x128xi32>
    %cst_124 = arith.constant 0.000000e+00 : f32
    %255 = vector.shape_cast %252 : vector<1x1xf32> to vector<1x1xf32>
    %256 = vector.broadcast %255 : vector<1x1xf32> to vector<1x128xf32>
    %257 = vector.broadcast %cst_124 : f32 to vector<1x128xf32>
    %258 = arith.select %254, %256, %257 : vector<1x128xi1>, vector<1x128xf32>
    %c1_i32_125 = arith.constant 1 : i32
    %259 = vector.broadcast %c1_i32_125 : i32 to vector<1x128xi32>
    %260 = arith.cmpi eq, %12, %259 : vector<1x128xi32>
    %cst_126 = arith.constant 0.000000e+00 : f32
    %261 = vector.shape_cast %35 : vector<1x1xf32> to vector<1x1xf32>
    %262 = vector.broadcast %261 : vector<1x1xf32> to vector<1x128xf32>
    %263 = vector.broadcast %cst_126 : f32 to vector<1x128xf32>
    %264 = arith.select %260, %262, %263 : vector<1x128xi1>, vector<1x128xf32>
    %265 = arith.addf %258, %264 : vector<1x128xf32>
    %266 = vector.shape_cast %265 : vector<1x128xf32> to vector<1x1x128xf32>
    %c0_127 = arith.constant 0 : index
    %c0_128 = arith.constant 0 : index
    %c0_129 = arith.constant 0 : index
    %267 = vector.load %arg17[%c0_127, %c0_128, %c0_129] : memref<1x1x128xf32, #tpu.memory_space<vmem>>, vector<1x1x128xf32>
    tpu.vector_store %arg17[%c0_127, %c0_128, %c0_129], %266 {strides = array<i32>} : memref<1x1x128xf32, #tpu.memory_space<vmem>>, vector<1x1x128xf32>,
    return
  }
  func.func @transform_0(%arg0: i32) -> (i32, i32, i32) {
    %c0_i32 = arith.constant 0 : i32
    %c0_i32_0 = arith.constant 0 : i32
    %c0_i32_1 = arith.constant 0 : i32
    return %arg0, %c0_i32, %c0_i32_0 : i32, i32, i32
  }
  func.func @transform_1(%arg0: i32) -> (i32, i32, i32) {
    %c0_i32 = arith.constant 0 : i32
    %c0_i32_0 = arith.constant 0 : i32
    %c0_i32_1 = arith.constant 0 : i32
    return %arg0, %c0_i32, %c0_i32_0 : i32, i32, i32
  }
  func.func @transform_2(%arg0: i32) -> (i32, i32, i32) {
    %c0_i32 = arith.constant 0 : i32
    %c0_i32_0 = arith.constant 0 : i32
    %c0_i32_1 = arith.constant 0 : i32
    return %arg0, %c0_i32, %c0_i32_0 : i32, i32, i32
  }
  func.func @transform_3(%arg0: i32) -> (i32, i32, i32) {
    %c0_i32 = arith.constant 0 : i32
    %c0_i32_0 = arith.constant 0 : i32
    %c0_i32_1 = arith.constant 0 : i32
    return %arg0, %c0_i32, %c0_i32_0 : i32, i32, i32
  }
  func.func @transform_4(%arg0: i32) -> (i32, i32) {
    %c0_i32 = arith.constant 0 : i32
    %c0_i32_0 = arith.constant 0 : i32
    %c0_i32_1 = arith.constant 0 : i32
    return %c0_i32, %c0_i32_0 : i32, i32
  }
  func.func @transform_5(%arg0: i32) -> (i32, i32) {
    %c0_i32 = arith.constant 0 : i32
    %c0_i32_0 = arith.constant 0 : i32
    %c0_i32_1 = arith.constant 0 : i32
    return %c0_i32, %c0_i32_0 : i32, i32
  }
  func.func @transform_6(%arg0: i32) -> (i32, i32) {
    %c0_i32 = arith.constant 0 : i32
    %c0_i32_0 = arith.constant 0 : i32
    %c0_i32_1 = arith.constant 0 : i32
    return %c0_i32, %c0_i32_0 : i32, i32
  }
  func.func @transform_7(%arg0: i32) -> (i32, i32, i32) {
    %c0_i32 = arith.constant 0 : i32
    %c0_i32_0 = arith.constant 0 : i32
    %c0_i32_1 = arith.constant 0 : i32
    %c0_i32_2 = arith.constant 0 : i32
    return %c0_i32, %c0_i32_0, %c0_i32_1 : i32, i32, i32
  }
  func.func @transform_8(%arg0: i32) -> (i32, i32, i32) {
    %c0_i32 = arith.constant 0 : i32
    %c0_i32_0 = arith.constant 0 : i32
    %c0_i32_1 = arith.constant 0 : i32
    %c0_i32_2 = arith.constant 0 : i32
    return %c0_i32, %c0_i32_0, %c0_i32_1 : i32, i32, i32
  }
  func.func @transform_9(%arg0: i32) -> (i32, i32) {
    %c0_i32 = arith.constant 0 : i32
    %c0_i32_0 = arith.constant 0 : i32
    %c0_i32_1 = arith.constant 0 : i32
    return %c0_i32, %c0_i32_0 : i32, i32
  }
  func.func @transform_10(%arg0: i32) -> (i32, i32) {
    %c0_i32 = arith.constant 0 : i32
    %c0_i32_0 = arith.constant 0 : i32
    %c0_i32_1 = arith.constant 0 : i32
    return %c0_i32, %c0_i32_0 : i32, i32
  }
  func.func @transform_11(%arg0: i32) -> (i32, i32) {
    %c0_i32 = arith.constant 0 : i32
    %c0_i32_0 = arith.constant 0 : i32
    %c0_i32_1 = arith.constant 0 : i32
    return %c0_i32, %c0_i32_0 : i32, i32
  }
  func.func @transform_12(%arg0: i32) -> (i32, i32) {
    %c0_i32 = arith.constant 0 : i32
    %c0_i32_0 = arith.constant 0 : i32
    %c0_i32_1 = arith.constant 0 : i32
    return %c0_i32, %c0_i32_0 : i32, i32
  }
  func.func @transform_13(%arg0: i32) -> (i32, i32) {
    %c0_i32 = arith.constant 0 : i32
    %c0_i32_0 = arith.constant 0 : i32
    %c0_i32_1 = arith.constant 0 : i32
    return %c0_i32, %c0_i32_0 : i32, i32
  }
  func.func @transform_14(%arg0: i32) -> (i32, i32) {
    %c0_i32 = arith.constant 0 : i32
    %c0_i32_0 = arith.constant 0 : i32
    %c0_i32_1 = arith.constant 0 : i32
    return %c0_i32, %c0_i32_0 : i32, i32
  }
  func.func @transform_15(%arg0: i32) -> i32 {
    %c0_i32 = arith.constant 0 : i32
    %c0_i32_0 = arith.constant 0 : i32
    return %c0_i32 : i32
  }
  func.func @transform_16(%arg0: i32) -> (i32, i32, i32) {
    %c0_i32 = arith.constant 0 : i32
    %c0_i32_0 = arith.constant 0 : i32
    %c0_i32_1 = arith.constant 0 : i32
    return %arg0, %c0_i32, %c0_i32_0 : i32, i32, i32
  }
}

</mosaic_0001>

<bundles_post_ra>
// kernel: tpu_custom_call.1
= control target key start
LH: loop header
LB: loop body
LE: loop exit
PB: predicated region body
PF: predicated region fallthrough
CT: control target
= control target key end

     0   :  { %s7252_s0 = inlined_call_operand.hbm [shape: f32[2,8,16], index: 0, kind: input, shape index: {}]   ;;  %s7253_s1 = inlined_call_operand.hbm [shape: f32[2,1,8], index: 1, kind: input, shape index: {}]   ;;  %s7254_s2 = inlined_call_operand.hbm [shape: f32[2,1,16], index: 2, kind: input, shape index: {}]   ;;  %s7255_s3 = inlined_call_operand.hbm [shape: f32[2,1,4], index: 3, kind: input, shape index: {}]   ;;  %s7256_s4 = inlined_call_operand.hbm [shape: f32[4,16], index: 4, kind: input, shape index: {}]   ;;  %s7257_s5 = inlined_call_operand.hbm [shape: f32[16,128], index: 5, kind: input, shape index: {}]   ;;  %s7258_s6 = inlined_call_operand.hbm [shape: f32[128,128], index: 6, kind: input, shape index: {}]   ;;  %s7259_s7 = inlined_call_operand.hbm [shape: f32[5,128,128], index: 7, kind: input, shape index: {}]   ;;  %s7260_s8 = inlined_call_operand.hbm [shape: f32[5,128,128], index: 8, kind: input, shape index: {}]   ;;  %s7261_s9 = inlined_call_operand.hbm [shape: f32[128,768], index: 9, kind: input, shape index: {}]   ;;  %s7262_s10 = inlined_call_operand.hbm [shape: f32[256,128], index: 10, kind: input, shape index: {}]   ;;  %s7263_s11 = inlined_call_operand.hbm [shape: f32[128,128], index: 11, kind: input, shape index: {}]   ;;  %s7264_s12 = inlined_call_operand.hbm [shape: f32[16,128], index: 12, kind: input, shape index: {}]   ;;  %s7265_s13 = inlined_call_operand.hbm [shape: f32[8,128], index: 13, kind: input, shape index: {}]   ;;  %s7266_s14 = inlined_call_operand.hbm [shape: f32[1,768], index: 14, kind: input, shape index: {}]   ;;  %s7267_s15 = inlined_call_operand.hbm [shape: f32[2], index: 15, kind: input, shape index: {}]   ;;  %s7268_s16 = inlined_call_operand.hbm [shape: f32[2,1,128], index: 16, kind: output, shape index: {}]  }
   0x1   :  { %7297 = sst [smem:[#allocation46_spill]] %s7252_s0 }
   0x2   :  { %7298 = sst [smem:[#allocation47_spill]] %s7253_s1 }
   0x3   :  { %7299 = sst [smem:[#allocation48_spill]] %s7254_s2 }
   0x4   :  { %7300 = sst [smem:[#allocation49_spill]] %s7255_s3 }
   0x5   :  { %7301 = sst [smem:[#allocation50_spill]] %s7256_s4 }
   0x6   :  { %7302 = sst [smem:[#allocation51_spill]] %s7257_s5 }
   0x7   :  { %7303 = sst [smem:[#allocation52_spill]] %s7259_s7 }
   0x8   :  { %7304 = sst [smem:[#allocation53_spill]] %s7261_s9 }
   0x9   :  { %7305 = sst [smem:[#allocation54_spill]] %s7263_s11 }
   0xa   :  { %7306 = sst [smem:[#allocation55_spill]] %s7265_s13 }
   0xb   :  { %7307 = sst [smem:[#allocation56_spill]] %s7267_s15 }
   0xc   :  { %7308 = sst [smem:[#allocation57_spill]] %s7268_s16 }
   0xd   :  { %21 = vsyncpa [#allocation3], 0 }
   0xe   :  { %23 = vsyncpa [#allocation3 + $0x1], 0 }
   0xf   :  { %24 = vsyncpa [#allocation7], 0 }
  0x10   :  { %26 = vsyncpa [#allocation7 + $0x1], 0 }
  0x11   :  { %27 = vsyncpa [#allocation10], 0 }
  0x12   :  { %29 = vsyncpa [#allocation10 + $0x1], 0 }
  0x13   :  { %30 = vsyncpa [#allocation13], 0 }
  0x14   :  { %31 = vsyncpa [#allocation16], 0 }
  0x15   :  { %32 = vsyncpa [#allocation19], 0 }
  0x16   :  { %33 = vsyncpa [#allocation22], 0 }
  0x17   :  { %34 = vsyncpa [#allocation25], 0 }
  0x18   :  { %35 = vsyncpa [#allocation5], 0 }
  0x19   :  { %36 = vsyncpa [#allocation4], 0 }
  0x1a   :  { %38 = vsyncpa [#allocation4 + $0x1], 0  ;;  %s6342_s21 = smov 0   ;;  %s6344_s22 = smov 0  }
  0x1b   :  { %s6346_s23 = smov 0   ;;  %s6348_s24 = smov 0  }
  0x1c LB: > { %7309 = sst [smem:[#allocation40_spill]] %s6217_s21  ;;  %s6231_s25 = smov [#allocation11]   ;;  %s6229_s24 = sphi %s6348_s24, %s7369_s24   ;;  %s6225_s23 = sphi %s6346_s23, %s7374_s23   ;;  %s6221_s22 = sphi %s6344_s22, %s7373_s22   ;;  %s6217_s21 = sphi %s6342_s21, %s7372_s21  }
  0x1d   : > { %7310 = sst [smem:[#allocation41_spill]] %s6225_s23  ;;  %s444_s26 = sshll.u32 %s6231_s25, 4  ;;  %s445_s26 = int_to_ptr.vmem [resolvable:$true] %s444_s26 }
  0x1e   : > { %s6363_s27 = sadd.s32 4294967295, %s6229_s24   ;;  %p3931_p0 = scmp.ge.s32.totalorder %s6229_s24, 1 }
  0x1f   : > { %p7273_p1 = scmp.eq.s32.totalorder %s6363_s27, 0  ;;  %p431_p2 = scmp.lt.s32.totalorder %s6229_s24, 3 }
  0x20   : > { %s6232_s29 = smov [#allocation12]   ;;  %s6233_s17 = smov [#allocation15]  }
  0x21   : > { %p6368_p3 = pnand %p3931_p0, %p431_p2  ;;  %s454_s30 = sshll.u32 %s6232_s29, 4  ;;  %s6375_s30 = int_to_ptr.vmem [resolvable:$true] %s454_s30 }
  0x22   : > { %s480_s18 = sshll.u32 %s6233_s17, 4  ;;  %s7314_s4 = sld [smem:[#allocation50_spill]]  ;;  %s6383_s18 = int_to_ptr.vmem [resolvable:$true] %s480_s18 }
  0x23   : > { %s7311_s28 = scalar_select %p6368_p3, 1, 0 }
  0x24   : > { %p5455_p5 = pneg %p6368_p3 }
  0x25   : > { %7312 = sst [smem:[#allocation42_spill]] %s7311_s28 }
  0x26   : > { %p6379_p6 = pnand %p5455_p5, %p7273_p1 }
  0x28   : > { %s7313_s0 = scalar_select %p6379_p6, 1, 0 }
  0x29   : > { %s5686_s25 = scalar_lea.hbm %s7314_s4, 64  ;;  %p6393_p8 = pneg %p6379_p6 }
  0x2a   : > { %p5687_p7 = scmp.ne.s32.totalorder %s7314_s4, %s5686_s25  ;;  %p5693_p11 = scmp.lt.u32.totalorder %s5686_s25, %s7314_s4 }
  0x2b   : > { %s7315_s29 = scalar_select %p6393_p8, 1, 0 }
  0x2c   : > { %p5689_p9 = pnand %p6393_p8, %p5687_p7 }
  0x2e   : > { %p5690_p10 = pneg %p5689_p9 }
  0x30   : > { %p5695_p12 = pnand %p5693_p11, %p5690_p10 }
  0x32   : > { %5698 = shalt.err (!%p5695_p12)
}
  0x33   : > { %s5699_s19 = scalar_lea.vmem %s445_s26, 64  ;;  %p5707_p5 = scmp.lt.s32.totalorder %s445_s26, %s445_s26 }
  0x34   : > { %p5700_p13 = scmp.ne.s32.totalorder %s445_s26, %s5699_s19  ;;  %p5708_p4 = scmp.lt.s32.totalorder %s5699_s19, %s5699_s19 }
  0x36   : > { %p5702_p0 = pnand %p5700_p13, %p6393_p8  ;;  %p5709_p1 = por %p5708_p4, %p5707_p5 }
  0x38   : > { %p5703_p2 = pneg %p5702_p0 }
  0x3a   : > { %p5710_p3 = pnand %p5709_p1, %p5703_p2 }
  0x3c   : > { %5713 = shalt.err (!%p5710_p3)
}
  0x3d   : > { %5458 = dma.hbm_to_vmem [thread:$0]  (!%p6379_p6), %s7314_s4, 64, %s445_s26, [#allocation10]  }
  0x3e   : > { %s7316_s5 = sld [smem:[#allocation51_spill]] }
  0x44   : > { %s5714_s25 = scalar_lea.hbm %s7316_s5, 256 }
  0x45   : > { %p5715_p7 = scmp.ne.s32.totalorder %s7316_s5, %s5714_s25  ;;  %p5721_p1 = scmp.lt.u32.totalorder %s5714_s25, %s7316_s5 }
  0x47   : > { %p5717_p9 = pnand %p5715_p7, %p6393_p8 }
  0x49   : > { %p5718_p4 = pneg %p5717_p9 }
  0x4b   : > { %p5723_p3 = pnand %p5721_p1, %p5718_p4 }
  0x4d   : > { %5726 = shalt.err (!%p5723_p3)
}
  0x4e   : > { %s5727_s26 = scalar_lea.vmem %s6375_s30, 256  ;;  %p5735_p13 = scmp.lt.s32.totalorder %s6375_s30, %s6375_s30 }
  0x4f   : > { %p5728_p10 = scmp.ne.s32.totalorder %s6375_s30, %s5727_s26  ;;  %p5736_p0 = scmp.lt.s32.totalorder %s5727_s26, %s5727_s26 }
  0x51   : > { %p5730_p11 = pnand %p5728_p10, %p6393_p8  ;;  %p5737_p2 = por %p5736_p0, %p5735_p13 }
  0x53   : > { %p5731_p12 = pneg %p5730_p11 }
  0x55   : > { %p5738_p5 = pnand %p5737_p2, %p5731_p12 }
  0x57   : > { %5741 = shalt.err (!%p5738_p5)
}
  0x58   : > { %s7277_s2 = smov 128   ;;  %s7279_s15 = smov 8  }
  0x59   : > { %5461 = dma.hbm_to_vmem [thread:$0]  (!%p6379_p6), %s7316_s5, 256, %s6375_s30, [#allocation13], %s7277_s2, %s7277_s2, %s7279_s15  }
  0x5a   : > { %s7317_s7 = sld [smem:[#allocation52_spill]] }
  0x60   : > { %s5742_s25 = scalar_lea.hbm %s7317_s7, 10240 }
  0x61   : > { %p5743_p7 = scmp.ne.s32.totalorder %s7317_s7, %s5742_s25  ;;  %p5749_p1 = scmp.lt.u32.totalorder %s5742_s25, %s7317_s7 }
  0x63   : > { %p5745_p9 = pnand %p5743_p7, %p6393_p8 }
  0x65   : > { %p5746_p4 = pneg %p5745_p9 }
  0x67   : > { %p5751_p3 = pnand %p5749_p1, %p5746_p4 }
  0x69   : > { %5754 = shalt.err (!%p5751_p3)
}
  0x6a   : > { %s5755_s30 = scalar_lea.vmem %s6383_s18, 10240  ;;  %p5763_p13 = scmp.lt.s32.totalorder %s6383_s18, %s6383_s18 }
  0x6b   : > { %p5756_p10 = scmp.ne.s32.totalorder %s6383_s18, %s5755_s30  ;;  %p5764_p0 = scmp.lt.s32.totalorder %s5755_s30, %s5755_s30 }
  0x6d   : > { %p5758_p11 = pnand %p5756_p10, %p6393_p8  ;;  %p5765_p2 = por %p5764_p0, %p5763_p13 }
  0x6f   : > { %p5759_p12 = pneg %p5758_p11 }
  0x71   : > { %p5766_p5 = pnand %p5765_p2, %p5759_p12 }
  0x73   : > { %5769 = shalt.err (!%p5766_p5)
}
  0x74   : > { %5467 = dma.hbm_to_vmem [thread:$0]  (!%p6379_p6), %s7317_s7, 10240, %s6383_s18, [#allocation16], %s7277_s2, %s7277_s2, %s7279_s15  }
  0x75   : > { %s6236_s28 = smov [#allocation18]   ;;  %s7318_s9 = sld [smem:[#allocation53_spill]] }
  0x76   : > { %s506_s3 = sshll.u32 %s6236_s28, 4  ;;  %s507_s3 = int_to_ptr.vmem [resolvable:$true] %s506_s3 }
  0x7b   : > { %s5770_s17 = scalar_lea.hbm %s7318_s9, 12288 }
  0x7c   : > { %p5771_p7 = scmp.ne.s32.totalorder %s7318_s9, %s5770_s17  ;;  %p5777_p1 = scmp.lt.u32.totalorder %s5770_s17, %s7318_s9 }
  0x7e   : > { %p5773_p9 = pnand %p5771_p7, %p6393_p8 }
  0x80   : > { %p5774_p4 = pneg %p5773_p9 }
  0x82   : > { %p5779_p3 = pnand %p5777_p1, %p5774_p4 }
  0x84   : > { %5782 = shalt.err (!%p5779_p3)
}
  0x85   : > { %s5783_s18 = scalar_lea.vmem %s507_s3, 12288  ;;  %p5791_p13 = scmp.lt.s32.totalorder %s507_s3, %s507_s3 }
  0x86   : > { %p5784_p10 = scmp.ne.s32.totalorder %s507_s3, %s5783_s18  ;;  %p5792_p0 = scmp.lt.s32.totalorder %s5783_s18, %s5783_s18 }
  0x88   : > { %p5786_p11 = pnand %p5784_p10, %p6393_p8  ;;  %p5793_p2 = por %p5792_p0, %p5791_p13 }
  0x8a   : > { %p5787_p12 = pneg %p5786_p11 }
  0x8c   : > { %p5794_p5 = pnand %p5793_p2, %p5787_p12 }
  0x8e   : > { %5797 = shalt.err (!%p5794_p5)
}
  0x8f   : > { %s6237_s4 = smov 768   ;;  %s6238_s16 = smov 48  }
  0x90   : > { %5473 = dma.hbm_to_vmem [thread:$0]  (!%p6379_p6), %s7318_s9, 12288, %s507_s3, [#allocation19], %s6237_s4, %s6237_s4, %s6238_s16  }
  0x91   : > { %s6239_s20 = smov [#allocation21]   ;;  %s6240_s17 = smov [#allocation24]  }
  0x92   : > { %s532_s25 = sshll.u32 %s6239_s20, 4  ;;  %s559_s19 = sshll.u32 %s6240_s17, 4  ;;  %s533_s25 = int_to_ptr.vmem [resolvable:$true] %s532_s25  ;;  %s6479_s19 = int_to_ptr.vmem [resolvable:$true] %s559_s19 }
  0x93   : > { %s7319_s11 = sld [smem:[#allocation54_spill]] }
  0x99   : > { %s5798_s18 = scalar_lea.hbm %s7319_s11, 2048 }
  0x9a   : > { %p5799_p7 = scmp.ne.s32.totalorder %s7319_s11, %s5798_s18  ;;  %p5805_p1 = scmp.lt.u32.totalorder %s5798_s18, %s7319_s11 }
  0x9c   : > { %p5801_p9 = pnand %p5799_p7, %p6393_p8 }
  0x9e   : > { %p5802_p4 = pneg %p5801_p9 }
  0xa0   : > { %p5807_p3 = pnand %p5805_p1, %p5802_p4 }
  0xa2   : > { %5810 = shalt.err (!%p5807_p3)
}
  0xa3   : > { %s5811_s4 = scalar_lea.vmem %s533_s25, 2048  ;;  %p5819_p13 = scmp.lt.s32.totalorder %s533_s25, %s533_s25 }
  0xa4   : > { %p5812_p10 = scmp.ne.s32.totalorder %s533_s25, %s5811_s4  ;;  %p5820_p0 = scmp.lt.s32.totalorder %s5811_s4, %s5811_s4 }
  0xa6   : > { %p5814_p11 = pnand %p5812_p10, %p6393_p8  ;;  %p5821_p2 = por %p5820_p0, %p5819_p13 }
  0xa8   : > { %p5815_p12 = pneg %p5814_p11 }
  0xaa   : > { %p5822_p5 = pnand %p5821_p2, %p5815_p12 }
  0xac   : > { %5825 = shalt.err (!%p5822_p5)
}
  0xad   : > { %s7320_s2 = smov 8   ;;  %s7321_s15 = smov 128  }
  0xae   : > { %5479 = dma.hbm_to_vmem [thread:$0]  (!%p6379_p6), %s7319_s11, 2048, %s533_s25, [#allocation22], %s7321_s15, %s7321_s15, %s7320_s2  }
  0xaf   : > { %s7322_s13 = sld [smem:[#allocation55_spill]] }
  0xb5   : > { %s5826_s26 = scalar_lea.hbm %s7322_s13, 128 }
  0xb6   : > { %p5827_p7 = scmp.ne.s32.totalorder %s7322_s13, %s5826_s26  ;;  %p5833_p1 = scmp.lt.u32.totalorder %s5826_s26, %s7322_s13 }
  0xb8   : > { %p5829_p9 = pnand %p5827_p7, %p6393_p8 }
  0xba   : > { %p5830_p4 = pneg %p5829_p9 }
  0xbc   : > { %p5835_p3 = pnand %p5833_p1, %p5830_p4 }
  0xbe   : > { %5838 = shalt.err (!%p5835_p3)
}
  0xbf   : > { %s5839_s25 = scalar_lea.vmem %s6479_s19, 128  ;;  %p5847_p13 = scmp.lt.s32.totalorder %s6479_s19, %s6479_s19 }
  0xc0   : > { %p5840_p10 = scmp.ne.s32.totalorder %s6479_s19, %s5839_s25  ;;  %p5848_p0 = scmp.lt.s32.totalorder %s5839_s25, %s5839_s25 }
  0xc2   : > { %p5842_p11 = pnand %p5840_p10, %p6393_p8  ;;  %p5849_p2 = por %p5848_p0, %p5847_p13 }
  0xc4   : > { %p5843_p12 = pneg %p5842_p11 }
  0xc6   : > { %p5850_p5 = pnand %p5849_p2, %p5843_p12 }
  0xc8   : > { %5853 = shalt.err (!%p5850_p5)
}
  0xc9   : > { %5485 = dma.hbm_to_vmem [thread:$0]  (!%p6379_p6), %s7322_s13, 128, %s6479_s19, [#allocation25]  }
  0xca   : > { %s3930_s28 = sadd.s32 4294967294, %s6229_s24   ;;  %s6527_s20 = sadd.s32 1, %s6229_s24  }
  0xcb   : > { %7323 = sst [smem:[#allocation43_spill]] %s6527_s20  ;;  %s48_s17 = ssub.s32 %s6229_s24, %s6527_s20 }
  0xcc   : > { %s51_s26 = sadd.s32 1, %s6225_s23  ;;  %p49_p7 = scmp.eq.s32.totalorder %s48_s17, 0 }
  0xcd   : > { %p58_p9 = scmp.ne.s32.totalorder %s6225_s23, %s6221_s22  ;;  %p59_p4 = scmp.eq.s32.totalorder %s6229_s24, 0 }
  0xce   : > { %p64_p1 = scmp.ne.s32.totalorder %s6221_s22, %s6217_s21  ;;  %p7325_p10 = scmp.eq.s32.totalorder %s6363_s27, 0 }
  0xcf   : > { %s6538_s30 = scalar_select %p49_p7, %s6225_s23, %s51_s26  }
  0xd0   : > { %p60_p3 = por %p59_p4, %p58_p9  ;;  %p6542_p11 = por %p7325_p10, %p64_p1 }
  0xd1   : > { %7324 = sst [smem:[#allocation44_spill]] %s6538_s30  ;;  %p418_p12 = scmp.eq.s32.totalorder %s6363_s27, 1 }
  0xd2   : > { %s7326_s18 = scalar_select %p6542_p11, 1, 0 }
  0xd3   : > { %p424_p13 = scmp.eq.s32.totalorder %s3930_s28, 1  ;;  %p5521_p0 = scmp.lt.s32.totalorder %s6229_s24, 2 }
  0xd4   : > { %s6549_s19 = sand.u32 1, %s6225_s23   ;;  %p6551_p2 = por %p418_p12, %p58_p9 }
  0xd5   : > { %p6555_p5 = por %p424_p13, %p64_p1  ;;  %p6559_p7 = pnand %p5521_p0, %p60_p3 }
  0xd6   : > { %s7327_s5 = scalar_select %p6551_p2, 1, 0 }
  0xd7   : > { %s7328_s3 = scalar_select %p6555_p5, 1, 0 }
  0xd8   : > { %s7330_s25 = scalar_select %p6559_p7, 1, 0 }
  0xd9   : > { %7329 = sst [smem:[#allocation45_spill]] %s7328_s3  ;;  %s7285_s4 = sand.u32 1, %s6229_s24  }
  0xda   : > { %s6565_s16 = sshll.u32 %s6229_s24, 4  ;;  %s7331_s1 = sld [smem:[#allocation47_spill]] }
  0xdb   : > { %s611_s7 = scalar_lea.vmem [#allocation6], %s6549_s19  ;;  %s6578_s11 = scalar_lea.sflag [#allocation7], %s7285_s4 }
  0xdc   : > { %s618_s9 = sshll.u32 %s611_s7, 4  ;;  %p6584_p4 = pneg %p6559_p7  ;;  %s6574_s9 = int_to_ptr.vmem [resolvable:$true] %s618_s9 }
  0xde   : > { %s7332_s30 = scalar_select %p6584_p4, 1, 0 }
  0xe0   : > { %s6571_s26 = scalar_lea.hbm %s7331_s1, %s6565_s16  ;;  %s5859_s7 = scalar_lea.hbm %s7331_s1, 32 }
  0xe1   : > { %s5854_s13 = scalar_lea.hbm %s6571_s26, 16  ;;  %p5860_p10 = scmp.lt.u32.totalorder %s6571_s26, %s7331_s1 }
  0xe2   : > { %p5855_p9 = scmp.ne.s32.totalorder %s6571_s26, %s5854_s13  ;;  %p5861_p12 = scmp.lt.u32.totalorder %s5859_s7, %s5854_s13 }
  0xe3   : > { %p5863_p0 = scmp.lt.u32.totalorder %s5854_s13, %s6571_s26 }
  0xe4   : > { %p5857_p1 = pnand %p6584_p4, %p5855_p9  ;;  %p5862_p13 = por %p5861_p12, %p5860_p10 }
  0xe6   : > { %p5858_p3 = pneg %p5857_p1  ;;  %p5864_p5 = por %p5863_p0, %p5862_p13 }
  0xe8   : > { %p5865_p2 = pnand %p5864_p5, %p5858_p3 }
  0xea   : > { %5868 = shalt.err (!%p5865_p2)
}
  0xeb   : > { %s5869_s4 = scalar_lea.vmem %s6574_s9, 16  ;;  %s6241_s28 = smov [#allocation6]  }
  0xec   : > { %p5870_p9 = scmp.ne.s32.totalorder %s6574_s9, %s5869_s4  ;;  %s5874_s17 = sshll.u32 %s6241_s28, 4  ;;  %s5875_s17 = int_to_ptr.vmem [resolvable:$false] %s5874_s17 }
  0xed   : > { %s5876_s23 = scalar_lea.vmem %s5875_s17, 32  ;;  %p5877_p6 = scmp.lt.s32.totalorder %s6574_s9, %s5875_s17 }
  0xee   : > { %p5872_p1 = pnand %p5870_p9, %p6584_p4  ;;  %p5878_p8 = scmp.lt.s32.totalorder %s5876_s23, %s5869_s4 }
  0xf0   : > { %p5873_p11 = pneg %p5872_p1  ;;  %p5879_p10 = por %p5878_p8, %p5877_p6 }
  0xf2   : > { %p5880_p12 = pnand %p5879_p10, %p5873_p11 }
  0xf4   : > { %5883 = shalt.err (!%p5880_p12)
}
  0xf5   : > { %5498 = dma.hbm_to_vmem [thread:$0]  (!%p6559_p7), %s6571_s26, 16, %s6574_s9, %s6578_s11  }
  0xf6   : > { %s6242_s13 = smov [#allocation14]   ;;  %s6243_s7 = smov [#allocation17]  }
  0xf7   : > { %s467_s20 = sshll.u32 %s6242_s13, 4  ;;  %s493_s1 = sshll.u32 %s6243_s7, 4  ;;  %s468_s20 = int_to_ptr.vmem [resolvable:$true] %s467_s20  ;;  %s6608_s1 = int_to_ptr.vmem [resolvable:$true] %s493_s1 }
  0xf8   : > { %s5884_s4 = scalar_lea.hbm %s7258_s6, 2048  ;;  %p7333_p8 = scmp.ne.s32.totalorder %s7315_s29, 0 }
  0xf9   : > { %p5885_p6 = scmp.ne.s32.totalorder %s7258_s6, %s5884_s4  ;;  %p5891_p5 = scmp.lt.u32.totalorder %s5884_s4, %s7258_s6 }
  0xfb   : > { %p5887_p11 = pnand %p5885_p6, %p7333_p8 }
  0xfd   : > { %p5888_p2 = pneg %p5887_p11 }
  0xff   : > { %p5893_p3 = pnand %p5891_p5, %p5888_p2 }
 0x101   : > { %5896 = shalt.err (!%p5893_p3)
}
 0x102   : > { %s5897_s26 = scalar_lea.vmem %s468_s20, 2048  ;;  %p5905_p1 = scmp.lt.s32.totalorder %s468_s20, %s468_s20 }
 0x103   : > { %p5898_p13 = scmp.ne.s32.totalorder %s468_s20, %s5897_s26  ;;  %p5906_p10 = scmp.lt.s32.totalorder %s5897_s26, %s5897_s26 }
 0x105   : > { %p5900_p0 = pnand %p5898_p13, %p7333_p8  ;;  %p5907_p12 = por %p5906_p10, %p5905_p1 }
 0x107   : > { %p5901_p9 = pneg %p5900_p0 }
 0x109   : > { %p5908_p7 = pnand %p5907_p12, %p5901_p9 }
 0x10b   : > { %5911 = shalt.err (!%p5908_p7)
}
 0x10c   : > { %p7334_p6 = scmp.ne.s32.totalorder %s7313_s0, 0  ;;  %s5912_s28 = scalar_lea.hbm %s7260_s8, 10240 }
 0x10d   : > { %p5913_p11 = scmp.ne.s32.totalorder %s7260_s8, %s5912_s28  ;;  %p5919_p5 = scmp.lt.u32.totalorder %s5912_s28, %s7260_s8 }
 0x10e   : > { %5464 = dma.hbm_to_vmem [thread:$0]  (!%p7334_p6), %s7258_s6, 2048, %s468_s20, [#allocation13], %s7321_s15, %s7321_s15, %s7320_s2  }
 0x10f   : > { %p5915_p7 = pnand %p5913_p11, %p7333_p8 }
 0x111   : > { %p5916_p2 = pneg %p5915_p7 }
 0x113   : > { %p5921_p3 = pnand %p5919_p5, %p5916_p2 }
 0x115   : > { %5924 = shalt.err (!%p5921_p3)
}
 0x116   : > { %s5925_s20 = scalar_lea.vmem %s6608_s1, 10240  ;;  %p5933_p1 = scmp.lt.s32.totalorder %s6608_s1, %s6608_s1 }
 0x117   : > { %p5926_p13 = scmp.ne.s32.totalorder %s6608_s1, %s5925_s20  ;;  %p5934_p10 = scmp.lt.s32.totalorder %s5925_s20, %s5925_s20 }
 0x119   : > { %p5928_p0 = pnand %p5926_p13, %p7333_p8  ;;  %p5935_p12 = por %p5934_p10, %p5933_p1 }
 0x11b   : > { %p5929_p9 = pneg %p5928_p0 }
 0x11d   : > { %p5936_p11 = pnand %p5935_p12, %p5929_p9 }
 0x11f   : > { %5939 = shalt.err (!%p5936_p11)
}
 0x120   : > { %5470 = dma.hbm_to_vmem [thread:$0]  (!%p7334_p6), %s7260_s8, 10240, %s6608_s1, [#allocation16], %s7321_s15, %s7321_s15, %s7320_s2  }
 0x121   : > { %s6244_s3 = smov [#allocation20]   ;;  %s6245_s7 = smov [#allocation23]  }
 0x122   : > { %s519_s13 = sshll.u32 %s6244_s3, 4  ;;  %s545_s28 = sshll.u32 %s6245_s7, 4  ;;  %s520_s13 = int_to_ptr.vmem [resolvable:$true] %s519_s13  ;;  %s6657_s28 = int_to_ptr.vmem [resolvable:$true] %s545_s28 }
 0x123   : > { %s5940_s23 = scalar_lea.hbm %s7262_s10, 4096 }
 0x124   : > { %p5941_p7 = scmp.ne.s32.totalorder %s7262_s10, %s5940_s23  ;;  %p5947_p3 = scmp.lt.u32.totalorder %s5940_s23, %s7262_s10 }
 0x126   : > { %p5943_p2 = pnand %p5941_p7, %p7333_p8 }
 0x128   : > { %p5944_p5 = pneg %p5943_p2 }
 0x12a   : > { %p5949_p13 = pnand %p5947_p3, %p5944_p5 }
 0x12c   : > { %5952 = shalt.err (!%p5949_p13)
}
 0x12d   : > { %s5953_s21 = scalar_lea.vmem %s520_s13, 4096  ;;  %p5961_p10 = scmp.lt.s32.totalorder %s520_s13, %s520_s13 }
 0x12e   : > { %p5954_p0 = scmp.ne.s32.totalorder %s520_s13, %s5953_s21  ;;  %p5962_p12 = scmp.lt.s32.totalorder %s5953_s21, %s5953_s21 }
 0x130   : > { %p5956_p9 = pnand %p5954_p0, %p7333_p8  ;;  %p5963_p11 = por %p5962_p12, %p5961_p10 }
 0x132   : > { %p5957_p1 = pneg %p5956_p9 }
 0x134   : > { %p5964_p4 = pnand %p5963_p11, %p5957_p1 }
 0x136   : > { %5967 = shalt.err (!%p5964_p4)
}
 0x137   : > { %5476 = dma.hbm_to_vmem [thread:$0]  (!%p7334_p6), %s7262_s10, 4096, %s520_s13, [#allocation19], %s7321_s15, %s7321_s15, %s7320_s2  }
 0x138   : > { %s5968_s23 = scalar_lea.hbm %s7264_s12, 256 }
 0x139   : > { %p5969_p7 = scmp.ne.s32.totalorder %s7264_s12, %s5968_s23  ;;  %p5975_p5 = scmp.lt.u32.totalorder %s5968_s23, %s7264_s12 }
 0x13b   : > { %p5971_p4 = pnand %p5969_p7, %p7333_p8 }
 0x13d   : > { %p5972_p2 = pneg %p5971_p4 }
 0x13f   : > { %p5977_p3 = pnand %p5975_p5, %p5972_p2 }
 0x141   : > { %5980 = shalt.err (!%p5977_p3)
}
 0x142   : > { %s5981_s13 = scalar_lea.vmem %s6657_s28, 256  ;;  %p5989_p1 = scmp.lt.s32.totalorder %s6657_s28, %s6657_s28 }
 0x143   : > { %p5982_p13 = scmp.ne.s32.totalorder %s6657_s28, %s5981_s13  ;;  %p5990_p10 = scmp.lt.s32.totalorder %s5981_s13, %s5981_s13 }
 0x145   : > { %p5984_p0 = pnand %p5982_p13, %p7333_p8  ;;  %p5991_p12 = por %p5990_p10, %p5989_p1 }
 0x147   : > { %p5985_p9 = pneg %p5984_p0 }
 0x149   : > { %p5992_p11 = pnand %p5991_p12, %p5985_p9 }
 0x14b   : > { %5995 = shalt.err (!%p5992_p11)
}
 0x14c   : > { %5482 = dma.hbm_to_vmem [thread:$0]  (!%p7334_p6), %s7264_s12, 256, %s6657_s28, [#allocation22], %s7321_s15, %s7321_s15, %s7320_s2  }
 0x14d   : > { %s6246_s7 = smov [#allocation26]   ;;  %s3945_s4 = sshll.u32 %s6549_s19, 3 }
 0x14e   : > { %s570_s17 = sshll.u32 %s6246_s7, 4  ;;  %s5996_s20 = scalar_lea.hbm %s7266_s14, 96  ;;  %s571_s17 = int_to_ptr.vmem [resolvable:$true] %s570_s17 }
 0x14f   : > { %p5997_p7 = scmp.ne.s32.totalorder %s7266_s14, %s5996_s20  ;;  %p6003_p5 = scmp.lt.u32.totalorder %s5996_s20, %s7266_s14 }
 0x151   : > { %p5999_p4 = pnand %p5997_p7, %p7333_p8 }
 0x153   : > { %p6000_p2 = pneg %p5999_p4 }
 0x155   : > { %p6005_p3 = pnand %p6003_p5, %p6000_p2 }
 0x157   : > { %6008 = shalt.err (!%p6005_p3)
}
 0x158   : > { %s6009_s2 = scalar_lea.vmem %s571_s17, 96  ;;  %p6017_p1 = scmp.lt.s32.totalorder %s571_s17, %s571_s17 }
 0x159   : > { %p6010_p13 = scmp.ne.s32.totalorder %s571_s17, %s6009_s2  ;;  %p6018_p10 = scmp.lt.s32.totalorder %s6009_s2, %s6009_s2 }
 0x15b   : > { %p6012_p0 = pnand %p6010_p13, %p7333_p8  ;;  %p6019_p12 = por %p6018_p10, %p6017_p1 }
 0x15d   : > { %p6013_p9 = pneg %p6012_p0 }
 0x15f   : > { %p6020_p11 = pnand %p6019_p12, %p6013_p9 }
 0x161   : > { %6023 = shalt.err (!%p6020_p11)
}
 0x162   : > { %5488 = dma.hbm_to_vmem [thread:$0]  (!%p7334_p6), %s7266_s14, 96, %s571_s17, [#allocation25]  }
 0x163   : > { %s7335_s23 = sld [smem:[#allocation56_spill]] }
 0x169   : > { %s7336_s9 = smov %s7335_s23  ;;  %s6024_s20 = scalar_lea.hbm %s7335_s23, 16 }
 0x16a   : > { %p6025_p7 = scmp.ne.s32.totalorder %s7336_s9, %s6024_s20  ;;  %p6031_p5 = scmp.lt.u32.totalorder %s6024_s20, %s7336_s9 }
 0x16c   : > { %p6027_p4 = pnand %p6025_p7, %p7333_p8 }
 0x16e   : > { %p6028_p2 = pneg %p6027_p4 }
 0x170   : > { %p6033_p3 = pnand %p6031_p5, %p6028_p2 }
 0x172   : > { %6036 = shalt.err (!%p6033_p3)
}
 0x173   : > { %s6247_s2 = smov [#allocation27]   ;;  %s3946_s29 = sshll.u32 %s6229_s24, 7 }
 0x174   : > { %5491 = dma.hbm_to_smem (!%p7334_p6), %s7336_s9, 16, %s6247_s2, [#allocation5]  }
 0x175   : > { %s7337_s7 = sld [smem:[#allocation46_spill]]  ;;  %s594_s0 = scalar_lea.vmem [#allocation2], %s3945_s4 }
 0x176   : > { %s601_s20 = sshll.u32 %s594_s0, 4  ;;  %s591_s26 = scalar_lea.sflag [#allocation3], %s6549_s19  ;;  %s602_s20 = int_to_ptr.vmem [resolvable:$true] %s601_s20 }
 0x177   : > { %p7338_p13 = scmp.ne.s32.totalorder %s7332_s30, 0 }
 0x17b   : > { %s6745_s23 = scalar_lea.hbm %s7337_s7, %s3946_s29  ;;  %s6042_s2 = scalar_lea.hbm %s7337_s7, 256 }
 0x17c   : > { %s6037_s1 = scalar_lea.hbm %s6745_s23, 128  ;;  %p6043_p9 = scmp.lt.u32.totalorder %s6745_s23, %s7337_s7 }
 0x17d   : > { %p6038_p8 = scmp.ne.s32.totalorder %s6745_s23, %s6037_s1  ;;  %p6044_p1 = scmp.lt.u32.totalorder %s6042_s2, %s6037_s1 }
 0x17e   : > { %p6046_p12 = scmp.lt.u32.totalorder %s6037_s1, %s6745_s23 }
 0x17f   : > { %p6040_p0 = pnand %p6038_p8, %p7338_p13  ;;  %p6045_p10 = por %p6044_p1, %p6043_p9 }
 0x181   : > { %p6041_p6 = pneg %p6040_p0  ;;  %p6047_p11 = por %p6046_p12, %p6045_p10 }
 0x183   : > { %p6048_p7 = pnand %p6047_p11, %p6041_p6 }
 0x185   : > { %6051 = shalt.err (!%p6048_p7)
}
 0x186   : > { %s6052_s4 = scalar_lea.vmem %s602_s20, 128  ;;  %s6248_s29 = smov [#allocation2]  }
 0x187   : > { %p6053_p4 = scmp.ne.s32.totalorder %s602_s20, %s6052_s4  ;;  %s6057_s28 = sshll.u32 %s6248_s29, 4  ;;  %s6058_s28 = int_to_ptr.vmem [resolvable:$false] %s6057_s28 }
 0x188   : > { %s6059_s3 = scalar_lea.vmem %s6058_s28, 256  ;;  %p6060_p3 = scmp.lt.s32.totalorder %s602_s20, %s6058_s28 }
 0x189   : > { %p6055_p2 = pnand %p6053_p4, %p7338_p13  ;;  %p6061_p8 = scmp.lt.s32.totalorder %s6059_s3, %s6052_s4 }
 0x18b   : > { %p6056_p5 = pneg %p6055_p2  ;;  %p6062_p0 = por %p6061_p8, %p6060_p3 }
 0x18d   : > { %p6063_p1 = pnand %p6062_p0, %p6056_p5 }
 0x18f   : > { %6066 = shalt.err (!%p6063_p1)
}
 0x190   : > { %p7339_p9 = scmp.ne.s32.totalorder %s7330_s25, 0  ;;  %s7340_s13 = sld [smem:[#allocation48_spill]] }
 0x191   : > { %s628_s2 = scalar_lea.vmem [#allocation8], %s6549_s19 }
 0x192   : > { %5495 = dma.hbm_to_vmem [thread:$0]  (!%p7339_p9), %s6745_s23, 128, %s602_s20, %s591_s26  }
 0x193   : > { %s635_s17 = sshll.u32 %s628_s2, 4  ;;  %s636_s17 = int_to_ptr.vmem [resolvable:$true] %s635_s17 }
 0x196   : > { %s6771_s21 = scalar_lea.hbm %s7340_s13, %s6565_s16  ;;  %s6072_s23 = scalar_lea.hbm %s7340_s13, 32 }
 0x197   : > { %s6067_s15 = scalar_lea.hbm %s6771_s21, 16  ;;  %p6073_p11 = scmp.lt.u32.totalorder %s6771_s21, %s7340_s13 }
 0x198   : > { %p6068_p6 = scmp.ne.s32.totalorder %s6771_s21, %s6067_s15  ;;  %p6074_p7 = scmp.lt.u32.totalorder %s6072_s23, %s6067_s15 }
 0x199   : > { %p6076_p2 = scmp.lt.u32.totalorder %s6067_s15, %s6771_s21 }
 0x19a   : > { %p6070_p10 = pnand %p6068_p6, %p7338_p13  ;;  %p6075_p4 = por %p6074_p7, %p6073_p11 }
 0x19c   : > { %p6071_p12 = pneg %p6070_p10  ;;  %p6077_p5 = por %p6076_p2, %p6075_p4 }
 0x19e   : > { %p6078_p3 = pnand %p6077_p5, %p6071_p12 }
 0x1a0   : > { %6081 = shalt.err (!%p6078_p3)
}
 0x1a1   : > { %s6082_s28 = scalar_lea.vmem %s636_s17, 16  ;;  %s6249_s3 = smov [#allocation8]  }
 0x1a2   : > { %p6083_p8 = scmp.ne.s32.totalorder %s636_s17, %s6082_s28  ;;  %s6087_s0 = sshll.u32 %s6249_s3, 4  ;;  %s6088_s0 = int_to_ptr.vmem [resolvable:$false] %s6087_s0 }
 0x1a3   : > { %s6089_s1 = scalar_lea.vmem %s6088_s0, 32  ;;  %p6090_p6 = scmp.lt.s32.totalorder %s636_s17, %s6088_s0 }
 0x1a4   : > { %p6085_p0 = pnand %p6083_p8, %p7338_p13  ;;  %p6091_p10 = scmp.lt.s32.totalorder %s6089_s1, %s6082_s28 }
 0x1a6   : > { %p6086_p1 = pneg %p6085_p0  ;;  %p6092_p9 = por %p6091_p10, %p6090_p6 }
 0x1a8   : > { %p6093_p7 = pnand %p6092_p9, %p6086_p1 }
 0x1aa   : > { %6096 = shalt.err (!%p6093_p7)
}
 0x1ab   : > { %p7341_p11 = scmp.ne.s32.totalorder %s7330_s25, 0  ;;  %s7342_s4 = sld [smem:[#allocation49_spill]] }
 0x1ac   : > { %s645_s23 = scalar_lea.vmem [#allocation9], %s6549_s19  ;;  %s7343_s26 = sand.u32 1, %s6229_s24  }
 0x1ad   : > { %5501 = dma.hbm_to_vmem [thread:$0]  (!%p7341_p11), %s6771_s21, 16, %s636_s17, %s6578_s11  }
 0x1ae   : > { %s652_s20 = sshll.u32 %s645_s23, 4  ;;  %s643_s28 = scalar_lea.sflag [#allocation10], %s7343_s26  ;;  %s653_s20 = int_to_ptr.vmem [resolvable:$true] %s652_s20 }
 0x1b1   : > { %s6796_s29 = scalar_lea.hbm %s7342_s4, %s6565_s16  ;;  %s6102_s17 = scalar_lea.hbm %s7342_s4, 32 }
 0x1b2   : > { %s6097_s3 = scalar_lea.hbm %s6796_s29, 16  ;;  %p6103_p2 = scmp.lt.u32.totalorder %s6796_s29, %s7342_s4 }
 0x1b3   : > { %p6098_p9 = scmp.ne.s32.totalorder %s6796_s29, %s6097_s3  ;;  %p6104_p5 = scmp.lt.u32.totalorder %s6102_s17, %s6097_s3 }
 0x1b4   : > { %p6106_p8 = scmp.lt.u32.totalorder %s6097_s3, %s6796_s29 }
 0x1b5   : > { %p6100_p12 = pnand %p6098_p9, %p7338_p13  ;;  %p6105_p3 = por %p6104_p5, %p6103_p2 }
 0x1b7   : > { %p6101_p4 = pneg %p6100_p12  ;;  %p6107_p0 = por %p6106_p8, %p6105_p3 }
 0x1b9   : > { %p6108_p1 = pnand %p6107_p0, %p6101_p4 }
 0x1bb   : > { %6111 = shalt.err (!%p6108_p1)
}
 0x1bc   : > { %s6112_s19 = scalar_lea.vmem %s653_s20, 16  ;;  %s6250_s1 = smov [#allocation9]  }
 0x1bd   : > { %p6113_p6 = scmp.ne.s32.totalorder %s653_s20, %s6112_s19  ;;  %s6117_s2 = sshll.u32 %s6250_s1, 4  ;;  %s6118_s2 = int_to_ptr.vmem [resolvable:$false] %s6117_s2 }
 0x1be   : > { %s6119_s15 = scalar_lea.vmem %s6118_s2, 32  ;;  %p6120_p9 = scmp.lt.s32.totalorder %s653_s20, %s6118_s2 }
 0x1bf   : > { %p6115_p10 = pnand %p6113_p6, %p7338_p13  ;;  %p6121_p12 = scmp.lt.s32.totalorder %s6119_s15, %s6112_s19 }
 0x1c1   : > { %p6116_p7 = pneg %p6115_p10  ;;  %p6122_p11 = por %p6121_p12, %p6120_p9 }
 0x1c3   : > { %p6123_p2 = pnand %p6122_p11, %p6116_p7 }
 0x1c5   : > { %6126 = shalt.err (!%p6123_p2)
}
 0x1c6   : > { %p7344_p5 = scmp.ne.s32.totalorder %s7330_s25, 0  ;;  %s7345_s23 = sld [smem:[#allocation42_spill]] }
 0x1c8   : > { %5504 = dma.hbm_to_vmem [thread:$0]  (!%p7344_p5), %s6796_s29, 16, %s653_s20, %s643_s28  }
 0x1cc   : > { %p7346_p4 = scmp.ne.s32.totalorder %s7345_s23, 0 }
 0x1cd   : > { %s6821_s30 = sand.u32 (!%p7346_p4), 1, %s6221_s22   ;;  %p7347_p13 = scmp.ne.s32.totalorder (!%p7346_p4), %s7326_s18, 0 }
 0x1ce   : > { %661 = sbr.rel (%p7346_p4) target bundleno = 3857 (0xf11), region = 84  ;;  %s3951_s26 = sshll.u32 (!%p7346_p4), %s6821_s30, 3 }
 0x1cf   : > { %s664_s3 = scalar_lea.sflag (!%p7346_p4), [#allocation3], %s6821_s30  ;;  %s6825_s11 = scalar_lea.vmem (!%p7346_p4), [#allocation2], %s3951_s26 }
 0x1d5   : > { %6172 = dma.done.wait (%p7347_p13), %s664_s3, 128  }
 0x1d6   : > { %6174 = vsyncadd (%p7347_p13), %s664_s3, 4294967168  ;;  %s672_s25 = sand.u32 1, %s6363_s27   ;;  %s675_s20 = scalar_lea.vmem [#allocation6], %s6821_s30 }
 0x1d7   : > { %s673_s29 = scalar_lea.sflag [#allocation7], %s672_s25 }
 0x1d8   : > { %6176 = dma.done.wait (%p7347_p13), %s673_s29, 32  }
 0x1d9   : > { %6178 = vsyncadd (%p7347_p13), %s673_s29, 4294967264  ;;  %s683_s28 = scalar_lea.vmem [#allocation8], %s6821_s30  ;;  %s689_s21 = scalar_lea.sflag [#allocation10], %s672_s25 }
 0x1da   : > { %s691_s17 = scalar_lea.vmem [#allocation9], %s6821_s30 }
 0x1db   : > { %6180 = dma.done.wait (%p7347_p13), %s689_s21, 16  }
 0x1dc   : > { %6182 = vsyncadd (%p7347_p13), %s689_s21, 4294967280  ;;  %p7348_p11 = scmp.eq.s32.totalorder %s6363_s27, 0 }
 0x1de   : > { %6184 = dma.done.wait (%p7348_p11), [#allocation10], 64   ;;  %p7349_p3 = pmov %p7348_p11 }
 0x1e0   : > { %6186 = vsyncadd (%p7349_p3), [#allocation10], 4294967232  ;;  %p7350_p8 = pmov %p7349_p3 }
 0x1e1   : > { %p7351_p0 = pmov %p7349_p3 }
 0x1e2   : > { %6188 = dma.done.wait (%p7350_p8), [#allocation13], 2304  }
 0x1e3   : > { %6190 = vsyncadd (%p7351_p0), [#allocation13], 4294964992  ;;  %p7352_p1 = pmov %p7351_p0 }
 0x1e4   : > { %p7353_p6 = pmov %p7351_p0 }
 0x1e5   : > { %6192 = dma.done.wait (%p7352_p1), [#allocation16], 20480  }
 0x1e6   : > { %6194 = vsyncadd (%p7353_p6), [#allocation16], 4294946816  ;;  %p7354_p10 = pmov %p7351_p0 }
 0x1e7   : > { %p7355_p7 = pmov %p7351_p0 }
 0x1e8   : > { %6196 = dma.done.wait (%p7354_p10), [#allocation19], 16384  }
 0x1e9   : > { %6198 = vsyncadd (%p7355_p7), [#allocation19], 4294950912  ;;  %p7356_p9 = pmov %p7351_p0 }
 0x1ea   : > { %p7357_p12 = pmov %p7351_p0 }
 0x1eb   : > { %6200 = dma.done.wait (%p7356_p9), [#allocation22], 2304  }
 0x1ec   : > { %6202 = vsyncadd (%p7357_p12), [#allocation22], 4294964992  ;;  %p7358_p2 = pmov %p7351_p0 }
 0x1ed   : > { %p7359_p5 = pmov %p7351_p0 }
 0x1ee   : > { %6204 = dma.done.wait (%p7358_p2), [#allocation25], 224  }
 0x1ef   : > { %6206 = vsyncadd (%p7359_p5), [#allocation25], 4294967072  ;;  %p7360_p4 = pmov %p7351_p0 }
 0x1f0   : > { %p7361_p13 = pmov %p7351_p0 }
 0x1f1   : > { %6208 = dma.done.wait (%p7360_p4), [#allocation5], 16  }
 0x1f2   : > { %6210 = vsyncadd (%p7361_p13), [#allocation5], 4294967280 }
 0x1f3   : > { %744 = sfence }
 0x1f4   : > { %v908_v0 = vld [vmem:[#allocation12] sm:$0xff]  ;;  %v909_v1 = vld [vmem:[#allocation12 + $0x8] sm:$0xff]  ;;  %v6251_v2 = vmov 0.0|0.0   ;;  %vm6252_vm0 = vmmov 0   ;;  %v6253_v4 = vmov 0.0   ;;  %v990_v6 = vld [vmem:[#allocation14] sm:$0xff]  ;;  %v804_v50 = vlaneseq }
 0x1f5   : > { %4909 = vmatprep.subr.bf16.mxu1 %v6251_v2  ;;  %v4910_v3 = vpack.c.bf16 %v909_v1, %v908_v0  ;;  %4347 = vmatprep.mubr.msk.f32.mxu1 %vm6252_vm0, %v6253_v4  ;;  %v812_v5 = vld [vmem:[#allocation11] sm:$0xf]  ;;  %vm813_vm1 = vcmask 130048   ;;  %v808_v8 = vld [vmem:[%s6825_s11] sm:$0xff]  ;;  %vm2568_vm10 = vcmask 64512   ;;  %vm890_vm11 = vcmask 24576  }
 0x1f6   : > { %4338 = vmatprep.subr.mxu0 %v6253_v4  ;;  %4340 = vmatprep.mubr.msk.f32.mxu0 %vm6252_vm0, %v6253_v4  ;;  %v991_v7 = vld [vmem:[#allocation14 + $0x8] sm:$0xff]  ;;  %v810_v9 = vld [vmem:[%s683_s28] sm:$0x1]  ;;  %v993_v12 = vld [vmem:[#allocation14 + $0x18] sm:$0xff]  ;;  %v6904_v51 = vshrl.u32 %v804_v50, 7  ;;  %vm3511_vm12 = vcmask 1043456  }
 0x1f7   : > { %4911 = vmatpush3.bf16.msra.mxu1 %v4910_v3  ;;  %4339 = vmatpush3.xpose.msk.msra.mxu0 %vm813_vm1, %v812_v5  ;;  %v4913_v10 = vpack.c.bf16 %v991_v7, %v990_v6  ;;  %v992_v11 = vld [vmem:[#allocation14 + $0x10] sm:$0xff]  ;;  %v994_v14 = vld [vmem:[#allocation14 + $0x20] sm:$0xff]  ;;  %v995_v15 = vld [vmem:[#allocation14 + $0x28] sm:$0xff]  ;;  %vm3507_vm13 = vcmask 31744   ;;  %vm3426_vm14 = vcmask 57344   ;;  %vm3664_vm15 = vcmask 1040384  }
 0x1f8   : > { %4912 = vmatprep.subr.bf16.mxu0 %v6251_v2  ;;  %4936 = vmatprep.subr.bf16.mxu1 %v6251_v2  ;;  %v4916_v13 = vpack.c.bf16 %v993_v12, %v992_v11  ;;  %v4919_v16 = vpack.c.bf16 %v995_v15, %v994_v14  ;;  %v996_v17 = vld [vmem:[#allocation14 + $0x30] sm:$0xff]  ;;  %v997_v18 = vld [vmem:[#allocation14 + $0x38] sm:$0xff]  ;;  %v998_v20 = vld [vmem:[#allocation14 + $0x40] sm:$0xff]  ;;  %v6907_v52 = vsub.s32 0, %v6904_v51  ;;  %v1008_v6 = vsub.s32 1, %v6904_v51  ;;  %s802_s18 = sld [smem:[#allocation27]] }
 0x1f9   : > { %v4922_v19 = vpack.c.bf16 %v997_v18, %v996_v17  ;;  %v999_v21 = vld [vmem:[#allocation14 + $0x48] sm:$0xff]  ;;  %v1000_v23 = vld [vmem:[#allocation14 + $0x50] sm:$0xff]  ;;  %v1001_v24 = vld [vmem:[#allocation14 + $0x58] sm:$0xff]  ;;  %vm1089_vm4 = vcmp.ge.s32.totalorder %v6904_v51, 2  ;;  %vm1183_vm5 = vcmp.ge.s32.totalorder %v6904_v51, 1  ;;  %vm1367_vm6 = vcmp.lt.s32.totalorder %v6904_v51, 7 }
 0x1fa   : > { %4348 = vmatmul.mubr.msk.f32.vlgmr.msra.gmra.mrb[0].mxu1 %vm813_vm1, %v808_v8  ;;  %4341 = vmatmul.mubr.msk.f32.vlgmr.msra.gmra.mrb[0].mxu0 %vm813_vm1, %v810_v9  ;;  %v4925_v22 = vpack.c.bf16 %v999_v21, %v998_v20  ;;  %v4928_v25 = vpack.c.bf16 %v1001_v24, %v1000_v23  ;;  %v1002_v26 = vld [vmem:[#allocation14 + $0x60] sm:$0xff]  ;;  %v1003_v27 = vld [vmem:[#allocation14 + $0x68] sm:$0xff]  ;;  %v1004_v29 = vld [vmem:[#allocation14 + $0x70] sm:$0xff]  ;;  %vm1462_vm7 = vcmp.lt.s32.totalorder %v6904_v51, 6  ;;  %s3964_s16 = sld [smem:[#allocation27 + $0x1]]  ;;  %s4016_s0 = sshll.u32 %s6363_s27, 4 }
 0x1fb   : > { %4914 = vmatpush3.bf16.msra.mxu0 %v4913_v10  ;;  %4382 = vmatprep.mubr.msk.f32.mxu0 %vm6252_vm0, %v6253_v4  ;;  %v4931_v28 = vpack.c.bf16 %v1003_v27, %v1002_v26  ;;  %v1005_v30 = vld [vmem:[#allocation14 + $0x78] sm:$0xff]  ;;  %v1095_v32 = vld [vmem:[#allocation15] sm:$0xff]  ;;  %v1096_v33 = vld [vmem:[#allocation15 + $0x8] sm:$0xff]  ;;  %s799_s19 = scalar_lea.vmem [#allocation28], %s6821_s30  ;;  %s7362_s23 = sld [smem:[#allocation57_spill]] }
 0x1fc   : > { %4915 = vmatprep.subr.bf16.mxu0 %v6251_v2  ;;  %4417 = vmatprep.mubr.msk.f32.mxu1 %vm6252_vm0, %v6253_v4  ;;  %v4934_v31 = vpack.c.bf16 %v1005_v30, %v1004_v29  ;;  %v1097_v34 = vld [vmem:[#allocation15 + $0x10] sm:$0xff]  ;;  %v4937_v35 = vpack.c.bf16 %v1096_v33, %v1095_v32  ;;  %v1098_v36 = vld [vmem:[#allocation15 + $0x18] sm:$0xff]  ;;  %v1099_v38 = vld [vmem:[#allocation15 + $0x20] sm:$0xff]  ;;  %s3691_s1 = sshll.u32 %s799_s19, 4  ;;  %s3679_s11 = scalar_lea.sflag [#allocation4], %s6821_s30  ;;  %s7210_s1 = int_to_ptr.vmem [resolvable:$true] %s3691_s1 }
 0x1fd   : > { %v4940_v37 = vpack.c.bf16 %v1098_v36, %v1097_v34  ;;  %v1100_v39 = vld [vmem:[#allocation15 + $0x28] sm:$0xff]  ;;  %v1101_v41 = vld [vmem:[#allocation15 + $0x30] sm:$0xff]  ;;  %v1102_v42 = vld [vmem:[#allocation15 + $0x38] sm:$0xff]  ;;  %s6127_s25 = scalar_lea.vmem %s7210_s1, 16  ;;  %p7364_p3 = scmp.ne.s32.totalorder %s7327_s5, 0 }
 0x1fe   : > { %4938 = vmatpush3.bf16.msra.mxu1 %v4937_v35  ;;  %v4943_v40 = vpack.c.bf16 %v1100_v39, %v1099_v38  ;;  %v4946_v43 = vpack.c.bf16 %v1102_v42, %v1101_v41  ;;  %v1103_v44 = vld [vmem:[#allocation15 + $0x40] sm:$0xff]  ;;  %v1104_v45 = vld [vmem:[#allocation15 + $0x48] sm:$0xff]  ;;  %v1105_v47 = vld [vmem:[#allocation15 + $0x50] sm:$0xff]  ;;  %p6128_p11 = scmp.ne.s32.totalorder %s7210_s1, %s6127_s25  ;;  %s6256_s27 = smov [#allocation28]  }
 0x1ff   : > { %4917 = vmatpush3.bf16.msra.mxu0 %v4916_v13  ;;  %4939 = vmatprep.subr.bf16.mxu1 %v6251_v2  ;;  %v4949_v46 = vpack.c.bf16 %v1104_v45, %v1103_v44  ;;  %v1106_v48 = vld [vmem:[#allocation15 + $0x58] sm:$0xff]  ;;  %v6909_v53 = vld [vmem:[#allocation24] sm:$0xff]  ;;  %v1107_v62 = vld [vmem:[#allocation15 + $0x60] sm:$0xff]  ;;  %s6131_s29 = sshll.u32 %s6256_s27, 4  ;;  %s6132_s29 = int_to_ptr.vmem [resolvable:$false] %s6131_s29 }
 0x200   : > { %4918 = vmatprep.subr.bf16.mxu0 %v6251_v2  ;;  %v4952_v49 = vpack.c.bf16 %v1106_v48, %v1105_v47  ;;  %v913_v54 = vrot.slane %v6909_v53, %v6907_v52  ;;  %v1108_v63 = vld [vmem:[#allocation15 + $0x68] sm:$0xff]  ;;  %v1109_v1 = vld [vmem:[#allocation15 + $0x70] sm:$0xff]  ;;  %v1110_v3 = vld [vmem:[#allocation15 + $0x78] sm:$0xff]  ;;  %v1009_v7 = vrot.slane %v6909_v53, %v1008_v6  ;;  %p6129_p8 = pnand %p6128_p11, %p7364_p3  ;;  %p6134_p1 = scmp.lt.s32.totalorder %s7210_s1, %s6132_s29 }
 0x201   : > { %v4955_v0 = vpack.c.bf16 %v1108_v63, %v1107_v62  ;;  %v4958_v5 = vpack.c.bf16 %v1110_v3, %v1109_v1  ;;  %v1190_v11 = vld [vmem:[#allocation15 + $0x80] sm:$0xff]  ;;  %v1191_v12 = vld [vmem:[#allocation15 + $0x88] sm:$0xff]  ;;  %v1192_v17 = vld [vmem:[#allocation15 + $0x90] sm:$0xff]  ;;  %s7363_s26 = smov %s7362_s23  ;;  %s7208_s3 = scalar_lea.hbm %s7362_s23, %s4016_s0 }
 0x202   : > { %4941 = vmatpush3.bf16.msra.mxu1 %v4940_v37  ;;  %v4961_v15 = vpack.c.bf16 %v1191_v12, %v1190_v11  ;;  %v1193_v18 = vld [vmem:[#allocation15 + $0x98] sm:$0xff]  ;;  %v1567_v20 = vld [vmem:[#allocation17 + $0x8] sm:$0xff]  ;;  %v1568_v21 = vld [vmem:[#allocation17 + $0x10] sm:$0xff]  ;;  %p6130_p0 = pneg %p6129_p8 }
 0x203   : > { %4920 = vmatpush3.bf16.msra.mxu0 %v4919_v16  ;;  %4942 = vmatprep.subr.bf16.mxu1 %v6251_v2  ;;  %v1569_v24 = vld [vmem:[#allocation17 + $0x18] sm:$0xff]  ;;  %v1195_v26 = vld [vmem:[#allocation15 + $0xa8] sm:$0xff]  ;;  %v1572_v34 = vld [vmem:[#allocation17 + $0x30] sm:$0xff] }
 0x204   : > { %4921 = vmatprep.subr.bf16.mxu0 %v6251_v2  ;;  %v5060_v27 = vpack.c.bf16 %v1569_v24, %v1568_v21  ;;  %v1571_v29 = vld [vmem:[#allocation17 + $0x28] sm:$0xff]  ;;  %v1197_v32 = vld [vmem:[#allocation15 + $0xb8] sm:$0xff]  ;;  %v1198_v37 = vld [vmem:[#allocation15 + $0xc0] sm:$0xff] }
 0x205   : > { %v1573_v35 = vld [vmem:[#allocation17 + $0x38] sm:$0xff]  ;;  %v1199_v38 = vld [vmem:[#allocation15 + $0xc8] sm:$0xff]  ;;  %v1280_v1 = vld [vmem:[#allocation15 + $0x110] sm:$0xff] }
 0x206   : > { %4944 = vmatpush3.bf16.msra.mxu1 %v4943_v40  ;;  %v5066_v39 = vpack.c.bf16 %v1573_v35, %v1572_v34  ;;  %v1574_v40 = vld [vmem:[#allocation17 + $0x40] sm:$0xff]  ;;  %v1575_v41 = vld [vmem:[#allocation17 + $0x48] sm:$0xff]  ;;  %v4973_v42 = vpack.c.bf16 %v1199_v38, %v1198_v37  ;;  %v1201_v44 = vld [vmem:[#allocation15 + $0xd8] sm:$0xff] }
 0x207   : > { %4923 = vmatpush3.bf16.msra.mxu0 %v4922_v19  ;;  %4945 = vmatprep.subr.bf16.mxu1 %v6251_v2  ;;  %v1566_v19 = vld [vmem:[#allocation17] sm:$0xff]  ;;  %v5069_v45 = vpack.c.bf16 %v1575_v41, %v1574_v40  ;;  %v1577_v47 = vld [vmem:[#allocation17 + $0x58] sm:$0xff]  ;;  %v1279_v62 = vld [vmem:[#allocation15 + $0x108] sm:$0xff] }
 0x208   : > { %4924 = vmatprep.subr.bf16.mxu0 %v6251_v2  ;;  %v5057_v23 = vpack.c.bf16 %v1567_v20, %v1566_v19  ;;  %v1281_v3 = vld [vmem:[#allocation15 + $0x118] sm:$0xff]  ;;  %v1290_v20 = vld [vmem:[#allocation15 + $0x160] sm:$0xff]  ;;  %v1291_v21 = vld [vmem:[#allocation15 + $0x168] sm:$0xff] }
 0x209   : > { %v1285_v11 = vld [vmem:[#allocation15 + $0x138] sm:$0xff]  ;;  %v1379_v35 = vld [vmem:[#allocation15 + $0x1b0] sm:$0xff]  ;;  %v1381_v38 = vld [vmem:[#allocation15 + $0x1c0] sm:$0xff] }
 0x20a   : > { %4947 = vmatpush3.bf16.msra.mxu1 %v4946_v43  ;;  %v1200_v43 = vld [vmem:[#allocation15 + $0xd0] sm:$0xff]  ;;  %v1293_v24 = vld [vmem:[#allocation15 + $0x178] sm:$0xff] }
 0x20b   : > { %4926 = vmatpush3.bf16.msra.mxu0 %v4925_v22  ;;  %4948 = vmatprep.subr.bf16.mxu1 %v6251_v2  ;;  %v4964_v22 = vpack.c.bf16 %v1193_v18, %v1192_v17  ;;  %v4976_v48 = vpack.c.bf16 %v1201_v44, %v1200_v43  ;;  %v1288_v17 = vld [vmem:[#allocation15 + $0x150] sm:$0xff]  ;;  %v1289_v18 = vld [vmem:[#allocation15 + $0x158] sm:$0xff]  ;;  %v1385_v44 = vld [vmem:[#allocation15 + $0x1e0] sm:$0xff] }
 0x20c   : > { %4927 = vmatprep.subr.bf16.mxu0 %v6251_v2  ;;  %v5000_v19 = vpack.c.bf16 %v1289_v18, %v1288_v17  ;;  %v1383_v41 = vld [vmem:[#allocation15 + $0x1d0] sm:$0xff]  ;;  %v1483_v18 = vld [vmem:[#allocation15 + $0x278] sm:$0xff] }
 0x20d   : > { %v1482_v17 = vld [vmem:[#allocation15 + $0x270] sm:$0xff] }
 0x20e   : > { %4950 = vmatpush3.bf16.msra.mxu1 %v4949_v46  ;;  %v1576_v46 = vld [vmem:[#allocation17 + $0x50] sm:$0xff] }
 0x20f   : > { %4929 = vmatpush3.bf16.msra.mxu0 %v4928_v25  ;;  %4951 = vmatprep.subr.bf16.mxu1 %v6251_v2  ;;  %v1194_v25 = vld [vmem:[#allocation15 + $0xa0] sm:$0xff] }
 0x210   : > { %4930 = vmatprep.subr.bf16.mxu0 %v6251_v2  ;;  %v4967_v30 = vpack.c.bf16 %v1195_v26, %v1194_v25  ;;  %v1373_v26 = vld [vmem:[#allocation15 + $0x180] sm:$0xff] }
 0x212   : > { %4953 = vmatpush3.bf16.msra.mxu1 %v4952_v49  ;;  %v1202_v49 = vld [vmem:[#allocation15 + $0xe0] sm:$0xff] }
 0x213   : > { %4932 = vmatpush3.bf16.msra.mxu0 %v4931_v28  ;;  %4954 = vmatprep.subr.bf16.mxu1 %v6251_v2  ;;  %v1570_v28 = vld [vmem:[#allocation17 + $0x20] sm:$0xff] }
 0x214   : > { %4933 = vmatprep.subr.bf16.mxu0 %v6251_v2  ;;  %v5063_v33 = vpack.c.bf16 %v1571_v29, %v1570_v28  ;;  %v1375_v29 = vld [vmem:[#allocation15 + $0x190] sm:$0xff] }
 0x216   : > { %4956 = vmatpush3.bf16.msra.mxu1 %v4955_v0 }
 0x217   : > { %4935 = vmatpush3.bf16.msra.mxu0 %v4934_v31  ;;  %4957 = vmatprep.subr.bf16.mxu1 %v6251_v2  ;;  %v1196_v31 = vld [vmem:[#allocation15 + $0xb0] sm:$0xff] }
 0x218   : > { %5056 = vmatprep.subr.bf16.mxu0 %v6251_v2  ;;  %v4970_v36 = vpack.c.bf16 %v1197_v32, %v1196_v31  ;;  %v1377_v32 = vld [vmem:[#allocation15 + $0x1a0] sm:$0xff] }
 0x21a   : > { %4959 = vmatpush3.bf16.msra.mxu1 %v4958_v5  ;;  %v4988_v5 = vpack.c.bf16 %v1281_v3, %v1280_v1  ;;  %v1474_v1 = vld [vmem:[#allocation15 + $0x230] sm:$0xff]  ;;  %v1475_v3 = vld [vmem:[#allocation15 + $0x238] sm:$0xff] }
 0x21b   : > { %4960 = vmatprep.subr.bf16.mxu1 %v6251_v2 }
 0x2cd   : > { %v983_v55 = vpop.f32.mrb[0].mxu1  ;;  %v6913_v56 = vpop.f32.mrb[0].mxu0 }
 0x2ce   : > { %v984_v57 = vadd.f32 %v983_v55, %v913_v54  ;;  %v4349_v58 = vpop.f32.mrb[1].mxu1  ;;  %v4342_v59 = vpop.f32.mrb[1].mxu0  ;;  %v1203_v54 = vld [vmem:[#allocation15 + $0xe8] sm:$0xff]  ;;  %v5072_v55 = vpack.c.bf16 %v1577_v47, %v1576_v46  ;;  %v1387_v47 = vld [vmem:[#allocation15 + $0x1f0] sm:$0xff] }
 0x2cf   : > { %v1204_v58 = vld [vmem:[#allocation15 + $0xf0] sm:$0xff]  ;;  %v1205_v59 = vld [vmem:[#allocation15 + $0xf8] sm:$0xff] }
 0x2d0   : > { %vm987_vm2 = vcmp.gt.f32.partialorder %v984_v57, 0.0  ;;  %v988_v60 = vmul.f32 0.1, %v984_v57 }
 0x2d2   : > { %v989_v61 = vsel %vm987_vm2, %v984_v57, %v988_v60  ;;  %v4979_v57 = vpack.c.bf16 %v1203_v54, %v1202_v49  ;;  %v4982_v60 = vpack.c.bf16 %v1205_v59, %v1204_v58  ;;  %v1468_v54 = vld [vmem:[#allocation15 + $0x200] sm:$0xff]  ;;  %v1470_v59 = vld [vmem:[#allocation15 + $0x210] sm:$0xff] }
 0x2d3   : > { %4383 = vmatmul.mubr.f32.vlgmr.msra.gmra.mrb[2].mxu0 %v989_v61  ;;  %v1278_v61 = vld [vmem:[#allocation15 + $0x100] sm:$0xff] }
 0x2d4   : > { %4592 = vmatprep.mubr.msk.f32.mxu0 %vm6252_vm0, %v6253_v4  ;;  %5058 = vmatpush3.bf16.msra.mxu0 %v5057_v23  ;;  %v4985_v63 = vpack.c.bf16 %v1279_v62, %v1278_v61  ;;  %v1292_v23 = vld [vmem:[#allocation15 + $0x170] sm:$0xff]  ;;  %v1472_v62 = vld [vmem:[#allocation15 + $0x220] sm:$0xff] }
 0x2d5   : > { %5059 = vmatprep.subr.bf16.mxu0 %v6251_v2  ;;  %v5006_v25 = vpack.c.bf16 %v1293_v24, %v1292_v23  ;;  %v1580_v24 = vld [vmem:[#allocation17 + $0x70] sm:$0xff] }
 0x2d8   : > { %5061 = vmatpush3.bf16.msra.mxu0 %v5060_v27  ;;  %v1374_v27 = vld [vmem:[#allocation15 + $0x188] sm:$0xff] }
 0x2d9   : > { %5062 = vmatprep.subr.bf16.mxu0 %v6251_v2  ;;  %v5009_v28 = vpack.c.bf16 %v1374_v27, %v1373_v26  ;;  %v1085_v27 = vsub.s32 2, %v6904_v51 }
 0x2dc   : > { %5064 = vmatpush3.bf16.msra.mxu0 %v5063_v33  ;;  %v1378_v33 = vld [vmem:[#allocation15 + $0x1a8] sm:$0xff] }
 0x2dd   : > { %5065 = vmatprep.subr.bf16.mxu0 %v6251_v2  ;;  %v5015_v34 = vpack.c.bf16 %v1378_v33, %v1377_v32  ;;  %v1656_v33 = vld [vmem:[#allocation17 + $0x80] sm:$0xff] }
 0x2e0   : > { %5067 = vmatpush3.bf16.msra.mxu0 %v5066_v39  ;;  %v1382_v39 = vld [vmem:[#allocation15 + $0x1c8] sm:$0xff] }
 0x2e1   : > { %5068 = vmatprep.subr.bf16.mxu0 %v6251_v2  ;;  %v5021_v40 = vpack.c.bf16 %v1382_v39, %v1381_v38  ;;  %v1658_v39 = vld [vmem:[#allocation17 + $0x90] sm:$0xff] }
 0x2e4   : > { %5070 = vmatpush3.bf16.msra.mxu0 %v5069_v45  ;;  %v1386_v45 = vld [vmem:[#allocation15 + $0x1e8] sm:$0xff] }
 0x2e5   : > { %5071 = vmatprep.subr.bf16.mxu0 %v6251_v2  ;;  %v5027_v46 = vpack.c.bf16 %v1386_v45, %v1385_v44  ;;  %v2021_v45 = vld [vmem:[#allocation18 + $0x30] sm:$0xff] }
 0x2e8   : > { %5073 = vmatpush3.bf16.msra.mxu0 %v5072_v55  ;;  %v1469_v55 = vld [vmem:[#allocation15 + $0x208] sm:$0xff] }
 0x2e9   : > { %5074 = vmatprep.subr.bf16.mxu0 %v6251_v2 }
 0x3a6   : > { %v1076_v8 = vpop.f32.mrb[2].mxu0 }
 0x3a7   : > { %v1077_v9 = vadd.f32 %v1076_v8, %v1009_v7  ;;  %v4384_v10 = vpop.f32.mrb[3].mxu0  ;;  %v1282_v7 = vld [vmem:[#allocation15 + $0x120] sm:$0xff]  ;;  %v1283_v8 = vld [vmem:[#allocation15 + $0x128] sm:$0xff] }
 0x3a8   : > { %v1284_v10 = vld [vmem:[#allocation15 + $0x130] sm:$0xff] }
 0x3a9   : > { %vm1080_vm3 = vcmp.gt.f32.partialorder %v1077_v9, 0.0  ;;  %v1081_v13 = vmul.f32 0.1, %v1077_v9  ;;  %v4994_v12 = vpack.c.bf16 %v1285_v11, %v1284_v10  ;;  %v1478_v10 = vld [vmem:[#allocation15 + $0x250] sm:$0xff]  ;;  %v1479_v11 = vld [vmem:[#allocation15 + $0x258] sm:$0xff] }
 0x3ab   : > { %v6923_v14 = vsel %vm1080_vm3, %v1077_v9, %v1081_v13  ;;  %v4991_v9 = vpack.c.bf16 %v1283_v8, %v1282_v7  ;;  %v1286_v13 = vld [vmem:[#allocation15 + $0x140] sm:$0xff]  ;;  %v1477_v8 = vld [vmem:[#allocation15 + $0x248] sm:$0xff] }
 0x3ac   : > { %v1088_v16 = vrot.slane %v6923_v14, 6  ;;  %v1182_v0 = vrot.slane %v6923_v14, 7  ;;  %v1365_v58 = vrot.slane %v6923_v14, 1  ;;  %v1476_v7 = vld [vmem:[#allocation15 + $0x240] sm:$0xff] }
 0x3ae   : > { %4418 = vmatmul.mubr.msk.f32.vlgmr.msra.gmra.mrb[2].mxu1 %vm1089_vm4, %v1088_v16 }
 0x3af   : > { %4962 = vmatpush3.bf16.msra.mxu1 %v4961_v15  ;;  %4452 = vmatprep.mubr.msk.f32.mxu1 %vm6252_vm0, %v6253_v4  ;;  %v1287_v15 = vld [vmem:[#allocation15 + $0x148] sm:$0xff] }
 0x3b0   : > { %4963 = vmatprep.subr.bf16.mxu1 %v6251_v2  ;;  %v4997_v16 = vpack.c.bf16 %v1287_v15, %v1286_v13  ;;  %v1480_v13 = vld [vmem:[#allocation15 + $0x260] sm:$0xff]  ;;  %v1481_v15 = vld [vmem:[#allocation15 + $0x268] sm:$0xff] }
 0x3b3   : > { %4965 = vmatpush3.bf16.msra.mxu1 %v4964_v22  ;;  %v5003_v22 = vpack.c.bf16 %v1291_v21, %v1290_v20  ;;  %v1460_v20 = vrot.slane %v6923_v14, 2  ;;  %v1578_v21 = vld [vmem:[#allocation17 + $0x60] sm:$0xff] }
 0x3b4   : > { %4966 = vmatprep.subr.bf16.mxu1 %v6251_v2 }
 0x3b7   : > { %4968 = vmatpush3.bf16.msra.mxu1 %v4967_v30  ;;  %v1376_v30 = vld [vmem:[#allocation15 + $0x198] sm:$0xff] }
 0x3b8   : > { %4969 = vmatprep.subr.bf16.mxu1 %v6251_v2  ;;  %v5012_v31 = vpack.c.bf16 %v1376_v30, %v1375_v29 }
 0x3bb   : > { %4971 = vmatpush3.bf16.msra.mxu1 %v4970_v36  ;;  %v1380_v36 = vld [vmem:[#allocation15 + $0x1b8] sm:$0xff] }
 0x3bc   : > { %4972 = vmatprep.subr.bf16.mxu1 %v6251_v2  ;;  %v5018_v37 = vpack.c.bf16 %v1380_v36, %v1379_v35 }
 0x3bf   : > { %4974 = vmatpush3.bf16.msra.mxu1 %v4973_v42  ;;  %v1384_v42 = vld [vmem:[#allocation15 + $0x1d8] sm:$0xff] }
 0x3c0   : > { %4975 = vmatprep.subr.bf16.mxu1 %v6251_v2  ;;  %v5024_v43 = vpack.c.bf16 %v1384_v42, %v1383_v41  ;;  %v2022_v41 = vld [vmem:[#allocation18 + $0x38] sm:$0xff]  ;;  %v2015_v42 = vld [vmem:[#allocation18] sm:$0xff] }
 0x3c3   : > { %4977 = vmatpush3.bf16.msra.mxu1 %v4976_v48  ;;  %v1388_v48 = vld [vmem:[#allocation15 + $0x1f8] sm:$0xff] }
 0x3c4   : > { %4978 = vmatprep.subr.bf16.mxu1 %v6251_v2  ;;  %v5030_v49 = vpack.c.bf16 %v1388_v48, %v1387_v47  ;;  %v5178_v47 = vpack.c.bf16 %v2021_v45, %v2015_v42  ;;  %v2028_v48 = vld [vmem:[#allocation18 + $0x68] sm:$0xff] }
 0x3c7   : > { %4980 = vmatpush3.bf16.msra.mxu1 %v4979_v57  ;;  %v5033_v57 = vpack.c.bf16 %v1469_v55, %v1468_v54  ;;  %v2027_v54 = vld [vmem:[#allocation18 + $0x60] sm:$0xff]  ;;  %v2033_v55 = vld [vmem:[#allocation18 + $0x90] sm:$0xff] }
 0x3c8   : > { %4981 = vmatprep.subr.bf16.mxu1 %v6251_v2 }
 0x3cb   : > { %4983 = vmatpush3.bf16.msra.mxu1 %v4982_v60  ;;  %v1471_v60 = vld [vmem:[#allocation15 + $0x218] sm:$0xff] }
 0x3cc   : > { %4984 = vmatprep.subr.bf16.mxu1 %v6251_v2  ;;  %v5036_v61 = vpack.c.bf16 %v1471_v60, %v1470_v59  ;;  %v1662_v60 = vld [vmem:[#allocation17 + $0xb0] sm:$0xff] }
 0x3ce   : > { %4453 = vmatmul.mubr.msk.f32.vlgmr.msra.gmra.mrb[2].mxu1 %vm1183_vm5, %v1182_v0 }
 0x3cf   : > { %4986 = vmatpush3.bf16.msra.mxu1 %v4985_v63  ;;  %4487 = vmatprep.mubr.msk.f32.mxu1 %vm6252_vm0, %v6253_v4  ;;  %v1473_v63 = vld [vmem:[#allocation15 + $0x228] sm:$0xff] }
 0x3d0   : > { %4987 = vmatprep.subr.bf16.mxu1 %v6251_v2  ;;  %v5039_v0 = vpack.c.bf16 %v1473_v63, %v1472_v62  ;;  %v2046_v62 = vld [vmem:[#allocation18 + $0xf8] sm:$0xff] }
 0x3d1   : > { %v1663_v63 = vld [vmem:[#allocation17 + $0xb8] sm:$0xff] }
 0x3d3   : > { %4989 = vmatpush3.bf16.msra.mxu1 %v4988_v5  ;;  %v5042_v5 = vpack.c.bf16 %v1475_v3, %v1474_v1  ;;  %v2039_v1 = vld [vmem:[#allocation18 + $0xc0] sm:$0xff]  ;;  %v2045_v3 = vld [vmem:[#allocation18 + $0xf0] sm:$0xff] }
 0x3d4   : > { %4990 = vmatprep.subr.bf16.mxu1 %v6251_v2 }
 0x3d7   : > { %4992 = vmatpush3.bf16.msra.mxu1 %v4991_v9  ;;  %v5045_v9 = vpack.c.bf16 %v1477_v8, %v1476_v7  ;;  %v5090_v7 = vpack.c.bf16 %v1663_v63, %v1662_v60  ;;  %v2052_v8 = vld [vmem:[#allocation18 + $0x128] sm:$0xff]  ;;  %v1752_v60 = vld [vmem:[#allocation17 + $0x140] sm:$0xff]  ;;  %v1754_v63 = vld [vmem:[#allocation17 + $0x150] sm:$0xff] }
 0x3d8   : > { %4993 = vmatprep.subr.bf16.mxu1 %v6251_v2 }
 0x3db   : > { %4995 = vmatpush3.bf16.msra.mxu1 %v4994_v12  ;;  %v5048_v12 = vpack.c.bf16 %v1479_v11, %v1478_v10  ;;  %v2051_v10 = vld [vmem:[#allocation18 + $0x120] sm:$0xff] }
 0x3dc   : > { %4996 = vmatprep.subr.bf16.mxu1 %v6251_v2  ;;  %v1664_v11 = vld [vmem:[#allocation17 + $0xc0] sm:$0xff] }
 0x3df   : > { %4998 = vmatpush3.bf16.msra.mxu1 %v4997_v16  ;;  %v5051_v16 = vpack.c.bf16 %v1481_v15, %v1480_v13  ;;  %v2057_v15 = vld [vmem:[#allocation18 + $0x150] sm:$0xff] }
 0x3e0   : > { %4999 = vmatprep.subr.bf16.mxu1 %v6251_v2 }
 0x3e3   : > { %5001 = vmatpush3.bf16.msra.mxu1 %v5000_v19  ;;  %v5054_v19 = vpack.c.bf16 %v1483_v18, %v1482_v17  ;;  %v2064_v18 = vld [vmem:[#allocation18 + $0x188] sm:$0xff] }
 0x3e4   : > { %5002 = vmatprep.subr.bf16.mxu1 %v6251_v2 }
 0x3e7   : > { %5004 = vmatpush3.bf16.msra.mxu1 %v5003_v22  ;;  %v1579_v22 = vld [vmem:[#allocation17 + $0x68] sm:$0xff] }
 0x3e8   : > { %5005 = vmatprep.subr.bf16.mxu1 %v6251_v2  ;;  %v5075_v23 = vpack.c.bf16 %v1579_v22, %v1578_v21  ;;  %v1666_v21 = vld [vmem:[#allocation17 + $0xd0] sm:$0xff]  ;;  %v1667_v22 = vld [vmem:[#allocation17 + $0xd8] sm:$0xff] }
 0x3ea   : > { %5076 = vmatpush3.bf16.msra.mxu0 %v5075_v23 }
 0x3eb   : > { %5007 = vmatpush3.bf16.msra.mxu1 %v5006_v25  ;;  %5077 = vmatprep.subr.bf16.mxu0 %v6251_v2  ;;  %v1581_v25 = vld [vmem:[#allocation17 + $0x78] sm:$0xff] }
 0x3ec   : > { %5008 = vmatprep.subr.bf16.mxu1 %v6251_v2  ;;  %v5078_v26 = vpack.c.bf16 %v1581_v25, %v1580_v24  ;;  %v2069_v24 = vld [vmem:[#allocation18 + $0x1b0] sm:$0xff] }
 0x3ee   : > { %4488 = vmatmul.mubr.f32.vlgmr.msra.gmra.mrb[2].mxu1 %v6923_v14  ;;  %5079 = vmatpush3.bf16.msra.mxu0 %v5078_v26  ;;  %v5096_v26 = vpack.c.bf16 %v1667_v22, %v1666_v21  ;;  %v1840_v21 = vld [vmem:[#allocation17 + $0x1b0] sm:$0xff]  ;;  %v1841_v22 = vld [vmem:[#allocation17 + $0x1b8] sm:$0xff] }
 0x3ef   : > { %5010 = vmatpush3.bf16.msra.mxu1 %v5009_v28  ;;  %4522 = vmatprep.mubr.msk.f32.mxu1 %vm6252_vm0, %v6253_v4  ;;  %v1086_v28 = vrot.slane %v6909_v53, %v1085_v27  ;;  %v2016_v53 = vld [vmem:[#allocation18 + $0x8] sm:$0xff] }
 0x3f0   : > { %5011 = vmatprep.subr.bf16.mxu1 %v6251_v2  ;;  %5080 = vmatprep.subr.bf16.mxu0 %v6251_v2  ;;  %v5176_v44 = vpack.c.bf16 %v2022_v41, %v2016_v53  ;;  %v1671_v53 = vld [vmem:[#allocation17 + $0xf8] sm:$0xff] }
 0x3f3   : > { %5013 = vmatpush3.bf16.msra.mxu1 %v5012_v31 }
 0x3f4   : > { %5014 = vmatprep.subr.bf16.mxu1 %v6251_v2 }
 0x3f7   : > { %5016 = vmatpush3.bf16.msra.mxu1 %v5015_v34  ;;  %v1657_v34 = vld [vmem:[#allocation17 + $0x88] sm:$0xff] }
 0x3f8   : > { %5017 = vmatprep.subr.bf16.mxu1 %v6251_v2 }
 0x3fb   : > { %5019 = vmatpush3.bf16.msra.mxu1 %v5018_v37  ;;  %v5081_v37 = vpack.c.bf16 %v1657_v34, %v1656_v33  ;;  %v2081_v34 = vld [vmem:[#allocation18 + $0x210] sm:$0xff] }
 0x3fc   : > { %5020 = vmatprep.subr.bf16.mxu1 %v6251_v2 }
 0x3ff   : > { %5022 = vmatpush3.bf16.msra.mxu1 %v5021_v40  ;;  %v1659_v40 = vld [vmem:[#allocation17 + $0x98] sm:$0xff] }
 0x400   : > { %5023 = vmatprep.subr.bf16.mxu1 %v6251_v2 }
 0x403   : > { %5025 = vmatpush3.bf16.msra.mxu1 %v5024_v43  ;;  %v5084_v43 = vpack.c.bf16 %v1659_v40, %v1658_v39  ;;  %v2094_v39 = vld [vmem:[#allocation18 + $0x278] sm:$0xff]  ;;  %v1670_v40 = vld [vmem:[#allocation17 + $0xf0] sm:$0xff] }
 0x404   : > { %5026 = vmatprep.subr.bf16.mxu1 %v6251_v2  ;;  %v5102_v42 = vpack.c.bf16 %v1671_v53, %v1670_v40 }
 0x407   : > { %5028 = vmatpush3.bf16.msra.mxu1 %v5027_v46  ;;  %v1661_v46 = vld [vmem:[#allocation17 + $0xa8] sm:$0xff] }
 0x408   : > { %5029 = vmatprep.subr.bf16.mxu1 %v6251_v2 }
 0x40b   : > { %5031 = vmatpush3.bf16.msra.mxu1 %v5030_v49  ;;  %v2034_v49 = vld [vmem:[#allocation18 + $0x98] sm:$0xff] }
 0x40c   : > { %5032 = vmatprep.subr.bf16.mxu1 %v6251_v2 }
 0x40e   : > { %4523 = vmatmul.mubr.msk.f32.vlgmr.msra.gmra.mrb[2].mxu1 %vm1367_vm6, %v1365_v58  ;;  %v5182_v58 = vpack.c.bf16 %v2033_v55, %v2027_v54  ;;  %v1749_v54 = vld [vmem:[#allocation17 + $0x128] sm:$0xff] }
 0x40f   : > { %5034 = vmatpush3.bf16.msra.mxu1 %v5033_v57  ;;  %4557 = vmatprep.mubr.msk.f32.mxu1 %vm6252_vm0, %v6253_v4  ;;  %v5180_v57 = vpack.c.bf16 %v2034_v49, %v2028_v48  ;;  %v1748_v49 = vld [vmem:[#allocation17 + $0x120] sm:$0xff] }
 0x410   : > { %5035 = vmatprep.subr.bf16.mxu1 %v6251_v2  ;;  %v5111_v55 = vpack.c.bf16 %v1749_v54, %v1748_v49  ;;  %v1932_v49 = vld [vmem:[#allocation17 + $0x240] sm:$0xff]  ;;  %v1933_v54 = vld [vmem:[#allocation17 + $0x248] sm:$0xff] }
 0x413   : > { %5037 = vmatpush3.bf16.msra.mxu1 %v5036_v61  ;;  %v2040_v61 = vld [vmem:[#allocation18 + $0xc8] sm:$0xff] }
 0x414   : > { %5038 = vmatprep.subr.bf16.mxu1 %v6251_v2 }
 0x417   : > { %5040 = vmatpush3.bf16.msra.mxu1 %v5039_v0  ;;  %v5184_v0 = vpack.c.bf16 %v2046_v62, %v2040_v61  ;;  %v1753_v61 = vld [vmem:[#allocation17 + $0x148] sm:$0xff] }
 0x418   : > { %5041 = vmatprep.subr.bf16.mxu1 %v6251_v2  ;;  %v5117_v62 = vpack.c.bf16 %v1753_v61, %v1752_v60  ;;  %v1936_v60 = vld [vmem:[#allocation17 + $0x260] sm:$0xff]  ;;  %v1937_v61 = vld [vmem:[#allocation17 + $0x268] sm:$0xff] }
 0x41b   : > { %5043 = vmatpush3.bf16.msra.mxu1 %v5042_v5  ;;  %v5186_v5 = vpack.c.bf16 %v2045_v3, %v2039_v1  ;;  %v1756_v3 = vld [vmem:[#allocation17 + $0x160] sm:$0xff] }
 0x41c   : > { %5044 = vmatprep.subr.bf16.mxu1 %v6251_v2 }
 0x41f   : > { %5046 = vmatpush3.bf16.msra.mxu1 %v5045_v9  ;;  %v2058_v9 = vld [vmem:[#allocation18 + $0x158] sm:$0xff] }
 0x420   : > { %5047 = vmatprep.subr.bf16.mxu1 %v6251_v2  ;;  %v5188_v13 = vpack.c.bf16 %v2058_v9, %v2052_v8  ;;  %v1758_v8 = vld [vmem:[#allocation17 + $0x170] sm:$0xff]  ;;  %v1759_v9 = vld [vmem:[#allocation17 + $0x178] sm:$0xff] }
 0x423   : > { %5049 = vmatpush3.bf16.msra.mxu1 %v5048_v12  ;;  %v1665_v12 = vld [vmem:[#allocation17 + $0xc8] sm:$0xff] }
 0x424   : > { %5050 = vmatprep.subr.bf16.mxu1 %v6251_v2  ;;  %v5093_v17 = vpack.c.bf16 %v1665_v12, %v1664_v11  ;;  %v1834_v11 = vld [vmem:[#allocation17 + $0x180] sm:$0xff]  ;;  %v1835_v12 = vld [vmem:[#allocation17 + $0x188] sm:$0xff] }
 0x427   : > { %5052 = vmatpush3.bf16.msra.mxu1 %v5051_v16  ;;  %v5190_v16 = vpack.c.bf16 %v2057_v15, %v2051_v10  ;;  %v5126_v10 = vpack.c.bf16 %v1759_v9, %v1758_v8  ;;  %v1836_v15 = vld [vmem:[#allocation17 + $0x190] sm:$0xff]  ;;  %v2023_v9 = vld [vmem:[#allocation18 + $0x40] sm:$0xff] }
 0x428   : > { %5053 = vmatprep.subr.bf16.mxu1 %v6251_v2  ;;  %v2017_v8 = vld [vmem:[#allocation18 + $0x10] sm:$0xff] }
 0x42b   : > { %5055 = vmatpush3.bf16.msra.mxu1 %v5054_v19  ;;  %v2070_v19 = vld [vmem:[#allocation18 + $0x1b8] sm:$0xff] }
 0x42c   : > { %5177 = vmatprep.subr.bf16.mxu1 %v5176_v44  ;;  %v5192_v23 = vpack.c.bf16 %v2070_v19, %v2064_v18  ;;  %v1745_v44 = vld [vmem:[#allocation17 + $0x108] sm:$0xff]  ;;  %v1838_v18 = vld [vmem:[#allocation17 + $0x1a0] sm:$0xff] }
 0x42d   : > { %v1839_v19 = vld [vmem:[#allocation17 + $0x1a8] sm:$0xff] }
 0x42e   : > { %4558 = vmatmul.mubr.msk.f32.vlgmr.msra.gmra.mrb[2].mxu1 %vm1462_vm7, %v1460_v20  ;;  %v2063_v20 = vld [vmem:[#allocation18 + $0x180] sm:$0xff] }
 0x42f   : > { %2206 = vmatprep.mubr.f32.mxu1 %v6253_v4  ;;  %5179 = vmatpush1.bf16.msra.mxu1 %v5178_v47  ;;  %v5194_v25 = vpack.c.bf16 %v2069_v24, %v2063_v20  ;;  %v1747_v47 = vld [vmem:[#allocation17 + $0x118] sm:$0xff]  ;;  %v5135_v20 = vpack.c.bf16 %v1839_v19, %v1838_v18  ;;  %v1842_v24 = vld [vmem:[#allocation17 + $0x1c0] sm:$0xff]  ;;  %v2048_v19 = vld [vmem:[#allocation18 + $0x108] sm:$0xff] }
 0x430   : > { %5181 = vmatprep.subr.bf16.mxu1 %v5180_v57  ;;  %v1750_v57 = vld [vmem:[#allocation17 + $0x130] sm:$0xff]  ;;  %v2042_v18 = vld [vmem:[#allocation18 + $0xd8] sm:$0xff] }
 0x433   : > { %5183 = vmatpush1.bf16.msra.mxu1 %v5182_v58  ;;  %v1751_v58 = vld [vmem:[#allocation17 + $0x138] sm:$0xff] }
 0x434   : > { %5185 = vmatprep.subr.bf16.mxu1 %v5184_v0  ;;  %v1755_v0 = vld [vmem:[#allocation17 + $0x158] sm:$0xff] }
 0x435   : > { %v5120_v1 = vpack.c.bf16 %v1755_v0, %v1754_v63  ;;  %v1938_v63 = vld [vmem:[#allocation17 + $0x270] sm:$0xff]  ;;  %v1939_v0 = vld [vmem:[#allocation17 + $0x278] sm:$0xff] }
 0x437   : > { %5187 = vmatpush1.bf16.msra.mxu1 %v5186_v5  ;;  %v1757_v5 = vld [vmem:[#allocation17 + $0x168] sm:$0xff] }
 0x438   : > { %5189 = vmatprep.subr.bf16.mxu1 %v5188_v13  ;;  %v5129_v13 = vpack.c.bf16 %v1835_v12, %v1834_v11  ;;  %v2036_v11 = vld [vmem:[#allocation18 + $0xa8] sm:$0xff]  ;;  %v5210_v12 = vpack.c.bf16 %v2023_v9, %v2017_v8  ;;  %v2026_v9 = vld [vmem:[#allocation18 + $0x58] sm:$0xff] }
 0x439   : > { %v2020_v8 = vld [vmem:[#allocation18 + $0x28] sm:$0xff] }
 0x43b   : > { %5191 = vmatpush1.bf16.msra.mxu1 %v5190_v16  ;;  %v1837_v16 = vld [vmem:[#allocation17 + $0x198] sm:$0xff] }
 0x43c   : > { %5193 = vmatprep.subr.bf16.mxu1 %v5192_v23  ;;  %v5138_v23 = vpack.c.bf16 %v1841_v22, %v1840_v21  ;;  %v5216_v21 = vpack.c.bf16 %v2048_v19, %v2042_v18  ;;  %v2041_v22 = vld [vmem:[#allocation18 + $0xd0] sm:$0xff]  ;;  %v2019_v18 = vld [vmem:[#allocation18 + $0x20] sm:$0xff] }
 0x43d   : > { %v2025_v19 = vld [vmem:[#allocation18 + $0x50] sm:$0xff] }
 0x43f   : > { %5195 = vmatpush1.bf16.msra.mxu1 %v5194_v25  ;;  %v1843_v25 = vld [vmem:[#allocation17 + $0x1c8] sm:$0xff] }
 0x501   : > { %v1550_v29 = vpop.f32.mrb[2].mxu1 }
 0x502   : > { %v5379_v30 = vadd.f32 %v1550_v29, %v1086_v28  ;;  %v4559_v31 = vpop.f32.mrb[3].mxu1  ;;  %v2076_v28 = vld [vmem:[#allocation18 + $0x1e8] sm:$0xff]  ;;  %v2082_v29 = vld [vmem:[#allocation18 + $0x218] sm:$0xff] }
 0x503   : > { %v1668_v31 = vld [vmem:[#allocation17 + $0xe0] sm:$0xff]  ;;  %v5196_v33 = vpack.c.bf16 %v2082_v29, %v2076_v28  ;;  %v1844_v28 = vld [vmem:[#allocation17 + $0x1d0] sm:$0xff]  ;;  %v1845_v29 = vld [vmem:[#allocation17 + $0x1d8] sm:$0xff] }
 0x504   : > { %vm1555_vm8 = vcmp.gt.f32.partialorder %v5379_v30, 0.0  ;;  %v1556_v32 = vmul.f32 0.1, %v5379_v30 }
 0x505   : > { %5197 = vmatprep.subr.bf16.mxu1 %v5196_v33 }
 0x506   : > { %v1557_v35 = vsel %vm1555_vm8, %v5379_v30, %v1556_v32  ;;  %v2075_v30 = vld [vmem:[#allocation18 + $0x1e0] sm:$0xff]  ;;  %v1669_v32 = vld [vmem:[#allocation17 + $0xe8] sm:$0xff] }
 0x507   : > { %v6995_v36 = vadd.f32 %v1557_v35, %v6923_v14  ;;  %v1660_v14 = vld [vmem:[#allocation17 + $0xa0] sm:$0xff]  ;;  %v5198_v35 = vpack.c.bf16 %v2081_v34, %v2075_v30  ;;  %v5144_v30 = vpack.c.bf16 %v1845_v29, %v1844_v28  ;;  %v1848_v34 = vld [vmem:[#allocation17 + $0x1f0] sm:$0xff] }
 0x508   : > { %v5087_v59 = vpack.c.bf16 %v1661_v46, %v1660_v14  ;;  %v1746_v46 = vld [vmem:[#allocation17 + $0x110] sm:$0xff] }
 0x509   : > { %v1564_v38 = vrot.slane %v6995_v36, 6  ;;  %5199 = vmatpush1.bf16.msra.mxu1 %v5198_v35  ;;  %v1653_v14 = vrot.slane %v6995_v36, 7  ;;  %v5108_v48 = vpack.c.bf16 %v1747_v47, %v1746_v46  ;;  %v1849_v35 = vld [vmem:[#allocation17 + $0x1f8] sm:$0xff]  ;;  %v1831_v53 = vrot.slane %v6995_v36, 1  ;;  %v1930_v46 = vld [vmem:[#allocation17 + $0x230] sm:$0xff] }
 0x50a   : > { %v1931_v47 = vld [vmem:[#allocation17 + $0x238] sm:$0xff]  ;;  %v2053_v29 = vld [vmem:[#allocation18 + $0x130] sm:$0xff] }
 0x50b   : > { %4593 = vmatmul.mubr.msk.f32.vlgmr.msra.gmra.mrb[4].mxu0 %vm1089_vm4, %v1564_v38  ;;  %v2088_v38 = vld [vmem:[#allocation18 + $0x248] sm:$0xff] }
 0x50c   : > { %5082 = vmatpush3.bf16.msra.mxu0 %v5081_v37  ;;  %4627 = vmatprep.mubr.msk.f32.mxu0 %vm6252_vm0, %v6253_v4  ;;  %v5099_v37 = vpack.c.bf16 %v1669_v32, %v1668_v31  ;;  %v5200_v41 = vpack.c.bf16 %v2094_v39, %v2088_v38  ;;  %v1846_v31 = vld [vmem:[#allocation17 + $0x1e0] sm:$0xff]  ;;  %v1847_v32 = vld [vmem:[#allocation17 + $0x1e8] sm:$0xff] }
 0x50d   : > { %5083 = vmatprep.subr.bf16.mxu0 %v6251_v2  ;;  %v5147_v33 = vpack.c.bf16 %v1847_v32, %v1846_v31  ;;  %v1924_v38 = vld [vmem:[#allocation17 + $0x200] sm:$0xff]  ;;  %v1925_v39 = vld [vmem:[#allocation17 + $0x208] sm:$0xff]  ;;  %v2066_v31 = vld [vmem:[#allocation18 + $0x198] sm:$0xff] }
 0x50e   : > { %5201 = vmatprep.subr.bf16.mxu1 %v5200_v41  ;;  %v5153_v40 = vpack.c.bf16 %v1925_v39, %v1924_v38  ;;  %v1926_v41 = vld [vmem:[#allocation17 + $0x210] sm:$0xff]  ;;  %v2072_v32 = vld [vmem:[#allocation18 + $0x1c8] sm:$0xff]  ;;  %v2078_v38 = vld [vmem:[#allocation18 + $0x1f8] sm:$0xff] }
 0x50f   : > { %v2084_v39 = vld [vmem:[#allocation18 + $0x228] sm:$0xff] }
 0x510   : > { %5085 = vmatpush3.bf16.msra.mxu0 %v5084_v43  ;;  %v1744_v43 = vld [vmem:[#allocation17 + $0x100] sm:$0xff] }
 0x511   : > { %5086 = vmatprep.subr.bf16.mxu0 %v6251_v2  ;;  %v5105_v45 = vpack.c.bf16 %v1745_v44, %v1744_v43  ;;  %v1928_v44 = vld [vmem:[#allocation17 + $0x220] sm:$0xff] }
 0x514   : > { %5088 = vmatpush3.bf16.msra.mxu0 %v5087_v59  ;;  %v5114_v59 = vpack.c.bf16 %v1751_v58, %v1750_v57  ;;  %v1934_v57 = vld [vmem:[#allocation17 + $0x250] sm:$0xff]  ;;  %v1935_v58 = vld [vmem:[#allocation17 + $0x258] sm:$0xff] }
 0x515   : > { %5089 = vmatprep.subr.bf16.mxu0 %v6251_v2 }
 0x518   : > { %5091 = vmatpush3.bf16.msra.mxu0 %v5090_v7  ;;  %v5123_v7 = vpack.c.bf16 %v1757_v5, %v1756_v3  ;;  %v2024_v3 = vld [vmem:[#allocation18 + $0x48] sm:$0xff]  ;;  %v5174_v5 = vpack.c.bf16 %v1939_v0, %v1938_v63 }
 0x519   : > { %5092 = vmatprep.subr.bf16.mxu0 %v6251_v2  ;;  %v2108_v0 = vld [vmem:[#allocation18 + $0x2e8] sm:$0xff] }
 0x51c   : > { %5094 = vmatpush3.bf16.msra.mxu0 %v5093_v17  ;;  %v5132_v17 = vpack.c.bf16 %v1837_v16, %v1836_v15  ;;  %v2029_v16 = vld [vmem:[#allocation18 + $0x70] sm:$0xff] }
 0x51d   : > { %5095 = vmatprep.subr.bf16.mxu0 %v6251_v2 }
 0x520   : > { %5097 = vmatpush3.bf16.msra.mxu0 %v5096_v26  ;;  %v5141_v26 = vpack.c.bf16 %v1843_v25, %v1842_v24  ;;  %v2054_v24 = vld [vmem:[#allocation18 + $0x138] sm:$0xff]  ;;  %v2060_v25 = vld [vmem:[#allocation18 + $0x168] sm:$0xff] }
 0x521   : > { %5098 = vmatprep.subr.bf16.mxu0 %v6251_v2  ;;  %v5220_v28 = vpack.c.bf16 %v2060_v25, %v2054_v24  ;;  %v5242_v24 = vpack.c.bf16 %v2025_v19, %v2019_v18 }
 0x524   : > { %5100 = vmatpush3.bf16.msra.mxu0 %v5099_v37  ;;  %v5150_v37 = vpack.c.bf16 %v1849_v35, %v1848_v34  ;;  %v5224_v34 = vpack.c.bf16 %v2072_v32, %v2066_v31  ;;  %v2065_v35 = vld [vmem:[#allocation18 + $0x190] sm:$0xff]  ;;  %v2050_v31 = vld [vmem:[#allocation18 + $0x118] sm:$0xff] }
 0x525   : > { %5101 = vmatprep.subr.bf16.mxu0 %v6251_v2 }
 0x528   : > { %5103 = vmatpush3.bf16.msra.mxu0 %v5102_v42  ;;  %v1927_v42 = vld [vmem:[#allocation17 + $0x218] sm:$0xff] }
 0x529   : > { %5104 = vmatprep.subr.bf16.mxu0 %v6251_v2  ;;  %v5156_v43 = vpack.c.bf16 %v1927_v42, %v1926_v41  ;;  %v2077_v41 = vld [vmem:[#allocation18 + $0x1f0] sm:$0xff]  ;;  %v2083_v42 = vld [vmem:[#allocation18 + $0x220] sm:$0xff] }
 0x52b   : > { %4628 = vmatmul.mubr.msk.f32.vlgmr.msra.gmra.mrb[4].mxu0 %vm1183_vm5, %v1653_v14 }
 0x52c   : > { %5106 = vmatpush3.bf16.msra.mxu0 %v5105_v45  ;;  %4662 = vmatprep.mubr.msk.f32.mxu0 %vm6252_vm0, %v6253_v4  ;;  %v1929_v45 = vld [vmem:[#allocation17 + $0x228] sm:$0xff] }
 0x52d   : > { %5107 = vmatprep.subr.bf16.mxu0 %v6251_v2  ;;  %v5159_v14 = vpack.c.bf16 %v1929_v45, %v1928_v44  ;;  %v2087_v44 = vld [vmem:[#allocation18 + $0x240] sm:$0xff]  ;;  %v2093_v45 = vld [vmem:[#allocation18 + $0x270] sm:$0xff] }
 0x530   : > { %5109 = vmatpush3.bf16.msra.mxu0 %v5108_v48  ;;  %v5162_v48 = vpack.c.bf16 %v1931_v47, %v1930_v46  ;;  %v5202_v46 = vpack.c.bf16 %v2093_v45, %v2087_v44  ;;  %v2096_v47 = vld [vmem:[#allocation18 + $0x288] sm:$0xff]  ;;  %v2067_v45 = vld [vmem:[#allocation18 + $0x1a0] sm:$0xff] }
 0x531   : > { %5110 = vmatprep.subr.bf16.mxu0 %v6251_v2 }
 0x532   : > { %5203 = vmatpush1.bf16.msra.mxu1 %v5202_v46  ;;  %v2080_v46 = vld [vmem:[#allocation18 + $0x208] sm:$0xff] }
 0x534   : > { %5112 = vmatpush3.bf16.msra.mxu0 %v5111_v55  ;;  %v5165_v55 = vpack.c.bf16 %v1933_v54, %v1932_v49  ;;  %v2095_v49 = vld [vmem:[#allocation18 + $0x280] sm:$0xff] }
 0x535   : > { %5113 = vmatprep.subr.bf16.mxu0 %v6251_v2 }
 0x538   : > { %5115 = vmatpush3.bf16.msra.mxu0 %v5114_v59  ;;  %v5168_v59 = vpack.c.bf16 %v1935_v58, %v1934_v57  ;;  %v2100_v57 = vld [vmem:[#allocation18 + $0x2a8] sm:$0xff]  ;;  %v2106_v58 = vld [vmem:[#allocation18 + $0x2d8] sm:$0xff] }
 0x539   : > { %5116 = vmatprep.subr.bf16.mxu0 %v6251_v2 }
 0x53c   : > { %5118 = vmatpush3.bf16.msra.mxu0 %v5117_v62  ;;  %v5171_v62 = vpack.c.bf16 %v1937_v61, %v1936_v60  ;;  %v2099_v60 = vld [vmem:[#allocation18 + $0x2a0] sm:$0xff]  ;;  %v2105_v61 = vld [vmem:[#allocation18 + $0x2d0] sm:$0xff] }
 0x53d   : > { %5119 = vmatprep.subr.bf16.mxu0 %v6251_v2  ;;  %v5206_v63 = vpack.c.bf16 %v2105_v61, %v2099_v60  ;;  %v2091_v61 = vld [vmem:[#allocation18 + $0x260] sm:$0xff] }
 0x540   : > { %5121 = vmatpush3.bf16.msra.mxu0 %v5120_v1  ;;  %v2018_v1 = vld [vmem:[#allocation18 + $0x18] sm:$0xff] }
 0x541   : > { %5122 = vmatprep.subr.bf16.mxu0 %v6251_v2 }
 0x544   : > { %5124 = vmatpush3.bf16.msra.mxu0 %v5123_v7  ;;  %v5208_v7 = vpack.c.bf16 %v2024_v3, %v2018_v1  ;;  %v2101_v1 = vld [vmem:[#allocation18 + $0x2b0] sm:$0xff]  ;;  %v2107_v3 = vld [vmem:[#allocation18 + $0x2e0] sm:$0xff] }
 0x545   : > { %5125 = vmatprep.subr.bf16.mxu0 %v6251_v2 }
 0x548   : > { %5127 = vmatpush3.bf16.msra.mxu0 %v5126_v10  ;;  %v2030_v10 = vld [vmem:[#allocation18 + $0x78] sm:$0xff] }
 0x549   : > { %5128 = vmatprep.subr.bf16.mxu0 %v6251_v2  ;;  %v5212_v15 = vpack.c.bf16 %v2036_v11, %v2030_v10  ;;  %v5240_v10 = vpack.c.bf16 %v2026_v9, %v2020_v8  ;;  %v1561_v11 = vsub.s32 3, %v6904_v51  ;;  %v7066_v9 = vld [vmem:[#allocation26] sm:$0x3f] }
 0x54b   : > { %4663 = vmatmul.mubr.f32.vlgmr.msra.gmra.mrb[4].mxu0 %v6995_v36 }
 0x54c   : > { %5130 = vmatpush3.bf16.msra.mxu0 %v5129_v13  ;;  %4697 = vmatprep.mubr.msk.f32.mxu0 %vm6252_vm0, %v6253_v4  ;;  %v1921_v13 = vrot.slane %v6995_v36, 2 }
 0x54d   : > { %5131 = vmatprep.subr.bf16.mxu0 %v6251_v2 }
 0x550   : > { %5133 = vmatpush3.bf16.msra.mxu0 %v5132_v17  ;;  %v2035_v17 = vld [vmem:[#allocation18 + $0xa0] sm:$0xff] }
 0x551   : > { %5134 = vmatprep.subr.bf16.mxu0 %v6251_v2 }
 0x554   : > { %5136 = vmatpush3.bf16.msra.mxu0 %v5135_v20  ;;  %v5214_v20 = vpack.c.bf16 %v2035_v17, %v2029_v16 }
 0x555   : > { %5137 = vmatprep.subr.bf16.mxu0 %v6251_v2 }
 0x558   : > { %5139 = vmatpush3.bf16.msra.mxu0 %v5138_v23  ;;  %v2047_v23 = vld [vmem:[#allocation18 + $0x100] sm:$0xff] }
 0x559   : > { %5140 = vmatprep.subr.bf16.mxu0 %v6251_v2 }
 0x55c   : > { %5142 = vmatpush3.bf16.msra.mxu0 %v5141_v26  ;;  %v5218_v26 = vpack.c.bf16 %v2047_v23, %v2041_v22  ;;  %v2038_v22 = vld [vmem:[#allocation18 + $0xb8] sm:$0xff] }
 0x55d   : > { %5143 = vmatprep.subr.bf16.mxu0 %v6251_v2 }
 0x560   : > { %5145 = vmatpush3.bf16.msra.mxu0 %v5144_v30  ;;  %v2059_v30 = vld [vmem:[#allocation18 + $0x160] sm:$0xff] }
 0x561   : > { %5146 = vmatprep.subr.bf16.mxu0 %v6251_v2 }
 0x564   : > { %5148 = vmatpush3.bf16.msra.mxu0 %v5147_v33  ;;  %v5222_v33 = vpack.c.bf16 %v2059_v30, %v2053_v29  ;;  %v2037_v29 = vld [vmem:[#allocation18 + $0xb0] sm:$0xff]  ;;  %v2044_v30 = vld [vmem:[#allocation18 + $0xe8] sm:$0xff] }
 0x565   : > { %5149 = vmatprep.subr.bf16.mxu0 %v6251_v2 }
 0x568   : > { %5151 = vmatpush3.bf16.msra.mxu0 %v5150_v37  ;;  %v2071_v37 = vld [vmem:[#allocation18 + $0x1c0] sm:$0xff] }
 0x569   : > { %5152 = vmatprep.subr.bf16.mxu0 %v6251_v2 }
 0x56b   : > { %4698 = vmatmul.mubr.msk.f32.vlgmr.msra.gmra.mrb[4].mxu0 %vm1367_vm6, %v1831_v53  ;;  %v5228_v53 = vpack.c.bf16 %v2084_v39, %v2078_v38 }
 0x56c   : > { %5154 = vmatpush3.bf16.msra.mxu0 %v5153_v40  ;;  %4732 = vmatprep.mubr.msk.f32.mxu0 %vm6252_vm0, %v6253_v4  ;;  %v5226_v40 = vpack.c.bf16 %v2071_v37, %v2065_v35  ;;  %v2049_v35 = vld [vmem:[#allocation18 + $0x110] sm:$0xff]  ;;  %v2062_v37 = vld [vmem:[#allocation18 + $0x178] sm:$0xff] }
 0x56d   : > { %5155 = vmatprep.subr.bf16.mxu0 %v6251_v2 }
 0x570   : > { %5157 = vmatpush3.bf16.msra.mxu0 %v5156_v43  ;;  %v5230_v43 = vpack.c.bf16 %v2083_v42, %v2077_v41  ;;  %v2068_v41 = vld [vmem:[#allocation18 + $0x1a8] sm:$0xff]  ;;  %v2074_v42 = vld [vmem:[#allocation18 + $0x1d8] sm:$0xff] }
 0x571   : > { %5158 = vmatprep.subr.bf16.mxu0 %v6251_v2  ;;  %v5256_v44 = vpack.c.bf16 %v2074_v42, %v2068_v41 }
 0x574   : > { %5160 = vmatpush3.bf16.msra.mxu0 %v5159_v14  ;;  %v2090_v14 = vld [vmem:[#allocation18 + $0x258] sm:$0xff] }
 0x575   : > { %5161 = vmatprep.subr.bf16.mxu0 %v6251_v2  ;;  %v5232_v54 = vpack.c.bf16 %v2096_v47, %v2090_v14  ;;  %v2073_v14 = vld [vmem:[#allocation18 + $0x1d0] sm:$0xff]  ;;  %v2086_v47 = vld [vmem:[#allocation18 + $0x238] sm:$0xff] }
 0x578   : > { %5163 = vmatpush3.bf16.msra.mxu0 %v5162_v48  ;;  %v2089_v48 = vld [vmem:[#allocation18 + $0x250] sm:$0xff] }
 0x579   : > { %5164 = vmatprep.subr.bf16.mxu0 %v6251_v2 }
 0x57c   : > { %5166 = vmatpush3.bf16.msra.mxu0 %v5165_v55  ;;  %v5234_v55 = vpack.c.bf16 %v2095_v49, %v2089_v48  ;;  %v5258_v48 = vpack.c.bf16 %v2073_v14, %v2067_v45  ;;  %v5260_v49 = vpack.c.bf16 %v2086_v47, %v2080_v46 }
 0x57d   : > { %5167 = vmatprep.subr.bf16.mxu0 %v6251_v2 }
 0x580   : > { %5169 = vmatpush3.bf16.msra.mxu0 %v5168_v59  ;;  %v5204_v59 = vpack.c.bf16 %v2106_v58, %v2100_v57  ;;  %v2092_v57 = vld [vmem:[#allocation18 + $0x268] sm:$0xff]  ;;  %v2098_v58 = vld [vmem:[#allocation18 + $0x298] sm:$0xff] }
 0x581   : > { %5170 = vmatprep.subr.bf16.mxu0 %v6251_v2  ;;  %v5264_v60 = vpack.c.bf16 %v2098_v58, %v2092_v57 }
 0x582   : > { %5205 = vmatprep.subr.bf16.mxu1 %v5204_v59 }
 0x583   : > { %5207 = vmatpush1.bf16.msra.mxu1 %v5206_v63  ;;  %v2104_v63 = vld [vmem:[#allocation18 + $0x2c8] sm:$0xff] }
 0x584   : > { %5172 = vmatpush3.bf16.msra.mxu0 %v5171_v62  ;;  %v2102_v62 = vld [vmem:[#allocation18 + $0x2b8] sm:$0xff]  ;;  %5241 = vmatprep.subr.bf16.mxu1 %v5240_v10  ;;  %v2123_v10 = vrot.slane %v7066_v9, %v1085_v27 }
 0x585   : > { %5173 = vmatprep.subr.bf16.mxu0 %v6251_v2 }
 0x588   : > { %5175 = vmatpush3.bf16.msra.mxu0 %v5174_v5  ;;  %v5236_v5 = vpack.c.bf16 %v2108_v0, %v2102_v62  ;;  %v2097_v62 = vld [vmem:[#allocation18 + $0x290] sm:$0xff]  ;;  %v2110_v0 = vld [vmem:[#allocation18 + $0x2f8] sm:$0xff] }
 0x589   : > { %5209 = vmatprep.subr.bf16.mxu0 %v5208_v7  ;;  %v5238_v7 = vpack.c.bf16 %v2107_v3, %v2101_v1  ;;  %v5266_v1 = vpack.c.bf16 %v2097_v62, %v2091_v61  ;;  %v5268_v3 = vpack.c.bf16 %v2110_v0, %v2104_v63 }
 0x58b   : > { %4733 = vmatmul.mubr.msk.f32.vlgmr.msra.gmra.mrb[4].mxu0 %vm1462_vm7, %v1921_v13 }
 0x58c   : > { %5211 = vmatpush1.bf16.msra.mxu0 %v5210_v12  ;;  %2277 = vmatprep.mubr.f32.mxu0 %v6253_v4  ;;  %v5684_v12 = vld [vmem:[#allocation24] sm:$0xff] }
 0x58d   : > { %5213 = vmatprep.subr.bf16.mxu0 %v5212_v15  ;;  %v1562_v13 = vrot.slane %v5684_v12, %v1561_v11  ;;  %v2127_v12 = vrot.slane %v7066_v9, %v1561_v11 }
 0x590   : > { %5215 = vmatpush1.bf16.msra.mxu0 %v5214_v20 }
 0x591   : > { %5217 = vmatprep.subr.bf16.mxu0 %v5216_v21  ;;  %v2032_v21 = vld [vmem:[#allocation18 + $0x88] sm:$0xff] }
 0x594   : > { %5219 = vmatpush1.bf16.msra.mxu0 %v5218_v26  ;;  %v5244_v26 = vpack.c.bf16 %v2038_v22, %v2032_v21 }
 0x595   : > { %5221 = vmatprep.subr.bf16.mxu0 %v5220_v28  ;;  %v2031_v28 = vld [vmem:[#allocation18 + $0x80] sm:$0xff] }
 0x596   : > { %v5246_v32 = vpack.c.bf16 %v2037_v29, %v2031_v28 }
 0x598   : > { %5223 = vmatpush1.bf16.msra.mxu0 %v5222_v33  ;;  %v5248_v33 = vpack.c.bf16 %v2050_v31, %v2044_v30 }
 0x599   : > { %5225 = vmatprep.subr.bf16.mxu0 %v5224_v34  ;;  %v2043_v34 = vld [vmem:[#allocation18 + $0xe0] sm:$0xff] }
 0x59a   : > { %v5250_v38 = vpack.c.bf16 %v2049_v35, %v2043_v34 }
 0x59c   : > { %5227 = vmatpush1.bf16.msra.mxu0 %v5226_v40  ;;  %v2055_v40 = vld [vmem:[#allocation18 + $0x140] sm:$0xff] }
 0x59d   : > { %5229 = vmatprep.subr.bf16.mxu0 %v5228_v53  ;;  %v2061_v53 = vld [vmem:[#allocation18 + $0x170] sm:$0xff] }
 0x5a0   : > { %5231 = vmatpush1.bf16.msra.mxu0 %v5230_v43  ;;  %v5254_v43 = vpack.c.bf16 %v2061_v53, %v2055_v40 }
 0x5a1   : > { %5233 = vmatprep.subr.bf16.mxu0 %v5232_v54  ;;  %v2079_v54 = vld [vmem:[#allocation18 + $0x200] sm:$0xff] }
 0x5a4   : > { %5235 = vmatpush1.bf16.msra.mxu0 %v5234_v55  ;;  %v2085_v55 = vld [vmem:[#allocation18 + $0x230] sm:$0xff] }
 0x5a5   : > { %5237 = vmatprep.subr.bf16.mxu0 %v5236_v5  ;;  %v5262_v59 = vpack.c.bf16 %v2085_v55, %v2079_v54  ;;  %v2103_v5 = vld [vmem:[#allocation18 + $0x2c0] sm:$0xff] }
 0x5a8   : > { %5239 = vmatpush1.bf16.msra.mxu0 %v5238_v7  ;;  %v2109_v7 = vld [vmem:[#allocation18 + $0x2f0] sm:$0xff] }
 0x5a9   : > { %5272 = vmatprep.subr.bf16.mxu0 %v6251_v2  ;;  %v5270_v8 = vpack.c.bf16 %v2109_v7, %v2103_v5 }
 0x65e   : > { %v2006_v15 = vpop.f32.mrb[4].mxu0 }
 0x65f   : > { %v5380_v16 = vadd.f32 %v2006_v15, %v1562_v13  ;;  %v4734_v17 = vpop.f32.mrb[5].mxu0 }
 0x661   : > { %vm2011_vm9 = vcmp.gt.f32.partialorder %v5380_v16, 0.0  ;;  %v2012_v20 = vmul.f32 0.1, %v5380_v16 }
 0x663   : > { %v2013_v23 = vsel %vm2011_vm9, %v5380_v16, %v2012_v20 }
 0x664   : > { %v7055_v25 = vadd.f32 %v2013_v23, %v6995_v36  ;;  %v2056_v36 = vld [vmem:[#allocation18 + $0x148] sm:$0xff] }
 0x665   : > { %v5252_v39 = vpack.c.bf16 %v2062_v37, %v2056_v36 }
 0x666   : > { %2207 = vmatmul.mubr.f32.vlgmr.msra.gmra.mrb[4].mxu1 %v7055_v25  ;;  %2278 = vmatmul.mubr.f32.vlgmr.msra.gmra.mrb[6].mxu0 %v7055_v25 }
 0x667   : > { %5243 = vmatpush1.bf16.msra.mxu1 %v5242_v24  ;;  %2348 = vmatprep.mubr.f32.mxu1 %v6253_v4 }
 0x668   : > { %5245 = vmatprep.subr.bf16.mxu1 %v5244_v26  ;;  %4767 = vmatprep.mubr.msk.f32.mxu0 %vm6252_vm0, %v6253_v4 }
 0x66b   : > { %5247 = vmatpush1.bf16.msra.mxu1 %v5246_v32 }
 0x66c   : > { %5249 = vmatprep.subr.bf16.mxu1 %v5248_v33 }
 0x66f   : > { %5251 = vmatpush1.bf16.msra.mxu1 %v5250_v38 }
 0x670   : > { %5253 = vmatprep.subr.bf16.mxu1 %v5252_v39 }
 0x673   : > { %5255 = vmatpush1.bf16.msra.mxu1 %v5254_v43 }
 0x674   : > { %5257 = vmatprep.subr.bf16.mxu1 %v5256_v44 }
 0x677   : > { %5259 = vmatpush1.bf16.msra.mxu1 %v5258_v48 }
 0x678   : > { %5261 = vmatprep.subr.bf16.mxu1 %v5260_v49 }
 0x67b   : > { %5263 = vmatpush1.bf16.msra.mxu1 %v5262_v59 }
 0x67c   : > { %5265 = vmatprep.subr.bf16.mxu1 %v5264_v60 }
 0x67f   : > { %5267 = vmatpush1.bf16.msra.mxu1 %v5266_v1 }
 0x680   : > { %5269 = vmatprep.subr.bf16.mxu1 %v5268_v3 }
 0x683   : > { %5271 = vmatpush1.bf16.msra.mxu1 %v5270_v8 }
 0x684   : > { %5296 = vmatprep.subr.bf16.mxu1 %v6251_v2 }
 0x686   : > { %2349 = vmatmul.mubr.f32.vlgmr.msra.gmra.mrb[6].mxu1 %v7055_v25 }
 0x687   : > { %4802 = vmatprep.mubr.msk.f32.mxu1 %vm6252_vm0, %v6253_v4 }
 0x739   : > { %v7074_v13 = vpop.f32.mrb[4].mxu1  ;;  %v2279_v15 = vpop.f32.mrb[6].mxu0 }
 0x73a   : > { %v2280_v16 = vadd.f32 %v2279_v15, %v2123_v10  ;;  %v7076_v17 = vpop.f32.mrb[5].mxu1  ;;  %v2281_v18 = vpop.f32.mrb[7].mxu0 }
 0x73b   : > { %v2282_v19 = vadd.f32 %v2281_v18, %v2127_v12 }
 0x73d   : > { %v5588_v20 = vpack.i.bf16 %v2282_v19, %v2280_v16 }
 0x73f   : > { %5589 = vxpose.xlu0.b32.start.end [1/1] (short) %v5588_v20, 128 }
 0x759   : > { %v7078_v21 = vpop.f32.mrb[6].mxu1 }
 0x75a   : > { %v7080_v22 = vpop.f32.mrb[7].mxu1 }
 0x7bf   : > { %v5590_v23 = vpop.trf.xlu0 }
 0x7c0   : > { %v5594_v27 = vunpack.i.h.bf16 %v5590_v23  ;;  %v5591_v24 = vunpack.i.l.bf16 %v5590_v23 }
 0x7c3   : > { %v5595_v26 = vpop.trf.xlu0 }
 0x7c4   : > { %v5599_v28 = vunpack.i.h.bf16 %v5595_v26  ;;  %v5596_v11 = vunpack.i.l.bf16 %v5595_v26 }
 0x7c6   : > { %v5273_v29 = vpack.c.bf16 %v5596_v11, %v5591_v24  ;;  %v5297_v30 = vpack.c.bf16 %v5599_v28, %v5594_v27 }
 0x7c7   : > { %v5600_v31 = vpop.trf.xlu0 }
 0x7c8   : > { %5274 = vmatpush3.bf16.msra.mxu0 %v5273_v29  ;;  %5298 = vmatpush3.bf16.msra.mxu1 %v5297_v30  ;;  %v5604_v32 = vunpack.i.h.bf16 %v5600_v31  ;;  %v5601_v33 = vunpack.i.l.bf16 %v5600_v31  ;;  %v2115_v29 = vrot.slane %v7066_v9, %v6907_v52  ;;  %v2119_v30 = vrot.slane %v7066_v9, %v1008_v6 }
 0x7c9   : > { %5275 = vmatprep.subr.bf16.mxu0 %v6251_v2  ;;  %5299 = vmatprep.subr.bf16.mxu1 %v6251_v2 }
 0x7cb   : > { %v5605_v34 = vpop.trf.xlu0 }
 0x7cc   : > { %v5609_v35 = vunpack.i.h.bf16 %v5605_v34  ;;  %v5606_v36 = vunpack.i.l.bf16 %v5605_v34 }
 0x7ce   : > { %v5276_v37 = vpack.c.bf16 %v5606_v36, %v5601_v33  ;;  %v5300_v38 = vpack.c.bf16 %v5609_v35, %v5604_v32  ;;  %v2209_v36 = vadd.f32 %v7074_v13, %v2115_v29 }
 0x7cf   : > { %v5610_v39 = vpop.trf.xlu0 }
 0x7d0   : > { %5277 = vmatpush3.bf16.msra.mxu0 %v5276_v37  ;;  %5301 = vmatpush3.bf16.msra.mxu1 %v5300_v38  ;;  %v5614_v40 = vunpack.i.h.bf16 %v5610_v39  ;;  %v5611_v53 = vunpack.i.l.bf16 %v5610_v39  ;;  %v2211_v37 = vadd.f32 %v7076_v17, %v2119_v30 }
 0x7d1   : > { %5278 = vmatprep.subr.bf16.mxu0 %v6251_v2  ;;  %5302 = vmatprep.subr.bf16.mxu1 %v6251_v2 }
 0x7d2   : > { %v2356_v6 = vmul.f32 0.17677669, %v2211_v37 }
 0x7d3   : > { %v5615_v41 = vpop.trf.xlu0 }
 0x7d4   : > { %v5619_v42 = vunpack.i.h.bf16 %v5615_v41  ;;  %v5616_v43 = vunpack.i.l.bf16 %v5615_v41 }
 0x7d6   : > { %v5279_v44 = vpack.c.bf16 %v5616_v43, %v5611_v53  ;;  %v5303_v45 = vpack.c.bf16 %v5619_v42, %v5614_v40  ;;  %v2355_v40 = vmul.f32 0.17677669, %v2209_v36  ;;  %v7105_v53 = vld [vmem:[%s675_s20] sm:$0x1]  ;;  %s6133_s20 = scalar_lea.vmem %s6132_s29, 32 }
 0x7d7   : > { %v5620_v14 = vpop.trf.xlu0  ;;  %v2357_v41 = vmul.f32 -1e+30, %v7105_v53  ;;  %p6135_p6 = scmp.lt.s32.totalorder %s6133_s20, %s6127_s25 }
 0x7d8   : > { %5280 = vmatpush3.bf16.msra.mxu0 %v5279_v44  ;;  %5304 = vmatpush3.bf16.msra.mxu1 %v5303_v45  ;;  %v5624_v46 = vunpack.i.h.bf16 %v5620_v14  ;;  %v5621_v47 = vunpack.i.l.bf16 %v5620_v14 }
 0x7d9   : > { %5281 = vmatprep.subr.bf16.mxu0 %v6251_v2  ;;  %5305 = vmatprep.subr.bf16.mxu1 %v6251_v2  ;;  %v2362_v42 = vrot.slane %v2357_v41, %v6907_v52  ;;  %p6136_p10 = por %p6135_p6, %p6134_p1 }
 0x7db   : > { %v5625_v48 = vpop.trf.xlu0  ;;  %p6137_p7 = pnand %p6136_p10, %p6130_p0 }
 0x7dc   : > { %v5629_v49 = vunpack.i.h.bf16 %v5625_v48  ;;  %v5626_v54 = vunpack.i.l.bf16 %v5625_v48 }
 0x7de   : > { %v5282_v55 = vpack.c.bf16 %v5626_v54, %v5621_v47  ;;  %v5306_v57 = vpack.c.bf16 %v5629_v49, %v5624_v46 }
 0x7df   : > { %v5630_v58 = vpop.trf.xlu0 }
 0x7e0   : > { %5283 = vmatpush3.bf16.msra.mxu0 %v5282_v55  ;;  %5307 = vmatpush3.bf16.msra.mxu1 %v5306_v57  ;;  %v5634_v59 = vunpack.i.h.bf16 %v5630_v58  ;;  %v5631_v60 = vunpack.i.l.bf16 %v5630_v58 }
 0x7e1   : > { %5284 = vmatprep.subr.bf16.mxu0 %v6251_v2  ;;  %5308 = vmatprep.subr.bf16.mxu1 %v6251_v2 }
 0x7e3   : > { %v5635_v61 = vpop.trf.xlu0 }
 0x7e4   : > { %v5639_v62 = vunpack.i.h.bf16 %v5635_v61  ;;  %v5636_v63 = vunpack.i.l.bf16 %v5635_v61 }
 0x7e6   : > { %v5285_v0 = vpack.c.bf16 %v5636_v63, %v5631_v60  ;;  %v5309_v1 = vpack.c.bf16 %v5639_v62, %v5634_v59  ;;  %v2130_v62 = vsub.s32 4, %v6904_v51 }
 0x7e7   : > { %v5640_v3 = vpop.trf.xlu0 }
 0x7e8   : > { %5286 = vmatpush3.bf16.msra.mxu0 %v5285_v0  ;;  %5310 = vmatpush3.bf16.msra.mxu1 %v5309_v1  ;;  %v5644_v5 = vunpack.i.h.bf16 %v5640_v3  ;;  %v5641_v7 = vunpack.i.l.bf16 %v5640_v3  ;;  %v2131_v63 = vrot.slane %v7066_v9, %v2130_v62  ;;  %v2134_v1 = vsub.s32 5, %v6904_v51 }
 0x7e9   : > { %5287 = vmatprep.subr.bf16.mxu0 %v6251_v2  ;;  %5311 = vmatprep.subr.bf16.mxu1 %v6251_v2 }
 0x7ea   : > { %v2351_v0 = vadd.f32 %v7078_v21, %v2131_v63  ;;  %v2135_v3 = vrot.slane %v7066_v9, %v2134_v1 }
 0x7eb   : > { %v5645_v8 = vpop.trf.xlu0 }
 0x7ec   : > { %v5649_v10 = vunpack.i.h.bf16 %v5645_v8  ;;  %v5646_v12 = vunpack.i.l.bf16 %v5645_v8 }
 0x7ee   : > { %v5288_v15 = vpack.c.bf16 %v5646_v12, %v5641_v7  ;;  %v5312_v16 = vpack.c.bf16 %v5649_v10, %v5644_v5  ;;  %v2353_v5 = vadd.f32 %v7080_v22, %v2135_v3 }
 0x7ef   : > { %v5650_v18 = vpop.trf.xlu0 }
 0x7f0   : > { %5289 = vmatpush3.bf16.msra.mxu0 %v5288_v15  ;;  %5313 = vmatpush3.bf16.msra.mxu1 %v5312_v16  ;;  %v5654_v19 = vunpack.i.h.bf16 %v5650_v18  ;;  %v5651_v20 = vunpack.i.l.bf16 %v5650_v18 }
 0x7f1   : > { %5290 = vmatprep.subr.bf16.mxu0 %v6251_v2  ;;  %5314 = vmatprep.subr.bf16.mxu1 %v6251_v2 }
 0x7f3   : > { %v5655_v23 = vpop.trf.xlu0 }
 0x7f4   : > { %v5659_v27 = vunpack.i.h.bf16 %v5655_v23  ;;  %v5656_v24 = vunpack.i.l.bf16 %v5655_v23 }
 0x7f6   : > { %v5291_v26 = vpack.c.bf16 %v5656_v24, %v5651_v20  ;;  %v5315_v28 = vpack.c.bf16 %v5659_v27, %v5654_v19 }
 0x7f7   : > { %v5660_v11 = vpop.trf.xlu0 }
 0x7f8   : > { %5292 = vmatpush3.bf16.msra.mxu0 %v5291_v26  ;;  %5316 = vmatpush3.bf16.msra.mxu1 %v5315_v28  ;;  %v5664_v31 = vunpack.i.h.bf16 %v5660_v11  ;;  %v5661_v32 = vunpack.i.l.bf16 %v5660_v11 }
 0x7f9   : > { %5293 = vmatprep.subr.bf16.mxu0 %v6251_v2  ;;  %5317 = vmatprep.subr.bf16.mxu1 %v6251_v2 }
 0x7fb   : > { %v5665_v33 = vpop.trf.xlu0 }
 0x7fc   : > { %v5669_v34 = vunpack.i.h.bf16 %v5665_v33  ;;  %v5666_v35 = vunpack.i.l.bf16 %v5665_v33 }
 0x7fe   : > { %v5294_v38 = vpack.c.bf16 %v5666_v35, %v5661_v32  ;;  %v5318_v39 = vpack.c.bf16 %v5669_v34, %v5664_v31 }
 0x800   : > { %5295 = vmatpush3.bf16.msra.mxu0 %v5294_v38  ;;  %5319 = vmatpush3.bf16.msra.mxu1 %v5318_v39 }
 0x803   : > { %4768 = vmatmul.mubr.f32.vlgmr.msra.gmra.mrb[8].mxu0 %v2355_v40  ;;  %4803 = vmatmul.mubr.f32.vlgmr.msra.gmra.mrb[8].mxu1 %v2356_v6 }
 0x8d6   : > { %v2494_v43 = vpop.f32.mrb[8].mxu0  ;;  %v2564_v44 = vpop.f32.mrb[8].mxu1 }
 0x8d7   : > { %v2495_v13 = vadd.f32 %v2494_v43, %v2362_v42  ;;  %v2565_v17 = vadd.f32 %v2564_v44, %v2362_v42  ;;  %v4769_v45 = vpop.f32.mrb[9].mxu0  ;;  %v4804_v14 = vpop.f32.mrb[9].mxu1 }
 0x8d8   : > { %v3243_v14 = vld [vmem:[#allocation20 + $0x80] sm:$0xff] }
 0x8d9   : > { %v2572_v46 = vsel %vm2568_vm10, %v2565_v17, -inf  ;;  %v2569_v47 = vsel %vm2568_vm10, %v2495_v13, -inf }
 0x8da   : > { %2573 = vmax.xlane.f32.xlu1 %v2572_v46  ;;  %2570 = vmax.xlane.f32.xlu0 %v2569_v47  ;;  %v3244_v46 = vld [vmem:[#allocation20 + $0x88] sm:$0xff]  ;;  %v3227_v47 = vld [vmem:[#allocation20] sm:$0xff] }
 0x967   : > { %v2574_v48 = vpop.xlane.xlu1 %2573  ;;  %v2571_v49 = vpop.xlane.xlu0 %2570 }
 0x968   : > { %v2576_v54 = vsub.f32 %v2565_v17, %v2574_v48  ;;  %v2575_v55 = vsub.f32 %v2495_v13, %v2571_v49  ;;  %v5320_v48 = vpack.c.bf16 %v3244_v46, %v3243_v14  ;;  %v3228_v49 = vld [vmem:[#allocation20 + $0x8] sm:$0xff]  ;;  %v3255_v46 = vld [vmem:[#allocation20 + $0xe0] sm:$0xff] }
 0x96a   : > { %v2577_v57 = vmul.f32 1.442695, %v2575_v55  ;;  %v2579_v58 = vmul.f32 1.442695, %v2576_v54  ;;  %v3245_v54 = vld [vmem:[#allocation20 + $0x90] sm:$0xff]  ;;  %v3246_v55 = vld [vmem:[#allocation20 + $0x98] sm:$0xff] }
 0x96c   : > { %5670 = vpow2.f32 %v2577_v57 }
 0x96d   : > { %5672 = vpow2.f32 %v2579_v58  ;;  %v5322_v58 = vpack.c.bf16 %v3228_v49, %v3227_v47  ;;  %v3256_v47 = vld [vmem:[#allocation20 + $0xe8] sm:$0xff] }
 0x96e   : > { %v5344_v49 = vpack.c.bf16 %v3256_v47, %v3255_v46 }
 0x976   : > { %v5671_v52 = vpop.eup %5670 }
 0x977   : > { %v2581_v59 = vsel %vm2568_vm10, %v5671_v52, 0.0  ;;  %v5673_v60 = vpop.eup %5672 }
 0x978   : > { %2582 = vadd.xlane.f32.xlu1 %v2581_v59  ;;  %v2584_v61 = vsel %vm2568_vm10, %v5673_v60, 0.0  ;;  %v3229_v59 = vld [vmem:[#allocation20 + $0x10] sm:$0xff] }
 0x97c   : > { %2585 = vadd.xlane.f32.xlu1 %v2584_v61  ;;  %v3247_v61 = vld [vmem:[#allocation20 + $0xa0] sm:$0xff] }
 0x9af   : > { %2591 = vxpose.xlu1.b32.start.end [1/1] (short) %v2351_v0, 128  ;;  %v3248_v0 = vld [vmem:[#allocation20 + $0xa8] sm:$0xff] }
 0x9ec   : > { %2623 = vxpose.xlu1.b32.start.end [1/1] (short) %v2353_v5, 128  ;;  %v5328_v5 = vpack.c.bf16 %v3248_v0, %v3247_v61 }
 0xa05   : > { %v2583_v7 = vpop.xlane.xlu1 %2582 }
 0xa06   : > { %5674 = vrcp.f32 %v2583_v7  ;;  %v3231_v7 = vld [vmem:[#allocation20 + $0x20] sm:$0xff] }
 0xa09   : > { %v2586_v8 = vpop.xlane.xlu1 %2585 }
 0xa0a   : > { %5676 = vrcp.f32 %v2586_v8  ;;  %v3232_v8 = vld [vmem:[#allocation20 + $0x28] sm:$0xff] }
 0xa10   : > { %v5675_v10 = vpop.eup %5674 }
 0xa11   : > { %v2589_v12 = vmul.f32 %v5675_v10, %v5671_v52  ;;  %v5324_v52 = vpack.c.bf16 %v3246_v55, %v3245_v54  ;;  %v3249_v10 = vld [vmem:[#allocation20 + $0xb0] sm:$0xff]  ;;  %v3240_v54 = vld [vmem:[#allocation20 + $0x68] sm:$0xff] }
 0xa12   : > { %v3257_v55 = vld [vmem:[#allocation20 + $0xf0] sm:$0xff] }
 0xa13   : > { %4805 = vmatprep.subr.msk.mxu0 %vm2568_vm10, %v2589_v12 }
 0xa14   : > { %v5677_v15 = vpop.eup %5676  ;;  %4806 = vmatpush3.xpose.msk.msra.mxu0 %vm2568_vm10, %v2589_v12  ;;  %v3250_v12 = vld [vmem:[#allocation20 + $0xb8] sm:$0xff] }
 0xa15   : > { %v2590_v21 = vmul.f32 %v5677_v15, %v5673_v60  ;;  %v3230_v60 = vld [vmem:[#allocation20 + $0x18] sm:$0xff]  ;;  %5321 = vmatprep.subr.bf16.mxu0 %v5320_v48  ;;  %v5330_v15 = vpack.c.bf16 %v3232_v8, %v3231_v7  ;;  %v3239_v48 = vld [vmem:[#allocation20 + $0x60] sm:$0xff] }
 0xa16   : > { %v5326_v3 = vpack.c.bf16 %v3230_v60, %v3229_v59  ;;  %v3241_v59 = vld [vmem:[#allocation20 + $0x70] sm:$0xff]  ;;  %v3242_v60 = vld [vmem:[#allocation20 + $0x78] sm:$0xff] }
 0xa17   : > { %4831 = vmatprep.subr.msk.mxu1 %vm2568_vm10, %v2590_v21  ;;  %v5350_v61 = vpack.c.bf16 %v3242_v60, %v3241_v59 }
 0xa18   : > { %4832 = vmatpush3.xpose.msk.msra.mxu1 %vm2568_vm10, %v2590_v21  ;;  %v5332_v21 = vpack.c.bf16 %v3250_v12, %v3249_v10 }
 0xa19   : > { %5352 = vmatprep.subr.bf16.mxu1 %v6251_v2 }
 0xa2f   : > { %v2607_v9 = vpop.trf.xlu1 }
 0xa30   : > { %4807 = vmatprep.mubr.msk.f32.mxu0 %vm2568_vm10, %v2607_v9 }
 0xa33   : > { %v2608_v22 = vpop.trf.xlu1 }
 0xa34   : > { %4808 = vmatmul.mubr.msk.f32.vlgmr.msra.gmra.mrb[10].mxu0 %vm2568_vm10, %v2608_v22 }
 0xa35   : > { %5323 = vmatpush3.bf16.msra.mxu0 %v5322_v58  ;;  %v5346_v58 = vpack.c.bf16 %v3240_v54, %v3239_v48 }
 0xa36   : > { %5325 = vmatprep.subr.bf16.mxu0 %v5324_v52 }
 0xa37   : > { %v2609_v16 = vpop.trf.xlu1 }
 0xa38   : > { %4810 = vmatprep.mubr.msk.f32.mxu0 %vm2568_vm10, %v2609_v16 }
 0xa39   : > { %5327 = vmatpush3.bf16.msra.mxu0 %v5326_v3 }
 0xa3a   : > { %5329 = vmatprep.subr.bf16.mxu0 %v5328_v5 }
 0xa3b   : > { %v2610_v18 = vpop.trf.xlu1 }
 0xa3c   : > { %4811 = vmatmul.mubr.msk.f32.gmra.mrb[12].mxu0 %vm2568_vm10, %v2610_v18 }
 0xa3d   : > { %5331 = vmatpush3.bf16.msra.mxu0 %v5330_v15  ;;  %v891_v15 = vsel %vm890_vm11, %v6913_v56, -inf }
 0xa3e   : > { %5333 = vmatprep.subr.bf16.mxu0 %v5332_v21 }
 0xa3f   : > { %v2611_v19 = vpop.trf.xlu1 }
 0xa40   : > { %4813 = vmatprep.mubr.msk.f32.mxu0 %vm2568_vm10, %v2611_v19 }
 0xa43   : > { %v2612_v20 = vpop.trf.xlu1 }
 0xa44   : > { %4814 = vmatmul.mubr.msk.f32.gmra.mrb[14].mxu0 %vm2568_vm10, %v2612_v20 }
 0xa47   : > { %v2613_v23 = vpop.trf.xlu1 }
 0xa48   : > { %4816 = vmatprep.mubr.msk.f32.mxu0 %vm2568_vm10, %v2613_v23 }
 0xa4b   : > { %v2614_v27 = vpop.trf.xlu1 }
 0xa4c   : > { %4817 = vmatmul.mubr.msk.f32.gmra.mrb[16].mxu0 %vm2568_vm10, %v2614_v27 }
 0xa4f   : > { %v2615_v24 = vpop.trf.xlu1 }
 0xa50   : > { %4819 = vmatprep.mubr.msk.f32.mxu0 %vm2568_vm10, %v2615_v24 }
 0xa53   : > { %v2616_v26 = vpop.trf.xlu1 }
 0xa54   : > { %4820 = vmatmul.mubr.msk.f32.gmra.mrb[18].mxu0 %vm2568_vm10, %v2616_v26 }
 0xa57   : > { %v2617_v28 = vpop.trf.xlu1 }
 0xa58   : > { %4822 = vmatprep.mubr.msk.f32.mxu0 %vm2568_vm10, %v2617_v28 }
 0xa5b   : > { %v2618_v11 = vpop.trf.xlu1 }
 0xa5c   : > { %4823 = vmatmul.mubr.msk.f32.gmra.mrb[20].mxu0 %vm2568_vm10, %v2618_v11 }
 0xa5f   : > { %v2619_v29 = vpop.trf.xlu1 }
 0xa60   : > { %4825 = vmatprep.mubr.msk.f32.mxu0 %vm2568_vm10, %v2619_v29 }
 0xa63   : > { %v2620_v30 = vpop.trf.xlu1 }
 0xa64   : > { %4826 = vmatmul.mubr.msk.f32.gmra.mrb[22].mxu0 %vm2568_vm10, %v2620_v30 }
 0xa67   : > { %v2621_v31 = vpop.trf.xlu1 }
 0xa68   : > { %4828 = vmatprep.mubr.msk.f32.mxu0 %vm2568_vm10, %v2621_v31 }
 0xa6b   : > { %v2622_v32 = vpop.trf.xlu1 }
 0xa6c   : > { %4829 = vmatmul.mubr.msk.f32.gmra.mrb[24].mxu0 %vm2568_vm10, %v2622_v32  ;;  %v3233_v32 = vld [vmem:[#allocation20 + $0x30] sm:$0xff] }
 0xa6f   : > { %v2639_v33 = vpop.trf.xlu1 }
 0xa70   : > { %4833 = vmatprep.mubr.msk.f32.mxu1 %vm2568_vm10, %v2639_v33  ;;  %v3234_v33 = vld [vmem:[#allocation20 + $0x38] sm:$0xff] }
 0xa73   : > { %v2640_v34 = vpop.trf.xlu1 }
 0xa74   : > { %4834 = vmatmul.mubr.msk.f32.vlgmr.msra.gmra.mrb[10].mxu1 %vm2568_vm10, %v2640_v34 }
 0xa77   : > { %v2641_v35 = vpop.trf.xlu1 }
 0xa78   : > { %4836 = vmatprep.mubr.msk.f32.mxu1 %vm2568_vm10, %v2641_v35  ;;  %v5334_v35 = vpack.c.bf16 %v3234_v33, %v3233_v32 }
 0xa7a   : > { %5335 = vmatpush3.bf16.msra.mxu0 %v5334_v35 }
 0xa7b   : > { %v2642_v36 = vpop.trf.xlu1 }
 0xa7c   : > { %4837 = vmatmul.mubr.msk.f32.gmra.mrb[12].mxu1 %vm2568_vm10, %v2642_v36  ;;  %v3251_v36 = vld [vmem:[#allocation20 + $0xc0] sm:$0xff] }
 0xa7f   : > { %v2643_v37 = vpop.trf.xlu1 }
 0xa80   : > { %4839 = vmatprep.mubr.msk.f32.mxu1 %vm2568_vm10, %v2643_v37  ;;  %v3252_v37 = vld [vmem:[#allocation20 + $0xc8] sm:$0xff] }
 0xa83   : > { %v2644_v38 = vpop.trf.xlu1 }
 0xa84   : > { %4840 = vmatmul.mubr.msk.f32.gmra.mrb[14].mxu1 %vm2568_vm10, %v2644_v38  ;;  %v5336_v38 = vpack.c.bf16 %v3252_v37, %v3251_v36 }
 0xa86   : > { %5337 = vmatprep.subr.bf16.mxu0 %v5336_v38 }
 0xa87   : > { %v2645_v39 = vpop.trf.xlu1 }
 0xa88   : > { %4842 = vmatprep.mubr.msk.f32.mxu1 %vm2568_vm10, %v2645_v39  ;;  %v3235_v39 = vld [vmem:[#allocation20 + $0x40] sm:$0xff] }
 0xa8b   : > { %v2646_v40 = vpop.trf.xlu1 }
 0xa8c   : > { %4843 = vmatmul.mubr.msk.f32.gmra.mrb[16].mxu1 %vm2568_vm10, %v2646_v40  ;;  %v3236_v40 = vld [vmem:[#allocation20 + $0x48] sm:$0xff] }
 0xa8f   : > { %v2647_v6 = vpop.trf.xlu1 }
 0xa90   : > { %4845 = vmatprep.mubr.msk.f32.mxu1 %vm2568_vm10, %v2647_v6  ;;  %v5338_v6 = vpack.c.bf16 %v3236_v40, %v3235_v39 }
 0xa92   : > { %5339 = vmatpush3.bf16.msra.mxu0 %v5338_v6 }
 0xa93   : > { %v2648_v41 = vpop.trf.xlu1 }
 0xa94   : > { %4846 = vmatmul.mubr.msk.f32.gmra.mrb[18].mxu1 %vm2568_vm10, %v2648_v41  ;;  %v3253_v41 = vld [vmem:[#allocation20 + $0xd0] sm:$0xff] }
 0xa97   : > { %v2649_v42 = vpop.trf.xlu1 }
 0xa98   : > { %4848 = vmatprep.mubr.msk.f32.mxu1 %vm2568_vm10, %v2649_v42  ;;  %v3254_v42 = vld [vmem:[#allocation20 + $0xd8] sm:$0xff] }
 0xa9b   : > { %v2650_v43 = vpop.trf.xlu1 }
 0xa9c   : > { %4849 = vmatmul.mubr.msk.f32.gmra.mrb[20].mxu1 %vm2568_vm10, %v2650_v43 }
 0xa9f   : > { %v2651_v44 = vpop.trf.xlu1 }
 0xaa0   : > { %4851 = vmatprep.mubr.msk.f32.mxu1 %vm2568_vm10, %v2651_v44  ;;  %v5340_v44 = vpack.c.bf16 %v3254_v42, %v3253_v41 }
 0xaa2   : > { %5341 = vmatprep.subr.bf16.mxu0 %v5340_v44 }
 0xaa3   : > { %v2652_v13 = vpop.trf.xlu1 }
 0xaa4   : > { %4852 = vmatmul.mubr.msk.f32.gmra.mrb[22].mxu1 %vm2568_vm10, %v2652_v13  ;;  %v3237_v13 = vld [vmem:[#allocation20 + $0x50] sm:$0xff] }
 0xaa7   : > { %v2653_v17 = vpop.trf.xlu1 }
 0xaa8   : > { %4854 = vmatprep.mubr.msk.f32.mxu1 %vm2568_vm10, %v2653_v17  ;;  %v3238_v17 = vld [vmem:[#allocation20 + $0x58] sm:$0xff] }
 0xaa9   : > { %v5342_v14 = vpack.c.bf16 %v3238_v17, %v3237_v13 }
 0xaab   : > { %v2654_v45 = vpop.trf.xlu1  ;;  %5343 = vmatpush3.bf16.msra.mxu0 %v5342_v14 }
 0xaac   : > { %4855 = vmatmul.mubr.msk.f32.gmra.mrb[24].mxu1 %vm2568_vm10, %v2654_v45  ;;  %5345 = vmatprep.subr.bf16.mxu0 %v5344_v49 }
 0xaad   : > { %4889 = vmatprep.mubr.msk.f32.mxu1 %vm6252_vm0, %v6253_v4 }
 0xaaf   : > { %5347 = vmatpush3.bf16.msra.mxu0 %v5346_v58 }
 0xb07   : > { %v4809_v57 = vpop.f32.mrb[10].mxu0 }
 0xb08   : > { %v2772_v63 = vpop.f32.mrb[11].mxu0 }
 0xb09   : > { %3047 = vxpose.xlu0.b32.start [1/16] (narrow) %v2772_v63, 8 }
 0xb0d   : > { %3048 = vxpose.xlu0.b32.cont [2/16] (narrow) %v4809_v57, 8  ;;  %v3258_v57 = vld [vmem:[#allocation20 + $0xf8] sm:$0xff] }
 0xb0e   : > { %v5348_v52 = vpack.c.bf16 %v3258_v57, %v3257_v55 }
 0xb0f   : > { %v4812_v9 = vpop.f32.mrb[12].mxu0 }
 0xb10   : > { %v2782_v22 = vpop.f32.mrb[13].mxu0  ;;  %5349 = vmatprep.subr.bf16.mxu0 %v5348_v52 }
 0xb11   : > { %3049 = vxpose.xlu0.b32.cont [3/16] (narrow) %v2782_v22, 8  ;;  %5351 = vmatpush3.bf16.msra.mxu0 %v5350_v61 }
 0xb12   : > { %4892 = vmatprep.subr.mxu0 %v6253_v4 }
 0xb15   : > { %3050 = vxpose.xlu0.b32.cont [4/16] (narrow) %v4812_v9, 8 }
 0xb17   : > { %v4815_v16 = vpop.f32.mrb[14].mxu0 }
 0xb18   : > { %v2792_v18 = vpop.f32.mrb[15].mxu0 }
 0xb19   : > { %3051 = vxpose.xlu0.b32.cont [5/16] (narrow) %v2792_v18, 8  ;;  %v3335_v18 = vld [vmem:[#allocation21] sm:$0xff] }
 0xb1d   : > { %3052 = vxpose.xlu0.b32.cont [6/16] (narrow) %v4815_v16, 8 }
 0xb1f   : > { %v4818_v19 = vpop.f32.mrb[16].mxu0 }
 0xb20   : > { %v2802_v20 = vpop.f32.mrb[17].mxu0 }
 0xb21   : > { %3053 = vxpose.xlu0.b32.cont [7/16] (narrow) %v2802_v20, 8  ;;  %v3337_v20 = vld [vmem:[#allocation21 + $0x10] sm:$0xff] }
 0xb25   : > { %3054 = vxpose.xlu0.b32.cont [8/16] (narrow) %v4818_v19, 8  ;;  %v3336_v19 = vld [vmem:[#allocation21 + $0x8] sm:$0xff] }
 0xb27   : > { %v4821_v23 = vpop.f32.mrb[18].mxu0 }
 0xb28   : > { %v2812_v27 = vpop.f32.mrb[19].mxu0 }
 0xb29   : > { %3055 = vxpose.xlu0.b32.cont [9/16] (narrow) %v2812_v27, 8  ;;  %v3338_v27 = vld [vmem:[#allocation21 + $0x18] sm:$0xff] }
 0xb2d   : > { %3056 = vxpose.xlu0.b32.cont [10/16] (narrow) %v4821_v23, 8  ;;  %v5353_v23 = vpack.c.bf16 %v3336_v19, %v3335_v18  ;;  %v3343_v18 = vld [vmem:[#allocation21 + $0x40] sm:$0xff]  ;;  %v3344_v19 = vld [vmem:[#allocation21 + $0x48] sm:$0xff] }
 0xb2f   : > { %v4824_v24 = vpop.f32.mrb[20].mxu0  ;;  %5354 = vmatpush3.bf16.msra.mxu1 %v5353_v23  ;;  %v3345_v23 = vld [vmem:[#allocation21 + $0x50] sm:$0xff] }
 0xb30   : > { %v2822_v26 = vpop.f32.mrb[21].mxu0  ;;  %5355 = vmatprep.subr.bf16.mxu1 %v6251_v2 }
 0xb31   : > { %3057 = vxpose.xlu0.b32.cont [11/16] (narrow) %v2822_v26, 8  ;;  %v6254_v26 = vmov 1983009808  }
 0xb35   : > { %3058 = vxpose.xlu0.b32.cont [12/16] (narrow) %v4824_v24, 8  ;;  %v5356_v24 = vpack.c.bf16 %v3338_v27, %v3337_v20  ;;  %v5365_v20 = vpack.c.bf16 %v3344_v19, %v3343_v18  ;;  %v3346_v27 = vld [vmem:[#allocation21 + $0x58] sm:$0xff] }
 0xb37   : > { %v4827_v28 = vpop.f32.mrb[22].mxu0  ;;  %5357 = vmatpush3.bf16.msra.mxu1 %v5356_v24  ;;  %v5368_v24 = vpack.c.bf16 %v3346_v27, %v3345_v23 }
 0xb38   : > { %v2832_v11 = vpop.f32.mrb[23].mxu0  ;;  %5358 = vmatprep.subr.bf16.mxu1 %v6251_v2 }
 0xb39   : > { %3059 = vxpose.xlu0.b32.cont [13/16] (narrow) %v2832_v11, 8 }
 0xb3d   : > { %3060 = vxpose.xlu0.b32.cont [14/16] (narrow) %v4827_v28, 8  ;;  %v3113_v28 = vunpack.c.l.s4 %v6254_v26  ;;  %v3347_v26 = vld [vmem:[#allocation21 + $0x60] sm:$0xff] }
 0xb3f   : > { %v4830_v29 = vpop.f32.mrb[24].mxu0  ;;  %v3114_v11 = vunpack.c.0.s8 %v3113_v28  ;;  %v3348_v28 = vld [vmem:[#allocation21 + $0x68] sm:$0xff] }
 0xb40   : > { %v2842_v30 = vpop.f32.mrb[25].mxu0 }
 0xb41   : > { %3061 = vxpose.xlu0.b32.cont [15/16] (narrow) %v2842_v30, 8  ;;  %v3117_v32 = vsub.s32 %v3114_v11, %v6904_v51  ;;  %v5371_v11 = vpack.c.bf16 %v3348_v28, %v3347_v26 }
 0xb45   : > { %3062 = vxpose.xlu0.b32.end [16/16] (narrow) %v4830_v29, 8  ;;  %v6255_v29 = vmov 1934713408  }
 0xb46   : > { %v3144_v30 = vunpack.c.l.s4 %v6255_v29  ;;  %v3349_v29 = vld [vmem:[#allocation21 + $0x70] sm:$0xff] }
 0xb47   : > { %v4835_v31 = vpop.f32.mrb[10].mxu1 }
 0xb48   : > { %v2968_v34 = vpop.f32.mrb[11].mxu1  ;;  %v3145_v33 = vunpack.c.0.s8 %v3144_v30  ;;  %v3350_v30 = vld [vmem:[#allocation21 + $0x78] sm:$0xff] }
 0xb49   : > { %3079 = vxpose.xlu1.b32.start [1/16] (narrow) %v2968_v34, 8 }
 0xb4a   : > { %v3148_v39 = vsub.s32 %v3145_v33, %v6904_v51 }
 0xb4d   : > { %3080 = vxpose.xlu1.b32.cont [2/16] (narrow) %v4835_v31, 8 }
 0xb4f   : > { %v4838_v43 = vpop.f32.mrb[12].mxu1 }
 0xb50   : > { %v2978_v45 = vpop.f32.mrb[13].mxu1 }
 0xb51   : > { %3081 = vxpose.xlu1.b32.cont [3/16] (narrow) %v2978_v45, 8 }
 0xb55   : > { %3082 = vxpose.xlu1.b32.cont [4/16] (narrow) %v4838_v43, 8 }
 0xb57   : > { %v4841_v63 = vpop.f32.mrb[14].mxu1 }
 0xb58   : > { %v2988_v0 = vpop.f32.mrb[15].mxu1 }
 0xb59   : > { %3083 = vxpose.xlu1.b32.cont [5/16] (narrow) %v2988_v0, 8 }
 0xb5d   : > { %3084 = vxpose.xlu1.b32.cont [6/16] (narrow) %v4841_v63, 8 }
 0xb5f   : > { %v4844_v3 = vpop.f32.mrb[16].mxu1 }
 0xb60   : > { %v2998_v5 = vpop.f32.mrb[17].mxu1 }
 0xb61   : > { %3085 = vxpose.xlu1.b32.cont [7/16] (narrow) %v2998_v5, 8 }
 0xb65   : > { %3086 = vxpose.xlu1.b32.cont [8/16] (narrow) %v4844_v3, 8 }
 0xb67   : > { %v4847_v7 = vpop.f32.mrb[18].mxu1 }
 0xb68   : > { %v3008_v8 = vpop.f32.mrb[19].mxu1 }
 0xb69   : > { %3087 = vxpose.xlu1.b32.cont [9/16] (narrow) %v3008_v8, 8 }
 0xb6d   : > { %3088 = vxpose.xlu1.b32.cont [10/16] (narrow) %v4847_v7, 8 }
 0xb6f   : > { %v4850_v10 = vpop.f32.mrb[20].mxu1 }
 0xb70   : > { %v3018_v12 = vpop.f32.mrb[21].mxu1 }
 0xb71   : > { %3089 = vxpose.xlu1.b32.cont [11/16] (narrow) %v3018_v12, 8  ;;  %v3339_v12 = vld [vmem:[#allocation21 + $0x20] sm:$0xff] }
 0xb72   : > { %892 = vmax.xlane.f32.xlu0 %v891_v15  ;;  %v3340_v15 = vld [vmem:[#allocation21 + $0x28] sm:$0xff] }
 0xb75   : > { %3090 = vxpose.xlu1.b32.cont [12/16] (narrow) %v4850_v10, 8 }
 0xb77   : > { %v4853_v21 = vpop.f32.mrb[22].mxu1 }
 0xb78   : > { %v3028_v9 = vpop.f32.mrb[23].mxu1 }
 0xb79   : > { %3091 = vxpose.xlu1.b32.cont [13/16] (narrow) %v3028_v9, 8  ;;  %v3341_v9 = vld [vmem:[#allocation21 + $0x30] sm:$0xff] }
 0xb7d   : > { %3092 = vxpose.xlu1.b32.cont [14/16] (narrow) %v4853_v21, 8  ;;  %v5359_v21 = vpack.c.bf16 %v3340_v15, %v3339_v12 }
 0xb7f   : > { %v4856_v22 = vpop.f32.mrb[24].mxu1  ;;  %5360 = vmatpush3.bf16.msra.mxu1 %v5359_v21 }
 0xb80   : > { %v3038_v16 = vpop.f32.mrb[25].mxu1  ;;  %5361 = vmatprep.subr.bf16.mxu1 %v6251_v2 }
 0xb81   : > { %3093 = vxpose.xlu1.b32.cont [15/16] (narrow) %v3038_v16, 8 }
 0xb85   : > { %3094 = vxpose.xlu1.b32.end [16/16] (narrow) %v4856_v22, 8  ;;  %v3342_v22 = vld [vmem:[#allocation21 + $0x38] sm:$0xff] }
 0xb86   : > { %v5362_v16 = vpack.c.bf16 %v3342_v22, %v3341_v9 }
 0xb88   : > { %5363 = vmatpush3.bf16.msra.mxu1 %v5362_v16 }
 0xb89   : > { %v3063_v31 = vpop.trf.xlu0  ;;  %5364 = vmatprep.subr.bf16.mxu1 %v6251_v2 }
 0xb8a   : > { %v3111_v34 = vcombine.high %v3063_v31, %v6253_v4  ;;  %v3118_v35 = vrot.slane %v3063_v31, %v3117_v32  ;;  %v5374_v31 = vpack.c.bf16 %v3350_v30, %v3349_v29 }
 0xb8c   : > { %v3125_v40 = vrot.slane %v3111_v34, %v3117_v32  ;;  %5366 = vmatpush3.bf16.msra.mxu1 %v5365_v20 }
 0xb8d   : > { %5367 = vmatprep.subr.bf16.mxu1 %v6251_v2 }
 0xb90   : > { %5369 = vmatpush3.bf16.msra.mxu1 %v5368_v24 }
 0xb91   : > { %5370 = vmatprep.subr.bf16.mxu1 %v6251_v2 }
 0xb94   : > { %5372 = vmatpush3.bf16.msra.mxu1 %v5371_v11 }
 0xb95   : > { %5373 = vmatprep.subr.bf16.mxu1 %v6251_v2 }
 0xb98   : > { %5375 = vmatpush3.bf16.msra.mxu1 %v5374_v31 }
 0xb99   : > { %4897 = vmatprep.subr.mxu1 %v6253_v4 }
 0xbc9   : > { %v3095_v36 = vpop.trf.xlu1 }
 0xbca   : > { %v3126_v37 = vcombine.high %v3095_v36, %v6253_v4  ;;  %v3133_v38 = vrot.slane %v3095_v36, %v3117_v32 }
 0xbcc   : > { %v3140_v6 = vrot.slane %v3126_v37, %v3117_v32  ;;  %v3141_v41 = vcombine.low %v3118_v35, %v3133_v38  ;;  %v3142_v42 = vcombine.high %v3118_v35, %v3133_v38  ;;  %v5685_v35 = vld [vmem:[#allocation24] sm:$0xff] }
 0xbcd   : > { %v3333_v36 = vrot.slane %v5685_v35, %v2130_v62  ;;  %v3585_v62 = vld [vmem:[#allocation23] sm:$0xff] }
 0xbce   : > { %v3149_v43 = vrot.slane %v3141_v41, %v3148_v39  ;;  %v3156_v44 = vrot.slane %v3142_v42, %v3148_v39  ;;  %v3157_v13 = vcombine.low %v3125_v40, %v3140_v6  ;;  %v3158_v17 = vcombine.high %v3125_v40, %v3140_v6  ;;  %v811_v40 = vld [vmem:[%s691_s17] sm:$0x1]  ;;  %v3586_v42 = vld [vmem:[#allocation23 + $0x8] sm:$0xff] }
 0xbcf   : > { %v3425_v6 = vsub.f32 1.0, %v7105_v53 }
 0xbd0   : > { %v3165_v45 = vrot.slane %v3157_v13, %v3148_v39  ;;  %v3172_v14 = vrot.slane %v3158_v17, %v3148_v39  ;;  %v3177_v46 = vcombine.low %v3149_v43, %v3156_v44  ;;  %v4010_v47 = vcombine.high %v3149_v43, %v3156_v44 }
 0xbd1   : > { %v3427_v41 = vsel %vm3426_vm14, %v3425_v6, 0.0  ;;  %v5377_v17 = vpack.c.bf16 %v3586_v42, %v3585_v62 }
 0xbd2   : > { %v3184_v48 = vrot.slane %v3177_v46, %v3117_v32  ;;  %v3192_v49 = vrot.slane %v4010_v47, %v3117_v32  ;;  %v3193_v54 = vcombine.low %v3165_v45, %v3172_v14  ;;  %v4011_v55 = vcombine.high %v3165_v45, %v3172_v14  ;;  %3428 = vadd.xlane.f32.xlu1 %v3427_v41 }
 0xbd3   : > { %v3588_v47 = vrot.slane %v5685_v35, 6 }
 0xbd4   : > { %v3200_v57 = vrot.slane %v3193_v54, %v3117_v32  ;;  %v3208_v58 = vrot.slane %v4011_v55, %v3117_v32  ;;  %v3209_v52 = vcombine.low %v3184_v48, %v3192_v49 }
 0xbd6   : > { %v3217_v59 = vcombine.low %v3200_v57, %v3208_v58  ;;  %v3216_v60 = vrot.slane %v3209_v52, %v3148_v39  ;;  %v903_v52 = vmul.f32 %v6913_v56, %v811_v40 }
 0xbd8   : > { %v3224_v61 = vrot.slane %v3217_v59, %v3148_v39  ;;  %v3506_v39 = vld [vmem:[#allocation11] sm:$0xf] }
 0xbda   : > { %v3225_v63 = vcombine.low %v3216_v60, %v3224_v61  ;;  %v3226_v0 = vcombine.high %v3216_v60, %v3224_v61  ;;  %v3668_v61 = vstv %s802_s18 }
 0xbdc   : > { %3323 = vmatprep.mubr.f32.mxu0 %v3226_v0  ;;  %v3670_v0 = vstv %s3964_s16 }
 0xbdd   : > { %3324 = vmatmul.mubr.f32.vlgmr.msra.gmra.mrb[26].mxu0 %v3225_v63 }
 0xbde   : > { %4894 = vmatprep.mubr.msk.f32.mxu0 %vm6252_vm0, %v6253_v4 }
 0xbff   : > { %v7173_v3 = vpop.xlane.xlu0 %892 }
 0xc00   : > { %v894_v5 = vsub.f32 %v6913_v56, %v7173_v3 }
 0xc02   : > { %v895_v7 = vmul.f32 1.442695, %v894_v5 }
 0xc04   : > { %5678 = vpow2.f32 %v895_v7  ;;  %v807_v7 = vand.u32 127, %v804_v50 }
 0xc0e   : > { %v5679_v8 = vpop.eup %5678 }
 0xc0f   : > { %v897_v10 = vsel %vm890_vm11, %v5679_v8, 0.0 }
 0xc10   : > { %898 = vadd.xlane.f32.xlu0 %v897_v10 }
 0xc5f   : > { %v3429_v51 = vpop.xlane.xlu1 %3428 }
 0xc9d   : > { %v899_v59 = vpop.xlane.xlu0 %898 }
 0xcb0   : > { %v4311_v32 = vpop.f32.mrb[26].mxu0 }
 0xcb1   : > { %v4312_v33 = vpop.f32.mrb[27].mxu0 }
 0xcb2   : > { %v4313_v34 = vadd.f32 %v4312_v33, %v4311_v32 }
 0xcb4   : > { %v3329_v37 = vadd.f32 %v4313_v34, %v7055_v25  ;;  %v3354_v25 = vrot.slane %v5685_v35, %v2134_v1  ;;  %v3430_v1 = vmax.f32 %v3429_v51, 1.0 }
 0xcb6   : > { %v3334_v38 = vadd.f32 %v3333_v36, %v3329_v37  ;;  %5680 = vrcp.f32 %v3430_v1 }
 0xcb7   : > { %5682 = vlog2.f32 %v899_v59 }
 0xcb8   : > { %4890 = vmatmul.mubr.f32.vlgmr.msra.gmra.mrb[26].mxu1 %v3334_v38 }
 0xcb9   : > { %4898 = vmatpush3.msk.msra.mxu1 %vm3511_vm12, %v3506_v39  ;;  %4899 = vmatprep.mubr.msk.f32.mxu1 %vm6252_vm0, %v6253_v4 }
 0xcbc   : > { %4900 = vmatmul.mubr.msk.f32.vlgmr.msra.gmra.mrb[28].mxu1 %vm3507_vm13, %v811_v40 }
 0xcc0   : > { %v5681_v48 = vpop.eup %5680 }
 0xcc1   : > { %v5683_v60 = vpop.eup %5682 }
 0xcc2   : > { %v901_v63 = vmul.f32 0.6931472, %v5683_v60 }
 0xcc4   : > { %v902_v10 = vadd.f32 %v901_v63, %v7173_v3 }
 0xd8b   : > { %v3421_v43 = vpop.f32.mrb[26].mxu1 }
 0xd8c   : > { %v3422_v44 = vadd.f32 %v3421_v43, %v3354_v25  ;;  %v4891_v13 = vpop.f32.mrb[27].mxu1 }
 0xd8e   : > { %4893 = vmatpush3.msra.mxu0 %v3422_v44 }
 0xd8f   : > { %4895 = vmatmul.mubr.msk.f32.vlgmr.msra.gmra.mrb[28].mxu0 %vm2568_vm10, %v3425_v6  ;;  %5376 = vmatprep.subr.bf16.mxu0 %v6251_v2  ;;  %v3581_v45 = vpop.f32.mrb[28].mxu1 }
 0xd90   : > { %5378 = vmatpush3.bf16.msra.mxu0 %v5377_v17  ;;  %4906 = vmatprep.mubr.msk.f32.mxu0 %vm6252_vm0, %v6253_v4  ;;  %v4901_v53 = vpop.f32.mrb[29].mxu1  ;;  %v904_v4 = vsel %vm890_vm11, %v903_v52, 0.0  ;;  %vm3672_vm0 = vcmp.eq.s32.totalorder %v807_v7, 0 }
 0xd93   : > { %4907 = vmatmul.mubr.msk.f32.vlgmr.msra.gmra.mrb[30].mxu0 %vm813_vm1, %v3581_v45  ;;  %vm3674_vm1 = vcmp.eq.s32.totalorder %v807_v7, 1 }
 0xe62   : > { %v3500_v14 = vpop.f32.mrb[28].mxu0 }
 0xe63   : > { %v4896_v46 = vpop.f32.mrb[29].mxu0  ;;  %v3505_v54 = vmul.f32 %v5681_v48, %v3500_v14 }
 0xe66   : > { %v3659_v49 = vpop.f32.mrb[30].mxu0 }
 0xe67   : > { %v3660_v55 = vadd.f32 %v3659_v49, %v3588_v47  ;;  %v4908_v57 = vpop.f32.mrb[31].mxu0 }
 0xe69   : > { %v3663_v2 = vmul.f32 %v3660_v55, %v3505_v54 }
 0xe6b   : > { %v3665_v58 = vsel %vm3664_vm15, %v3663_v2, 0.0 }
 0xe6c   : > { %3666 = vadd.xlane.f32.xlu0 %v3665_v58 }
 0xe70   : > { %905 = vadd.xlane.f32.xlu0 %v904_v4 }
 0xef9   : > { %v3667_v5 = vpop.xlane.xlu0 %3666 }
 0xefa   : > { %v3669_v8 = vmul.f32 %v3668_v61, %v3667_v5 }
 0xefc   : > { %v3671_v56 = vadd.f32 %v3670_v0, %v3669_v8 }
 0xefd   : > { %v906_v12 = vpop.xlane.xlu0 %905 }
 0xefe   : > { %v907_v15 = vsub.f32 %v902_v10, %v906_v12  ;;  %v3673_v21 = vsel %vm3672_vm0, %v3671_v56, 0.0 }
 0xf00   : > { %v3675_v9 = vsel %vm3674_vm1, %v907_v15, 0.0 }
 0xf01   : > { %v3676_v22 = vadd.f32 %v3675_v9, %v3673_v21 }
 0xf03   : > { %3677 = vst [vmem:[%s799_s19] sm:$0x1] %v3676_v22 }
 0xf04   : > { %6140 = shalt.err (!%p6137_p7)
}
 0xf05   : > { %s6141_s30 = scalar_lea.hbm %s7208_s3, 16  ;;  %s6145_s17 = scalar_lea.hbm %s7363_s26, 32 }
 0xf06   : > { %p6142_p9 = scmp.ne.s32.totalorder %s7208_s3, %s6141_s30  ;;  %p6146_p5 = scmp.lt.u32.totalorder %s7208_s3, %s7363_s26 }
 0xf07   : > { %p6147_p4 = scmp.lt.u32.totalorder %s6145_s17, %s6141_s30  ;;  %p6149_p11 = scmp.lt.u32.totalorder %s6141_s30, %s7208_s3 }
 0xf08   : > { %p6143_p12 = pnand %p6142_p9, %p7364_p3 }
 0xf09   : > { %p6148_p13 = por %p6147_p4, %p6146_p5 }
 0xf0a   : > { %p6144_p2 = pneg %p6143_p12 }
 0xf0b   : > { %p6150_p8 = por %p6149_p11, %p6148_p13 }
 0xf0d   : > { %p6151_p0 = pnand %p6150_p8, %p6144_p2 }
 0xf0f   : > { %6154 = shalt.err (!%p6151_p0)
}
 0xf10   : > { %5453 = dma.vmem_to_hbm [thread:$0]  (%p7364_p3), %s7210_s1, 16, %s7208_s3, %s3679_s11  }
 0xf11 PF: > { %s7365_s0 = sld [smem:[#allocation40_spill]]  ;;  %s7366_s19 = sld [smem:[#allocation45_spill]] }
 0xf12   : > { %p7368_p6 = scmp.ge.s32.totalorder %s6229_s24, 2 }
 0xf17   : > { %s3703_s2 = sand.u32 1, %s7365_s0   ;;  %p7367_p1 = scmp.ne.s32.totalorder %s7366_s19, 0 }
 0xf18   : > { %s3704_s15 = scalar_lea.sflag [#allocation4], %s3703_s2 }
 0xf19   : > { %p5506_p10 = pnand %p7368_p6, %p7367_p1 }
 0xf1b   : > { %6212 = dma.done.wait (!%p5506_p10), %s3704_s15, 16  }
 0xf1c   : > { %6214 = vsyncadd (!%p5506_p10), %s3704_s15, 4294967280  ;;  %s7369_s24 = sld [smem:[#allocation43_spill]]  ;;  %s7370_s23 = sld [smem:[#allocation41_spill]] }
 0xf1d   : > { %s7371_s25 = sld [smem:[#allocation44_spill]]  ;;  %s7372_s21 = smov %s6221_s22 }
 0xf22   : > { %p41_p7 = scmp.ge.s32.totalorder %s7369_s24, 4   ;;  %s7373_s22 = smov %s7370_s23 }
 0xf23   : > { %s7374_s23 = smov %s7371_s25 }
 0xf24   :  { %43 = sbr.rel (!%p41_p7) target bundleno = 28 (0x1c), region = 223 }
 0xf2b   :  { %3708 = vsyncpa [#allocation3], 1 }
 0xf2c   :  { %3710 = vsyncpa [#allocation3 + $0x1], 1 }
 0xf2d   :  { %3711 = vsyncpa [#allocation7], 1 }
 0xf2e   :  { %3713 = vsyncpa [#allocation7 + $0x1], 1 }
 0xf2f   :  { %3714 = vsyncpa [#allocation10], 1 }
 0xf30   :  { %3716 = vsyncpa [#allocation10 + $0x1], 1 }
 0xf31   :  { %3717 = vsyncpa [#allocation13], 1 }
 0xf32   :  { %3718 = vsyncpa [#allocation16], 1 }
 0xf33   :  { %3719 = vsyncpa [#allocation19], 1 }
 0xf34   :  { %3720 = vsyncpa [#allocation22], 1 }
 0xf35   :  { %3721 = vsyncpa [#allocation25], 1 }
 0xf36   :  { %3722 = vsyncpa [#allocation4], 1 }
 0xf37   :  { %3724 = vsyncpa [#allocation4 + $0x1], 1 }
 0xf38   :  { %3725 = vsyncpa [#allocation5], 1 }
 0xf39   :  { %3727 = vsyncpa [#allocation5 + $0x1], 1 }

</bundles_post_ra>
